<compile_context>
chip_gen: v6e
topology: v6e:2x2x1
jax: 0.10.0
libtpu: 0.0.40
codegen_flags: <defaults>
</compile_context>

<pallas_src>
import jax
import jax.numpy as jnp
from jax.experimental import pallas as pl
from jax.experimental.pallas import tpu as pltpu

# -------------------- model sizes (small, consistent with the module) -------
SRC_VOCAB = 64     # len(source.vocab)
TGT_VOCAB = 64     # len(target.vocab)
EMBED = 32         # encoder/decoder embedding size (300 in the original)
HIDDEN = 32        # hidden size (1024 in the original)
SRC_LEN = 8
TGT_LEN = 5
BATCH = 4

H = HIDDEN
VPAD = 128         # TGT_VOCAB padded to a full lane width for lane-dense stores


# ------------------------------ fused Pallas kernel --------------------------
def _seq2seq_kernel(emb_src_ref,    # (S, Bp, 2E)  [emb[t] | emb[S-1-t]]
                    emb_dec_ref,    # (Bp, E)      embedding of target[0]
                    enc_w_ref,      # (2E+2H, 12H) packed bidir GRU weight
                    enc_b_ref,      # (1, 12H)
                    enc_fcw_ref,    # (2H, H)      encoder fc
                    enc_fcb_ref,    # (1, H)
                    att_wh_ref,     # (H, 1)       energy rows acting on hidden
                    att_we_ref,     # (1, 1, 2H)   energy rows acting on enc state
                    att_b_ref,      # (1, 1)
                    dec_w_ref,      # (2H+E+H, 6H) packed decoder GRU weight
                    dec_b_ref,      # (1, 6H)
                    dec_fcw_ref,    # (H, VPAD)    output fc (vocab zero-padded)
                    dec_fcb_ref,    # (1, VPAD)
                    out_ref):       # (T-1, Bp, VPAD)
    S, Bp, _ = emb_src_ref.shape
    steps = out_ref.shape[0]
    H2 = 2 * H

    # -------- hoist all weight/bias loads out of the unrolled loops ----------
    enc_w = enc_w_ref[...]
    enc_b = enc_b_ref[...]
    dec_w = dec_w_ref[...]
    dec_b = dec_b_ref[...]
    fcw = dec_fcw_ref[...]
    fcb = dec_fcb_ref[...]
    att_wh = att_wh_ref[...]
    emb_dec = emb_dec_ref[...]

    # -------- encoder: bidirectional GRU, both directions per step -----------
    # One (Bp,128)@(128,12H) dot yields [gx_r|gx_z|gx_n|gh_r|gh_z|gh_n], each
    # slice (Bp, 2H) ordered [fwd | bwd]; gate math runs on both directions at once.
    h_cat = jnp.zeros((Bp, H2), jnp.float32)          # [h_fwd | h_bwd]
    hf_states, hb_states = [], []
    for t in range(S):                                # static unroll (S small)
        lhs = jnp.concatenate([emb_src_ref[t], h_cat], axis=-1)     # (Bp, 2E+2H)
        g = jnp.dot(lhs, enc_w, preferred_element_type=jnp.float32) + enc_b
        r = jax.nn.sigmoid(g[:, 0:H2] + g[:, 3 * H2:4 * H2])
        z = jax.nn.sigmoid(g[:, H2:2 * H2] + g[:, 4 * H2:5 * H2])
        n = jnp.tanh(g[:, 2 * H2:3 * H2] + r * g[:, 5 * H2:6 * H2])
        h_cat = (1.0 - z) * n + z * h_cat
        hf_states.append(h_cat[:, 0:H])
        hb_states.append(h_cat[:, H:H2])

    # encoder_state, time-major (S, Bp, 2H): position p -> [fwd state after step p
    # | bwd state after step S-1-p]  (backward direction consumed the reversed input).
    enc_tm = jnp.concatenate(
        [jnp.stack(hf_states, axis=0), jnp.stack(hb_states[::-1], axis=0)],
        axis=-1)

    # hidden = fc(cat(h_fwd_final, h_bwd_final)) -- h_cat already is that concat.
    hidden = (jnp.dot(h_cat, enc_fcw_ref[...], preferred_element_type=jnp.float32)
              + enc_fcb_ref[...])                                    # (Bp, H)

    # -------- attention: loop-invariant energy term hoisted ------------------
    # energy(cat(h, enc)) = h @ W_h + enc . W_e + b ; only the h term varies per step.
    ee = jnp.sum(enc_tm * att_we_ref[...], axis=-1) + att_b_ref[...]  # (S, Bp)
    ee = ee.T                                                         # (Bp, S)

    # -------- decoder: attention + GRU cell + output fc, unrolled ------------
    h = hidden
    for t in range(steps):
        # attention scores; softmax over the source length on the lane axis
        e = jax.nn.relu(ee + jnp.dot(h, att_wh,
                                     preferred_element_type=jnp.float32))  # (Bp, S)
        p = jnp.exp(e - jnp.max(e, axis=-1, keepdims=True))
        attn = p * pl.reciprocal(jnp.sum(p, axis=-1, keepdims=True), approx=True)
        # context: VPU weighted sum, reduction over the (leading) time axis
        ctx = jnp.sum(attn.T[:, :, None] * enc_tm, axis=0)                 # (Bp, 2H)
        # GRU cell: one (Bp,128)@(128,6H) dot producing [gx | gh]
        lhs = jnp.concatenate([ctx, emb_dec, h], axis=-1)                  # (Bp, 128)
        g = jnp.dot(lhs, dec_w, preferred_element_type=jnp.float32) + dec_b
        r = jax.nn.sigmoid(g[:, 0:H] + g[:, 3 * H:4 * H])
        z = jax.nn.sigmoid(g[:, H:2 * H] + g[:, 4 * H:5 * H])
        n = jnp.tanh(g[:, 2 * H:3 * H] + r * g[:, 5 * H:6 * H])
        h = (1.0 - z) * n + z * h
        # lane-dense (VPAD=128) output write at a static time index
        out_ref[t] = (jnp.dot(h, fcw, preferred_element_type=jnp.float32) + fcb)


# ------------------------------ parameter setup ------------------------------
def init_params(key):
    s = 0.1
    ki = iter(jax.random.split(key, 40))

    def rnd(shape):
        return s * jax.random.normal(next(ki), shape, jnp.float32)

    E, Hd = EMBED, HIDDEN

    # ---- encoder: bidirectional GRU packed into one (2E+2H, 12H) weight ------
    # LHS layout [x_fwd | x_bwd | h_fwd | h_bwd]; columns gate-major, each 2H wide
    # ([fwd|bwd] within a gate): [x_r | x_z | x_n | h_r | h_z | h_n].
    enc_w = jnp.zeros((2 * E + 2 * Hd, 12 * Hd), jnp.float32)
    enc_b = jnp.zeros((1, 12 * Hd), jnp.float32)
    x_rows = ((0, E), (E, 2 * E))
    h_rows = ((2 * E, 2 * E + Hd), (2 * E + Hd, 2 * E + 2 * Hd))
    for gate in range(3):                 # r, z, n
        for d in range(2):                # fwd, bwd
            cx = gate * 2 * Hd + d * Hd           # x-path column block
            ch = 6 * Hd + gate * 2 * Hd + d * Hd  # h-path column block
            enc_w = enc_w.at[x_rows[d][0]:x_rows[d][1], cx:cx + Hd].set(rnd((E, Hd)))
            enc_w = enc_w.at[h_rows[d][0]:h_rows[d][1], ch:ch + Hd].set(rnd((Hd, Hd)))
            enc_b = enc_b.at[0, cx:cx + Hd].set(rnd((Hd,)))
            enc_b = enc_b.at[0, ch:ch + Hd].set(rnd((Hd,)))

    enc = dict(
        embed=rnd((SRC_VOCAB, E)),
        w_pack=enc_w, b_pack=enc_b,
        fc_w=rnd((2 * Hd, Hd)),
        fc_b=rnd((1, Hd)),
    )

    # ---- decoder: GRU(input = ctx(2H)+emb(E), hidden = H) packed to (128, 6H) -
    # LHS layout [ctx | emb | h]; columns [gx(r,z,n) | gh(r,z,n)].
    K = 2 * Hd + E + Hd
    dec_w = jnp.zeros((K, 6 * Hd), jnp.float32)
    dec_w = dec_w.at[0:2 * Hd + E, 0:3 * Hd].set(rnd((2 * Hd + E, 3 * Hd)))
    dec_w = dec_w.at[2 * Hd + E:, 3 * Hd:].set(rnd((Hd, 3 * Hd)))
    dec_b = jnp.concatenate([rnd((1, 3 * Hd)), rnd((1, 3 * Hd))], axis=-1)

    fc_w = jnp.zeros((Hd, VPAD), jnp.float32).at[:, :TGT_VOCAB].set(rnd((Hd, TGT_VOCAB)))
    fc_b = jnp.zeros((1, VPAD), jnp.float32).at[0, :TGT_VOCAB].set(rnd((TGT_VOCAB,)))

    dec = dict(
        embed=rnd((TGT_VOCAB, E)),
        w_pack=dec_w, b_pack=dec_b,
        fc_w_pad=fc_w, fc_b_pad=fc_b,
        # energy = Linear(3H, 1) split: rows 0:H act on hidden, rows H:3H on enc state
        # (matches the torch.cat((hidden_repeated, encoder_state), dim=2) order).
        energy_wh=rnd((Hd, 1)),
        energy_we=rnd((1, 1, 2 * Hd)),
        energy_b=rnd((1, 1)),
    )
    return dict(enc=enc, dec=dec)


# ------------------------------ forward pass ----------------------------------
def seq2seq_forward(params, source_sentence, target_sentence):
    """source: (S, B) int32, target: (T, B) int32 -> outputs (T, B, V)."""
    S, B = source_sentence.shape
    T = target_sentence.shape[0]
    steps = T - 1
    Bp = max(8, ((B + 7) // 8) * 8)          # pad batch to full sublane width

    p_enc, p_dec = params["enc"], params["dec"]

    # embedding gathers (dropout p=0 -> identity); XLA glue outside the kernel
    emb = p_enc["embed"][source_sentence]                     # (S, B, E)
    emb_dirs = jnp.concatenate([emb, emb[::-1]], axis=-1)     # (S, B, 2E)
    emb_src = jnp.pad(emb_dirs, ((0, 0), (0, Bp - B), (0, 0)))
    emb_dec0 = jnp.pad(p_dec["embed"][target_sentence[0]], ((0, Bp - B), (0, 0)))

    out_pad = pl.pallas_call(
        _seq2seq_kernel,
        out_shape=jax.ShapeDtypeStruct((steps, Bp, VPAD), jnp.float32),
        in_specs=[pl.BlockSpec(memory_space=pltpu.MemorySpace.VMEM)] * 13,
        out_specs=pl.BlockSpec(memory_space=pltpu.MemorySpace.VMEM),
    )(emb_src, emb_dec0,
      p_enc["w_pack"], p_enc["b_pack"], p_enc["fc_w"], p_enc["fc_b"],
      p_dec["energy_wh"], p_dec["energy_we"], p_dec["energy_b"],
      p_dec["w_pack"], p_dec["b_pack"], p_dec["fc_w_pad"], p_dec["fc_b_pad"])

    dec_out = out_pad[:, :B, :TGT_VOCAB]                      # (T-1, B, V)

    # NOTE: the reference module computes best_guess / teacher-forcing `x` but never
    # feeds it back; the decoder always receives target[0] and outputs[0] stays zero.
    # That (buggy but deterministic) behavior is reproduced faithfully.
    outputs = jnp.concatenate(
        [jnp.zeros((1, B, TGT_VOCAB), jnp.float32), dec_out], axis=0)
    return outputs


# ----------------------------------- main -------------------------------------
if __name__ == "__main__":
    key = jax.random.PRNGKey(0)
    k_par, k_src, k_tgt = jax.random.split(key, 3)

    params = init_params(k_par)
    src = jax.random.randint(k_src, (SRC_LEN, BATCH), 0, SRC_VOCAB, dtype=jnp.int32)
    tgt = jax.random.randint(k_tgt, (TGT_LEN, BATCH), 0, TGT_VOCAB, dtype=jnp.int32)

    fwd = jax.jit(seq2seq_forward)
    outputs = fwd(params, src, tgt)
    jax.block_until_ready(outputs)

    assert outputs.shape == (TGT_LEN, BATCH, TGT_VOCAB)
    assert bool(jnp.all(jnp.isfinite(outputs)))
    print("KERNEL_OK")
</pallas_src>

<mosaic_0001>
module attributes {stable_mosaic.version = 11 : i64} {
  func.func @_seq2seq_kernel(%arg0: memref<8x8x64xf32, #tpu.memory_space<vmem>>, %arg1: memref<8x32xf32, #tpu.memory_space<vmem>>, %arg2: memref<128x384xf32, #tpu.memory_space<vmem>>, %arg3: memref<1x384xf32, #tpu.memory_space<vmem>>, %arg4: memref<64x32xf32, #tpu.memory_space<vmem>>, %arg5: memref<1x32xf32, #tpu.memory_space<vmem>>, %arg6: memref<32x1xf32, #tpu.memory_space<vmem>>, %arg7: memref<1x1x64xf32, #tpu.memory_space<vmem>>, %arg8: memref<1x1xf32, #tpu.memory_space<vmem>>, %arg9: memref<128x192xf32, #tpu.memory_space<vmem>>, %arg10: memref<1x192xf32, #tpu.memory_space<vmem>>, %arg11: memref<32x128xf32, #tpu.memory_space<vmem>>, %arg12: memref<1x128xf32, #tpu.memory_space<vmem>>, %arg13: memref<4x8x128xf32, #tpu.memory_space<vmem>>) attributes {dimension_semantics = [], scalar_prefetch = 0 : i64, scratch_operands = 0 : i64, tpu.core_type = #tpu.core_type<tc>} {
    %c0 = arith.constant 0 : index
    %c0_0 = arith.constant 0 : index
    %0 = vector.load %arg2[%c0, %c0_0] : memref<128x384xf32, #tpu.memory_space<vmem>>, vector<128x384xf32>
    %c0_1 = arith.constant 0 : index
    %c0_2 = arith.constant 0 : index
    %1 = vector.load %arg3[%c0_1, %c0_2] : memref<1x384xf32, #tpu.memory_space<vmem>>, vector<1x384xf32>
    %c0_3 = arith.constant 0 : index
    %c0_4 = arith.constant 0 : index
    %2 = vector.load %arg9[%c0_3, %c0_4] : memref<128x192xf32, #tpu.memory_space<vmem>>, vector<128x192xf32>
    %c0_5 = arith.constant 0 : index
    %c0_6 = arith.constant 0 : index
    %3 = vector.load %arg10[%c0_5, %c0_6] : memref<1x192xf32, #tpu.memory_space<vmem>>, vector<1x192xf32>
    %c0_7 = arith.constant 0 : index
    %c0_8 = arith.constant 0 : index
    %4 = vector.load %arg11[%c0_7, %c0_8] : memref<32x128xf32, #tpu.memory_space<vmem>>, vector<32x128xf32>
    %c0_9 = arith.constant 0 : index
    %c0_10 = arith.constant 0 : index
    %5 = vector.load %arg12[%c0_9, %c0_10] : memref<1x128xf32, #tpu.memory_space<vmem>>, vector<1x128xf32>
    %c0_11 = arith.constant 0 : index
    %c0_12 = arith.constant 0 : index
    %6 = vector.load %arg6[%c0_11, %c0_12] : memref<32x1xf32, #tpu.memory_space<vmem>>, vector<32x1xf32>
    %c0_13 = arith.constant 0 : index
    %c0_14 = arith.constant 0 : index
    %7 = vector.load %arg1[%c0_13, %c0_14] : memref<8x32xf32, #tpu.memory_space<vmem>>, vector<8x32xf32>
    %cst = arith.constant 0.000000e+00 : f32
    %8 = vector.broadcast %cst : f32 to vector<8x64xf32>
    %c0_15 = arith.constant 0 : index
    %c0_16 = arith.constant 0 : index
    %c0_17 = arith.constant 0 : index
    %9 = vector.load %arg0[%c0_15, %c0_16, %c0_17] : memref<8x8x64xf32, #tpu.memory_space<vmem>>, vector<1x8x64xf32>
    %10 = vector.shape_cast %9 : vector<1x8x64xf32> to vector<8x64xf32>
    %11 = tpu.concatenate %10, %8 in 1 : vector<8x64xf32>, vector<8x64xf32> -> vector<8x128xf32>
    %cst_18 = arith.constant dense<0.000000e+00> : vector<8x384xf32>
    %12 = tpu.matmul %11, %0, %cst_18 {dimension_numbers = #tpu.dot_dimension_numbers<[1], [0], [0], [1], [0, 0, 1, 1], [], []>} : vector<8x128xf32>, vector<128x384xf32>, vector<8x384xf32> -> vector<8x384xf32>
    %13 = vector.broadcast %1 : vector<1x384xf32> to vector<8x384xf32>
    %14 = arith.addf %12, %13 : vector<8x384xf32>
    %15 = vector.extract_strided_slice %14 {offsets = [0, 0], sizes = [8, 64], strides = [1, 1]} : vector<8x384xf32> to vector<8x64xf32>
    %16 = vector.extract_strided_slice %14 {offsets = [0, 192], sizes = [8, 64], strides = [1, 1]} : vector<8x384xf32> to vector<8x64xf32>
    %17 = arith.addf %15, %16 : vector<8x64xf32>
    %18 = arith.negf %17 : vector<8x64xf32>
    %19 = math.exp %18 : vector<8x64xf32>
    %cst_19 = arith.constant 1.000000e+00 : f32
    %20 = vector.broadcast %cst_19 : f32 to vector<8x64xf32>
    %21 = arith.addf %20, %19 : vector<8x64xf32>
    %22 = arith.divf %20, %21 : vector<8x64xf32>
    %23 = vector.extract_strided_slice %14 {offsets = [0, 64], sizes = [8, 64], strides = [1, 1]} : vector<8x384xf32> to vector<8x64xf32>
    %24 = vector.extract_strided_slice %14 {offsets = [0, 256], sizes = [8, 64], strides = [1, 1]} : vector<8x384xf32> to vector<8x64xf32>
    %25 = arith.addf %23, %24 : vector<8x64xf32>
    %26 = arith.negf %25 : vector<8x64xf32>
    %27 = math.exp %26 : vector<8x64xf32>
    %cst_20 = arith.constant 1.000000e+00 : f32
    %28 = vector.broadcast %cst_20 : f32 to vector<8x64xf32>
    %29 = arith.addf %28, %27 : vector<8x64xf32>
    %30 = arith.divf %28, %29 : vector<8x64xf32>
    %31 = vector.extract_strided_slice %14 {offsets = [0, 128], sizes = [8, 64], strides = [1, 1]} : vector<8x384xf32> to vector<8x64xf32>
    %32 = vector.extract_strided_slice %14 {offsets = [0, 320], sizes = [8, 64], strides = [1, 1]} : vector<8x384xf32> to vector<8x64xf32>
    %33 = arith.mulf %22, %32 : vector<8x64xf32>
    %34 = arith.addf %31, %33 : vector<8x64xf32>
    %35 = math.tanh %34 : vector<8x64xf32>
    %cst_21 = arith.constant 1.000000e+00 : f32
    %36 = vector.broadcast %cst_21 : f32 to vector<8x64xf32>
    %37 = arith.subf %36, %30 : vector<8x64xf32>
    %38 = arith.mulf %37, %35 : vector<8x64xf32>
    %39 = arith.mulf %30, %8 : vector<8x64xf32>
    %40 = arith.addf %38, %39 : vector<8x64xf32>
    %41 = vector.extract_strided_slice %40 {offsets = [0, 0], sizes = [8, 32], strides = [1, 1]} : vector<8x64xf32> to vector<8x32xf32>
    %42 = vector.extract_strided_slice %40 {offsets = [0, 32], sizes = [8, 32], strides = [1, 1]} : vector<8x64xf32> to vector<8x32xf32>
    %c1 = arith.constant 1 : index
    %c0_22 = arith.constant 0 : index
    %c0_23 = arith.constant 0 : index
    %43 = vector.load %arg0[%c1, %c0_22, %c0_23] : memref<8x8x64xf32, #tpu.memory_space<vmem>>, vector<1x8x64xf32>
    %44 = vector.shape_cast %43 : vector<1x8x64xf32> to vector<8x64xf32>
    %45 = tpu.concatenate %44, %40 in 1 : vector<8x64xf32>, vector<8x64xf32> -> vector<8x128xf32>
    %cst_24 = arith.constant dense<0.000000e+00> : vector<8x384xf32>
    %46 = tpu.matmul %45, %0, %cst_24 {dimension_numbers = #tpu.dot_dimension_numbers<[1], [0], [0], [1], [0, 0, 1, 1], [], []>} : vector<8x128xf32>, vector<128x384xf32>, vector<8x384xf32> -> vector<8x384xf32>
    %47 = vector.broadcast %1 : vector<1x384xf32> to vector<8x384xf32>
    %48 = arith.addf %46, %47 : vector<8x384xf32>
    %49 = vector.extract_strided_slice %48 {offsets = [0, 0], sizes = [8, 64], strides = [1, 1]} : vector<8x384xf32> to vector<8x64xf32>
    %50 = vector.extract_strided_slice %48 {offsets = [0, 192], sizes = [8, 64], strides = [1, 1]} : vector<8x384xf32> to vector<8x64xf32>
    %51 = arith.addf %49, %50 : vector<8x64xf32>
    %52 = arith.negf %51 : vector<8x64xf32>
    %53 = math.exp %52 : vector<8x64xf32>
    %cst_25 = arith.constant 1.000000e+00 : f32
    %54 = vector.broadcast %cst_25 : f32 to vector<8x64xf32>
    %55 = arith.addf %54, %53 : vector<8x64xf32>
    %56 = arith.divf %54, %55 : vector<8x64xf32>
    %57 = vector.extract_strided_slice %48 {offsets = [0, 64], sizes = [8, 64], strides = [1, 1]} : vector<8x384xf32> to vector<8x64xf32>
    %58 = vector.extract_strided_slice %48 {offsets = [0, 256], sizes = [8, 64], strides = [1, 1]} : vector<8x384xf32> to vector<8x64xf32>
    %59 = arith.addf %57, %58 : vector<8x64xf32>
    %60 = arith.negf %59 : vector<8x64xf32>
    %61 = math.exp %60 : vector<8x64xf32>
    %cst_26 = arith.constant 1.000000e+00 : f32
    %62 = vector.broadcast %cst_26 : f32 to vector<8x64xf32>
    %63 = arith.addf %62, %61 : vector<8x64xf32>
    %64 = arith.divf %62, %63 : vector<8x64xf32>
    %65 = vector.extract_strided_slice %48 {offsets = [0, 128], sizes = [8, 64], strides = [1, 1]} : vector<8x384xf32> to vector<8x64xf32>
    %66 = vector.extract_strided_slice %48 {offsets = [0, 320], sizes = [8, 64], strides = [1, 1]} : vector<8x384xf32> to vector<8x64xf32>
    %67 = arith.mulf %56, %66 : vector<8x64xf32>
    %68 = arith.addf %65, %67 : vector<8x64xf32>
    %69 = math.tanh %68 : vector<8x64xf32>
    %cst_27 = arith.constant 1.000000e+00 : f32
    %70 = vector.broadcast %cst_27 : f32 to vector<8x64xf32>
    %71 = arith.subf %70, %64 : vector<8x64xf32>
    %72 = arith.mulf %71, %69 : vector<8x64xf32>
    %73 = arith.mulf %64, %40 : vector<8x64xf32>
    %74 = arith.addf %72, %73 : vector<8x64xf32>
    %75 = vector.extract_strided_slice %74 {offsets = [0, 0], sizes = [8, 32], strides = [1, 1]} : vector<8x64xf32> to vector<8x32xf32>
    %76 = vector.extract_strided_slice %74 {offsets = [0, 32], sizes = [8, 32], strides = [1, 1]} : vector<8x64xf32> to vector<8x32xf32>
    %c2 = arith.constant 2 : index
    %c0_28 = arith.constant 0 : index
    %c0_29 = arith.constant 0 : index
    %77 = vector.load %arg0[%c2, %c0_28, %c0_29] : memref<8x8x64xf32, #tpu.memory_space<vmem>>, vector<1x8x64xf32>
    %78 = vector.shape_cast %77 : vector<1x8x64xf32> to vector<8x64xf32>
    %79 = tpu.concatenate %78, %74 in 1 : vector<8x64xf32>, vector<8x64xf32> -> vector<8x128xf32>
    %cst_30 = arith.constant dense<0.000000e+00> : vector<8x384xf32>
    %80 = tpu.matmul %79, %0, %cst_30 {dimension_numbers = #tpu.dot_dimension_numbers<[1], [0], [0], [1], [0, 0, 1, 1], [], []>} : vector<8x128xf32>, vector<128x384xf32>, vector<8x384xf32> -> vector<8x384xf32>
    %81 = vector.broadcast %1 : vector<1x384xf32> to vector<8x384xf32>
    %82 = arith.addf %80, %81 : vector<8x384xf32>
    %83 = vector.extract_strided_slice %82 {offsets = [0, 0], sizes = [8, 64], strides = [1, 1]} : vector<8x384xf32> to vector<8x64xf32>
    %84 = vector.extract_strided_slice %82 {offsets = [0, 192], sizes = [8, 64], strides = [1, 1]} : vector<8x384xf32> to vector<8x64xf32>
    %85 = arith.addf %83, %84 : vector<8x64xf32>
    %86 = arith.negf %85 : vector<8x64xf32>
    %87 = math.exp %86 : vector<8x64xf32>
    %cst_31 = arith.constant 1.000000e+00 : f32
    %88 = vector.broadcast %cst_31 : f32 to vector<8x64xf32>
    %89 = arith.addf %88, %87 : vector<8x64xf32>
    %90 = arith.divf %88, %89 : vector<8x64xf32>
    %91 = vector.extract_strided_slice %82 {offsets = [0, 64], sizes = [8, 64], strides = [1, 1]} : vector<8x384xf32> to vector<8x64xf32>
    %92 = vector.extract_strided_slice %82 {offsets = [0, 256], sizes = [8, 64], strides = [1, 1]} : vector<8x384xf32> to vector<8x64xf32>
    %93 = arith.addf %91, %92 : vector<8x64xf32>
    %94 = arith.negf %93 : vector<8x64xf32>
    %95 = math.exp %94 : vector<8x64xf32>
    %cst_32 = arith.constant 1.000000e+00 : f32
    %96 = vector.broadcast %cst_32 : f32 to vector<8x64xf32>
    %97 = arith.addf %96, %95 : vector<8x64xf32>
    %98 = arith.divf %96, %97 : vector<8x64xf32>
    %99 = vector.extract_strided_slice %82 {offsets = [0, 128], sizes = [8, 64], strides = [1, 1]} : vector<8x384xf32> to vector<8x64xf32>
    %100 = vector.extract_strided_slice %82 {offsets = [0, 320], sizes = [8, 64], strides = [1, 1]} : vector<8x384xf32> to vector<8x64xf32>
    %101 = arith.mulf %90, %100 : vector<8x64xf32>
    %102 = arith.addf %99, %101 : vector<8x64xf32>
    %103 = math.tanh %102 : vector<8x64xf32>
    %cst_33 = arith.constant 1.000000e+00 : f32
    %104 = vector.broadcast %cst_33 : f32 to vector<8x64xf32>
    %105 = arith.subf %104, %98 : vector<8x64xf32>
    %106 = arith.mulf %105, %103 : vector<8x64xf32>
    %107 = arith.mulf %98, %74 : vector<8x64xf32>
    %108 = arith.addf %106, %107 : vector<8x64xf32>
    %109 = vector.extract_strided_slice %108 {offsets = [0, 0], sizes = [8, 32], strides = [1, 1]} : vector<8x64xf32> to vector<8x32xf32>
    %110 = vector.extract_strided_slice %108 {offsets = [0, 32], sizes = [8, 32], strides = [1, 1]} : vector<8x64xf32> to vector<8x32xf32>
    %c3 = arith.constant 3 : index
    %c0_34 = arith.constant 0 : index
    %c0_35 = arith.constant 0 : index
    %111 = vector.load %arg0[%c3, %c0_34, %c0_35] : memref<8x8x64xf32, #tpu.memory_space<vmem>>, vector<1x8x64xf32>
    %112 = vector.shape_cast %111 : vector<1x8x64xf32> to vector<8x64xf32>
    %113 = tpu.concatenate %112, %108 in 1 : vector<8x64xf32>, vector<8x64xf32> -> vector<8x128xf32>
    %cst_36 = arith.constant dense<0.000000e+00> : vector<8x384xf32>
    %114 = tpu.matmul %113, %0, %cst_36 {dimension_numbers = #tpu.dot_dimension_numbers<[1], [0], [0], [1], [0, 0, 1, 1], [], []>} : vector<8x128xf32>, vector<128x384xf32>, vector<8x384xf32> -> vector<8x384xf32>
    %115 = vector.broadcast %1 : vector<1x384xf32> to vector<8x384xf32>
    %116 = arith.addf %114, %115 : vector<8x384xf32>
    %117 = vector.extract_strided_slice %116 {offsets = [0, 0], sizes = [8, 64], strides = [1, 1]} : vector<8x384xf32> to vector<8x64xf32>
    %118 = vector.extract_strided_slice %116 {offsets = [0, 192], sizes = [8, 64], strides = [1, 1]} : vector<8x384xf32> to vector<8x64xf32>
    %119 = arith.addf %117, %118 : vector<8x64xf32>
    %120 = arith.negf %119 : vector<8x64xf32>
    %121 = math.exp %120 : vector<8x64xf32>
    %cst_37 = arith.constant 1.000000e+00 : f32
    %122 = vector.broadcast %cst_37 : f32 to vector<8x64xf32>
    %123 = arith.addf %122, %121 : vector<8x64xf32>
    %124 = arith.divf %122, %123 : vector<8x64xf32>
    %125 = vector.extract_strided_slice %116 {offsets = [0, 64], sizes = [8, 64], strides = [1, 1]} : vector<8x384xf32> to vector<8x64xf32>
    %126 = vector.extract_strided_slice %116 {offsets = [0, 256], sizes = [8, 64], strides = [1, 1]} : vector<8x384xf32> to vector<8x64xf32>
    %127 = arith.addf %125, %126 : vector<8x64xf32>
    %128 = arith.negf %127 : vector<8x64xf32>
    %129 = math.exp %128 : vector<8x64xf32>
    %cst_38 = arith.constant 1.000000e+00 : f32
    %130 = vector.broadcast %cst_38 : f32 to vector<8x64xf32>
    %131 = arith.addf %130, %129 : vector<8x64xf32>
    %132 = arith.divf %130, %131 : vector<8x64xf32>
    %133 = vector.extract_strided_slice %116 {offsets = [0, 128], sizes = [8, 64], strides = [1, 1]} : vector<8x384xf32> to vector<8x64xf32>
    %134 = vector.extract_strided_slice %116 {offsets = [0, 320], sizes = [8, 64], strides = [1, 1]} : vector<8x384xf32> to vector<8x64xf32>
    %135 = arith.mulf %124, %134 : vector<8x64xf32>
    %136 = arith.addf %133, %135 : vector<8x64xf32>
    %137 = math.tanh %136 : vector<8x64xf32>
    %cst_39 = arith.constant 1.000000e+00 : f32
    %138 = vector.broadcast %cst_39 : f32 to vector<8x64xf32>
    %139 = arith.subf %138, %132 : vector<8x64xf32>
    %140 = arith.mulf %139, %137 : vector<8x64xf32>
    %141 = arith.mulf %132, %108 : vector<8x64xf32>
    %142 = arith.addf %140, %141 : vector<8x64xf32>
    %143 = vector.extract_strided_slice %142 {offsets = [0, 0], sizes = [8, 32], strides = [1, 1]} : vector<8x64xf32> to vector<8x32xf32>
    %144 = vector.extract_strided_slice %142 {offsets = [0, 32], sizes = [8, 32], strides = [1, 1]} : vector<8x64xf32> to vector<8x32xf32>
    %c4 = arith.constant 4 : index
    %c0_40 = arith.constant 0 : index
    %c0_41 = arith.constant 0 : index
    %145 = vector.load %arg0[%c4, %c0_40, %c0_41] : memref<8x8x64xf32, #tpu.memory_space<vmem>>, vector<1x8x64xf32>
    %146 = vector.shape_cast %145 : vector<1x8x64xf32> to vector<8x64xf32>
    %147 = tpu.concatenate %146, %142 in 1 : vector<8x64xf32>, vector<8x64xf32> -> vector<8x128xf32>
    %cst_42 = arith.constant dense<0.000000e+00> : vector<8x384xf32>
    %148 = tpu.matmul %147, %0, %cst_42 {dimension_numbers = #tpu.dot_dimension_numbers<[1], [0], [0], [1], [0, 0, 1, 1], [], []>} : vector<8x128xf32>, vector<128x384xf32>, vector<8x384xf32> -> vector<8x384xf32>
    %149 = vector.broadcast %1 : vector<1x384xf32> to vector<8x384xf32>
    %150 = arith.addf %148, %149 : vector<8x384xf32>
    %151 = vector.extract_strided_slice %150 {offsets = [0, 0], sizes = [8, 64], strides = [1, 1]} : vector<8x384xf32> to vector<8x64xf32>
    %152 = vector.extract_strided_slice %150 {offsets = [0, 192], sizes = [8, 64], strides = [1, 1]} : vector<8x384xf32> to vector<8x64xf32>
    %153 = arith.addf %151, %152 : vector<8x64xf32>
    %154 = arith.negf %153 : vector<8x64xf32>
    %155 = math.exp %154 : vector<8x64xf32>
    %cst_43 = arith.constant 1.000000e+00 : f32
    %156 = vector.broadcast %cst_43 : f32 to vector<8x64xf32>
    %157 = arith.addf %156, %155 : vector<8x64xf32>
    %158 = arith.divf %156, %157 : vector<8x64xf32>
    %159 = vector.extract_strided_slice %150 {offsets = [0, 64], sizes = [8, 64], strides = [1, 1]} : vector<8x384xf32> to vector<8x64xf32>
    %160 = vector.extract_strided_slice %150 {offsets = [0, 256], sizes = [8, 64], strides = [1, 1]} : vector<8x384xf32> to vector<8x64xf32>
    %161 = arith.addf %159, %160 : vector<8x64xf32>
    %162 = arith.negf %161 : vector<8x64xf32>
    %163 = math.exp %162 : vector<8x64xf32>
    %cst_44 = arith.constant 1.000000e+00 : f32
    %164 = vector.broadcast %cst_44 : f32 to vector<8x64xf32>
    %165 = arith.addf %164, %163 : vector<8x64xf32>
    %166 = arith.divf %164, %165 : vector<8x64xf32>
    %167 = vector.extract_strided_slice %150 {offsets = [0, 128], sizes = [8, 64], strides = [1, 1]} : vector<8x384xf32> to vector<8x64xf32>
    %168 = vector.extract_strided_slice %150 {offsets = [0, 320], sizes = [8, 64], strides = [1, 1]} : vector<8x384xf32> to vector<8x64xf32>
    %169 = arith.mulf %158, %168 : vector<8x64xf32>
    %170 = arith.addf %167, %169 : vector<8x64xf32>
    %171 = math.tanh %170 : vector<8x64xf32>
    %cst_45 = arith.constant 1.000000e+00 : f32
    %172 = vector.broadcast %cst_45 : f32 to vector<8x64xf32>
    %173 = arith.subf %172, %166 : vector<8x64xf32>
    %174 = arith.mulf %173, %171 : vector<8x64xf32>
    %175 = arith.mulf %166, %142 : vector<8x64xf32>
    %176 = arith.addf %174, %175 : vector<8x64xf32>
    %177 = vector.extract_strided_slice %176 {offsets = [0, 0], sizes = [8, 32], strides = [1, 1]} : vector<8x64xf32> to vector<8x32xf32>
    %178 = vector.extract_strided_slice %176 {offsets = [0, 32], sizes = [8, 32], strides = [1, 1]} : vector<8x64xf32> to vector<8x32xf32>
    %c5 = arith.constant 5 : index
    %c0_46 = arith.constant 0 : index
    %c0_47 = arith.constant 0 : index
    %179 = vector.load %arg0[%c5, %c0_46, %c0_47] : memref<8x8x64xf32, #tpu.memory_space<vmem>>, vector<1x8x64xf32>
    %180 = vector.shape_cast %179 : vector<1x8x64xf32> to vector<8x64xf32>
    %181 = tpu.concatenate %180, %176 in 1 : vector<8x64xf32>, vector<8x64xf32> -> vector<8x128xf32>
    %cst_48 = arith.constant dense<0.000000e+00> : vector<8x384xf32>
    %182 = tpu.matmul %181, %0, %cst_48 {dimension_numbers = #tpu.dot_dimension_numbers<[1], [0], [0], [1], [0, 0, 1, 1], [], []>} : vector<8x128xf32>, vector<128x384xf32>, vector<8x384xf32> -> vector<8x384xf32>
    %183 = vector.broadcast %1 : vector<1x384xf32> to vector<8x384xf32>
    %184 = arith.addf %182, %183 : vector<8x384xf32>
    %185 = vector.extract_strided_slice %184 {offsets = [0, 0], sizes = [8, 64], strides = [1, 1]} : vector<8x384xf32> to vector<8x64xf32>
    %186 = vector.extract_strided_slice %184 {offsets = [0, 192], sizes = [8, 64], strides = [1, 1]} : vector<8x384xf32> to vector<8x64xf32>
    %187 = arith.addf %185, %186 : vector<8x64xf32>
    %188 = arith.negf %187 : vector<8x64xf32>
    %189 = math.exp %188 : vector<8x64xf32>
    %cst_49 = arith.constant 1.000000e+00 : f32
    %190 = vector.broadcast %cst_49 : f32 to vector<8x64xf32>
    %191 = arith.addf %190, %189 : vector<8x64xf32>
    %192 = arith.divf %190, %191 : vector<8x64xf32>
    %193 = vector.extract_strided_slice %184 {offsets = [0, 64], sizes = [8, 64], strides = [1, 1]} : vector<8x384xf32> to vector<8x64xf32>
    %194 = vector.extract_strided_slice %184 {offsets = [0, 256], sizes = [8, 64], strides = [1, 1]} : vector<8x384xf32> to vector<8x64xf32>
    %195 = arith.addf %193, %194 : vector<8x64xf32>
    %196 = arith.negf %195 : vector<8x64xf32>
    %197 = math.exp %196 : vector<8x64xf32>
    %cst_50 = arith.constant 1.000000e+00 : f32
    %198 = vector.broadcast %cst_50 : f32 to vector<8x64xf32>
    %199 = arith.addf %198, %197 : vector<8x64xf32>
    %200 = arith.divf %198, %199 : vector<8x64xf32>
    %201 = vector.extract_strided_slice %184 {offsets = [0, 128], sizes = [8, 64], strides = [1, 1]} : vector<8x384xf32> to vector<8x64xf32>
    %202 = vector.extract_strided_slice %184 {offsets = [0, 320], sizes = [8, 64], strides = [1, 1]} : vector<8x384xf32> to vector<8x64xf32>
    %203 = arith.mulf %192, %202 : vector<8x64xf32>
    %204 = arith.addf %201, %203 : vector<8x64xf32>
    %205 = math.tanh %204 : vector<8x64xf32>
    %cst_51 = arith.constant 1.000000e+00 : f32
    %206 = vector.broadcast %cst_51 : f32 to vector<8x64xf32>
    %207 = arith.subf %206, %200 : vector<8x64xf32>
    %208 = arith.mulf %207, %205 : vector<8x64xf32>
    %209 = arith.mulf %200, %176 : vector<8x64xf32>
    %210 = arith.addf %208, %209 : vector<8x64xf32>
    %211 = vector.extract_strided_slice %210 {offsets = [0, 0], sizes = [8, 32], strides = [1, 1]} : vector<8x64xf32> to vector<8x32xf32>
    %212 = vector.extract_strided_slice %210 {offsets = [0, 32], sizes = [8, 32], strides = [1, 1]} : vector<8x64xf32> to vector<8x32xf32>
    %c6 = arith.constant 6 : index
    %c0_52 = arith.constant 0 : index
    %c0_53 = arith.constant 0 : index
    %213 = vector.load %arg0[%c6, %c0_52, %c0_53] : memref<8x8x64xf32, #tpu.memory_space<vmem>>, vector<1x8x64xf32>
    %214 = vector.shape_cast %213 : vector<1x8x64xf32> to vector<8x64xf32>
    %215 = tpu.concatenate %214, %210 in 1 : vector<8x64xf32>, vector<8x64xf32> -> vector<8x128xf32>
    %cst_54 = arith.constant dense<0.000000e+00> : vector<8x384xf32>
    %216 = tpu.matmul %215, %0, %cst_54 {dimension_numbers = #tpu.dot_dimension_numbers<[1], [0], [0], [1], [0, 0, 1, 1], [], []>} : vector<8x128xf32>, vector<128x384xf32>, vector<8x384xf32> -> vector<8x384xf32>
    %217 = vector.broadcast %1 : vector<1x384xf32> to vector<8x384xf32>
    %218 = arith.addf %216, %217 : vector<8x384xf32>
    %219 = vector.extract_strided_slice %218 {offsets = [0, 0], sizes = [8, 64], strides = [1, 1]} : vector<8x384xf32> to vector<8x64xf32>
    %220 = vector.extract_strided_slice %218 {offsets = [0, 192], sizes = [8, 64], strides = [1, 1]} : vector<8x384xf32> to vector<8x64xf32>
    %221 = arith.addf %219, %220 : vector<8x64xf32>
    %222 = arith.negf %221 : vector<8x64xf32>
    %223 = math.exp %222 : vector<8x64xf32>
    %cst_55 = arith.constant 1.000000e+00 : f32
    %224 = vector.broadcast %cst_55 : f32 to vector<8x64xf32>
    %225 = arith.addf %224, %223 : vector<8x64xf32>
    %226 = arith.divf %224, %225 : vector<8x64xf32>
    %227 = vector.extract_strided_slice %218 {offsets = [0, 64], sizes = [8, 64], strides = [1, 1]} : vector<8x384xf32> to vector<8x64xf32>
    %228 = vector.extract_strided_slice %218 {offsets = [0, 256], sizes = [8, 64], strides = [1, 1]} : vector<8x384xf32> to vector<8x64xf32>
    %229 = arith.addf %227, %228 : vector<8x64xf32>
    %230 = arith.negf %229 : vector<8x64xf32>
    %231 = math.exp %230 : vector<8x64xf32>
    %cst_56 = arith.constant 1.000000e+00 : f32
    %232 = vector.broadcast %cst_56 : f32 to vector<8x64xf32>
    %233 = arith.addf %232, %231 : vector<8x64xf32>
    %234 = arith.divf %232, %233 : vector<8x64xf32>
    %235 = vector.extract_strided_slice %218 {offsets = [0, 128], sizes = [8, 64], strides = [1, 1]} : vector<8x384xf32> to vector<8x64xf32>
    %236 = vector.extract_strided_slice %218 {offsets = [0, 320], sizes = [8, 64], strides = [1, 1]} : vector<8x384xf32> to vector<8x64xf32>
    %237 = arith.mulf %226, %236 : vector<8x64xf32>
    %238 = arith.addf %235, %237 : vector<8x64xf32>
    %239 = math.tanh %238 : vector<8x64xf32>
    %cst_57 = arith.constant 1.000000e+00 : f32
    %240 = vector.broadcast %cst_57 : f32 to vector<8x64xf32>
    %241 = arith.subf %240, %234 : vector<8x64xf32>
    %242 = arith.mulf %241, %239 : vector<8x64xf32>
    %243 = arith.mulf %234, %210 : vector<8x64xf32>
    %244 = arith.addf %242, %243 : vector<8x64xf32>
    %245 = vector.extract_strided_slice %244 {offsets = [0, 0], sizes = [8, 32], strides = [1, 1]} : vector<8x64xf32> to vector<8x32xf32>
    %246 = vector.extract_strided_slice %244 {offsets = [0, 32], sizes = [8, 32], strides = [1, 1]} : vector<8x64xf32> to vector<8x32xf32>
    %c7 = arith.constant 7 : index
    %c0_58 = arith.constant 0 : index
    %c0_59 = arith.constant 0 : index
    %247 = vector.load %arg0[%c7, %c0_58, %c0_59] : memref<8x8x64xf32, #tpu.memory_space<vmem>>, vector<1x8x64xf32>
    %248 = vector.shape_cast %247 : vector<1x8x64xf32> to vector<8x64xf32>
    %249 = tpu.concatenate %248, %244 in 1 : vector<8x64xf32>, vector<8x64xf32> -> vector<8x128xf32>
    %cst_60 = arith.constant dense<0.000000e+00> : vector<8x384xf32>
    %250 = tpu.matmul %249, %0, %cst_60 {dimension_numbers = #tpu.dot_dimension_numbers<[1], [0], [0], [1], [0, 0, 1, 1], [], []>} : vector<8x128xf32>, vector<128x384xf32>, vector<8x384xf32> -> vector<8x384xf32>
    %251 = vector.broadcast %1 : vector<1x384xf32> to vector<8x384xf32>
    %252 = arith.addf %250, %251 : vector<8x384xf32>
    %253 = vector.extract_strided_slice %252 {offsets = [0, 0], sizes = [8, 64], strides = [1, 1]} : vector<8x384xf32> to vector<8x64xf32>
    %254 = vector.extract_strided_slice %252 {offsets = [0, 192], sizes = [8, 64], strides = [1, 1]} : vector<8x384xf32> to vector<8x64xf32>
    %255 = arith.addf %253, %254 : vector<8x64xf32>
    %256 = arith.negf %255 : vector<8x64xf32>
    %257 = math.exp %256 : vector<8x64xf32>
    %cst_61 = arith.constant 1.000000e+00 : f32
    %258 = vector.broadcast %cst_61 : f32 to vector<8x64xf32>
    %259 = arith.addf %258, %257 : vector<8x64xf32>
    %260 = arith.divf %258, %259 : vector<8x64xf32>
    %261 = vector.extract_strided_slice %252 {offsets = [0, 64], sizes = [8, 64], strides = [1, 1]} : vector<8x384xf32> to vector<8x64xf32>
    %262 = vector.extract_strided_slice %252 {offsets = [0, 256], sizes = [8, 64], strides = [1, 1]} : vector<8x384xf32> to vector<8x64xf32>
    %263 = arith.addf %261, %262 : vector<8x64xf32>
    %264 = arith.negf %263 : vector<8x64xf32>
    %265 = math.exp %264 : vector<8x64xf32>
    %cst_62 = arith.constant 1.000000e+00 : f32
    %266 = vector.broadcast %cst_62 : f32 to vector<8x64xf32>
    %267 = arith.addf %266, %265 : vector<8x64xf32>
    %268 = arith.divf %266, %267 : vector<8x64xf32>
    %269 = vector.extract_strided_slice %252 {offsets = [0, 128], sizes = [8, 64], strides = [1, 1]} : vector<8x384xf32> to vector<8x64xf32>
    %270 = vector.extract_strided_slice %252 {offsets = [0, 320], sizes = [8, 64], strides = [1, 1]} : vector<8x384xf32> to vector<8x64xf32>
    %271 = arith.mulf %260, %270 : vector<8x64xf32>
    %272 = arith.addf %269, %271 : vector<8x64xf32>
    %273 = math.tanh %272 : vector<8x64xf32>
    %cst_63 = arith.constant 1.000000e+00 : f32
    %274 = vector.broadcast %cst_63 : f32 to vector<8x64xf32>
    %275 = arith.subf %274, %268 : vector<8x64xf32>
    %276 = arith.mulf %275, %273 : vector<8x64xf32>
    %277 = arith.mulf %268, %244 : vector<8x64xf32>
    %278 = arith.addf %276, %277 : vector<8x64xf32>
    %279 = vector.extract_strided_slice %278 {offsets = [0, 0], sizes = [8, 32], strides = [1, 1]} : vector<8x64xf32> to vector<8x32xf32>
    %280 = vector.extract_strided_slice %278 {offsets = [0, 32], sizes = [8, 32], strides = [1, 1]} : vector<8x64xf32> to vector<8x32xf32>
    %281 = vector.shape_cast %41 : vector<8x32xf32> to vector<1x8x32xf32>
    %282 = vector.shape_cast %75 : vector<8x32xf32> to vector<1x8x32xf32>
    %283 = vector.shape_cast %109 : vector<8x32xf32> to vector<1x8x32xf32>
    %284 = vector.shape_cast %143 : vector<8x32xf32> to vector<1x8x32xf32>
    %285 = vector.shape_cast %177 : vector<8x32xf32> to vector<1x8x32xf32>
    %286 = vector.shape_cast %211 : vector<8x32xf32> to vector<1x8x32xf32>
    %287 = vector.shape_cast %245 : vector<8x32xf32> to vector<1x8x32xf32>
    %288 = vector.shape_cast %279 : vector<8x32xf32> to vector<1x8x32xf32>
    %289 = tpu.concatenate %281, %282, %283, %284, %285, %286, %287, %288 in 0 : vector<1x8x32xf32>, vector<1x8x32xf32>, vector<1x8x32xf32>, vector<1x8x32xf32>, vector<1x8x32xf32>, vector<1x8x32xf32>, vector<1x8x32xf32>, vector<1x8x32xf32> -> vector<8x8x32xf32>
    %290 = vector.shape_cast %280 : vector<8x32xf32> to vector<1x8x32xf32>
    %291 = vector.shape_cast %246 : vector<8x32xf32> to vector<1x8x32xf32>
    %292 = vector.shape_cast %212 : vector<8x32xf32> to vector<1x8x32xf32>
    %293 = vector.shape_cast %178 : vector<8x32xf32> to vector<1x8x32xf32>
    %294 = vector.shape_cast %144 : vector<8x32xf32> to vector<1x8x32xf32>
    %295 = vector.shape_cast %110 : vector<8x32xf32> to vector<1x8x32xf32>
    %296 = vector.shape_cast %76 : vector<8x32xf32> to vector<1x8x32xf32>
    %297 = vector.shape_cast %42 : vector<8x32xf32> to vector<1x8x32xf32>
    %298 = tpu.concatenate %290, %291, %292, %293, %294, %295, %296, %297 in 0 : vector<1x8x32xf32>, vector<1x8x32xf32>, vector<1x8x32xf32>, vector<1x8x32xf32>, vector<1x8x32xf32>, vector<1x8x32xf32>, vector<1x8x32xf32>, vector<1x8x32xf32> -> vector<8x8x32xf32>
    %299 = tpu.concatenate %289, %298 in 2 : vector<8x8x32xf32>, vector<8x8x32xf32> -> vector<8x8x64xf32>
    %c0_64 = arith.constant 0 : index
    %c0_65 = arith.constant 0 : index
    %300 = vector.load %arg4[%c0_64, %c0_65] : memref<64x32xf32, #tpu.memory_space<vmem>>, vector<64x32xf32>
    %cst_66 = arith.constant dense<0.000000e+00> : vector<8x32xf32>
    %301 = tpu.matmul %278, %300, %cst_66 {dimension_numbers = #tpu.dot_dimension_numbers<[1], [0], [0], [1], [0, 0, 1, 1], [], []>} : vector<8x64xf32>, vector<64x32xf32>, vector<8x32xf32> -> vector<8x32xf32>
    %c0_67 = arith.constant 0 : index
    %c0_68 = arith.constant 0 : index
    %302 = vector.load %arg5[%c0_67, %c0_68] : memref<1x32xf32, #tpu.memory_space<vmem>>, vector<1x32xf32>
    %303 = vector.broadcast %302 : vector<1x32xf32> to vector<8x32xf32>
    %304 = arith.addf %301, %303 : vector<8x32xf32>
    %c0_69 = arith.constant 0 : index
    %c0_70 = arith.constant 0 : index
    %c0_71 = arith.constant 0 : index
    %305 = vector.load %arg7[%c0_69, %c0_70, %c0_71] : memref<1x1x64xf32, #tpu.memory_space<vmem>>, vector<1x1x64xf32>
    %306 = vector.broadcast %305 : vector<1x1x64xf32> to vector<8x8x64xf32>
    %307 = arith.mulf %299, %306 : vector<8x8x64xf32>
    %cst_72 = arith.constant dense<0.000000e+00> : vector<8x8xf32>
    %308 = vector.multi_reduction <add>, %307, %cst_72 [2] : vector<8x8x64xf32> to vector<8x8xf32>
    %c0_73 = arith.constant 0 : index
    %c0_74 = arith.constant 0 : index
    %309 = vector.load %arg8[%c0_73, %c0_74] : memref<1x1xf32, #tpu.memory_space<vmem>>, vector<1x1xf32>
    %310 = vector.broadcast %309 : vector<1x1xf32> to vector<8x8xf32>
    %311 = arith.addf %308, %310 : vector<8x8xf32>
    %312 = tpu.transpose %311, [1, 0] : vector<8x8xf32> -> vector<8x8xf32>
    %cst_75 = arith.constant dense<0.000000e+00> : vector<8x1xf32>
    %313 = tpu.matmul %304, %6, %cst_75 {dimension_numbers = #tpu.dot_dimension_numbers<[1], [0], [0], [1], [0, 0, 1, 1], [], []>} : vector<8x32xf32>, vector<32x1xf32>, vector<8x1xf32> -> vector<8x1xf32>
    %314 = vector.broadcast %313 : vector<8x1xf32> to vector<8x8xf32>
    %315 = arith.addf %312, %314 : vector<8x8xf32>
    %cst_76 = arith.constant 0.000000e+00 : f32
    %316 = vector.broadcast %cst_76 : f32 to vector<8x8xf32>
    %317 = arith.maximumf %315, %316 : vector<8x8xf32>
    %cst_77 = arith.constant dense<0xFF800000> : vector<8xf32>
    %318 = vector.multi_reduction <maximumf>, %317, %cst_77 [1] : vector<8x8xf32> to vector<8xf32>
    %319 = vector.shape_cast %318 : vector<8xf32> to vector<8x1xf32>
    %320 = vector.broadcast %319 : vector<8x1xf32> to vector<8x8xf32>
    %321 = arith.subf %317, %320 : vector<8x8xf32>
    %322 = math.exp %321 : vector<8x8xf32>
    %cst_78 = arith.constant dense<0.000000e+00> : vector<8xf32>
    %323 = vector.multi_reduction <add>, %322, %cst_78 [1] : vector<8x8xf32> to vector<8xf32>
    %324 = vector.shape_cast %323 : vector<8xf32> to vector<8x1xf32>
    %325 = tpu.reciprocal %324 {approx = true} : vector<8x1xf32> -> vector<8x1xf32>
    %326 = vector.broadcast %325 : vector<8x1xf32> to vector<8x8xf32>
    %327 = arith.mulf %322, %326 : vector<8x8xf32>
    %328 = tpu.transpose %327, [1, 0] : vector<8x8xf32> -> vector<8x8xf32>
    %329 = vector.shape_cast %328 : vector<8x8xf32> to vector<8x8x1xf32>
    %330 = vector.broadcast %329 : vector<8x8x1xf32> to vector<8x8x64xf32>
    %331 = arith.mulf %330, %299 : vector<8x8x64xf32>
    %cst_79 = arith.constant dense<0.000000e+00> : vector<8x64xf32>
    %332 = vector.multi_reduction <add>, %331, %cst_79 [0] : vector<8x8x64xf32> to vector<8x64xf32>
    %333 = tpu.concatenate %332, %7, %304 in 1 : vector<8x64xf32>, vector<8x32xf32>, vector<8x32xf32> -> vector<8x128xf32>
    %cst_80 = arith.constant dense<0.000000e+00> : vector<8x192xf32>
    %334 = tpu.matmul %333, %2, %cst_80 {dimension_numbers = #tpu.dot_dimension_numbers<[1], [0], [0], [1], [0, 0, 1, 1], [], []>} : vector<8x128xf32>, vector<128x192xf32>, vector<8x192xf32> -> vector<8x192xf32>
    %335 = vector.broadcast %3 : vector<1x192xf32> to vector<8x192xf32>
    %336 = arith.addf %334, %335 : vector<8x192xf32>
    %337 = vector.extract_strided_slice %336 {offsets = [0, 0], sizes = [8, 32], strides = [1, 1]} : vector<8x192xf32> to vector<8x32xf32>
    %338 = vector.extract_strided_slice %336 {offsets = [0, 96], sizes = [8, 32], strides = [1, 1]} : vector<8x192xf32> to vector<8x32xf32>
    %339 = arith.addf %337, %338 : vector<8x32xf32>
    %340 = arith.negf %339 : vector<8x32xf32>
    %341 = math.exp %340 : vector<8x32xf32>
    %cst_81 = arith.constant 1.000000e+00 : f32
    %342 = vector.broadcast %cst_81 : f32 to vector<8x32xf32>
    %343 = arith.addf %342, %341 : vector<8x32xf32>
    %344 = arith.divf %342, %343 : vector<8x32xf32>
    %345 = vector.extract_strided_slice %336 {offsets = [0, 32], sizes = [8, 32], strides = [1, 1]} : vector<8x192xf32> to vector<8x32xf32>
    %346 = vector.extract_strided_slice %336 {offsets = [0, 128], sizes = [8, 32], strides = [1, 1]} : vector<8x192xf32> to vector<8x32xf32>
    %347 = arith.addf %345, %346 : vector<8x32xf32>
    %348 = arith.negf %347 : vector<8x32xf32>
    %349 = math.exp %348 : vector<8x32xf32>
    %cst_82 = arith.constant 1.000000e+00 : f32
    %350 = vector.broadcast %cst_82 : f32 to vector<8x32xf32>
    %351 = arith.addf %350, %349 : vector<8x32xf32>
    %352 = arith.divf %350, %351 : vector<8x32xf32>
    %353 = vector.extract_strided_slice %336 {offsets = [0, 64], sizes = [8, 32], strides = [1, 1]} : vector<8x192xf32> to vector<8x32xf32>
    %354 = vector.extract_strided_slice %336 {offsets = [0, 160], sizes = [8, 32], strides = [1, 1]} : vector<8x192xf32> to vector<8x32xf32>
    %355 = arith.mulf %344, %354 : vector<8x32xf32>
    %356 = arith.addf %353, %355 : vector<8x32xf32>
    %357 = math.tanh %356 : vector<8x32xf32>
    %cst_83 = arith.constant 1.000000e+00 : f32
    %358 = vector.broadcast %cst_83 : f32 to vector<8x32xf32>
    %359 = arith.subf %358, %352 : vector<8x32xf32>
    %360 = arith.mulf %359, %357 : vector<8x32xf32>
    %361 = arith.mulf %352, %304 : vector<8x32xf32>
    %362 = arith.addf %360, %361 : vector<8x32xf32>
    %cst_84 = arith.constant dense<0.000000e+00> : vector<8x128xf32>
    %363 = tpu.matmul %362, %4, %cst_84 {dimension_numbers = #tpu.dot_dimension_numbers<[1], [0], [0], [1], [0, 0, 1, 1], [], []>} : vector<8x32xf32>, vector<32x128xf32>, vector<8x128xf32> -> vector<8x128xf32>
    %364 = vector.broadcast %5 : vector<1x128xf32> to vector<8x128xf32>
    %365 = arith.addf %363, %364 : vector<8x128xf32>
    %c0_85 = arith.constant 0 : index
    %c0_86 = arith.constant 0 : index
    %c0_87 = arith.constant 0 : index
    %366 = vector.load %arg13[%c0_85, %c0_86, %c0_87] : memref<4x8x128xf32, #tpu.memory_space<vmem>>, vector<1x8x128xf32>
    %367 = vector.shape_cast %366 : vector<1x8x128xf32> to vector<8x128xf32>
    %368 = vector.shape_cast %365 : vector<8x128xf32> to vector<1x8x128xf32>
    tpu.vector_store %arg13[%c0_85, %c0_86, %c0_87], %368 {strides = array<i32>} : memref<4x8x128xf32, #tpu.memory_space<vmem>>, vector<1x8x128xf32>,
    %cst_88 = arith.constant dense<0.000000e+00> : vector<8x1xf32>
    %369 = tpu.matmul %362, %6, %cst_88 {dimension_numbers = #tpu.dot_dimension_numbers<[1], [0], [0], [1], [0, 0, 1, 1], [], []>} : vector<8x32xf32>, vector<32x1xf32>, vector<8x1xf32> -> vector<8x1xf32>
    %370 = vector.broadcast %369 : vector<8x1xf32> to vector<8x8xf32>
    %371 = arith.addf %312, %370 : vector<8x8xf32>
    %cst_89 = arith.constant 0.000000e+00 : f32
    %372 = vector.broadcast %cst_89 : f32 to vector<8x8xf32>
    %373 = arith.maximumf %371, %372 : vector<8x8xf32>
    %cst_90 = arith.constant dense<0xFF800000> : vector<8xf32>
    %374 = vector.multi_reduction <maximumf>, %373, %cst_90 [1] : vector<8x8xf32> to vector<8xf32>
    %375 = vector.shape_cast %374 : vector<8xf32> to vector<8x1xf32>
    %376 = vector.broadcast %375 : vector<8x1xf32> to vector<8x8xf32>
    %377 = arith.subf %373, %376 : vector<8x8xf32>
    %378 = math.exp %377 : vector<8x8xf32>
    %cst_91 = arith.constant dense<0.000000e+00> : vector<8xf32>
    %379 = vector.multi_reduction <add>, %378, %cst_91 [1] : vector<8x8xf32> to vector<8xf32>
    %380 = vector.shape_cast %379 : vector<8xf32> to vector<8x1xf32>
    %381 = tpu.reciprocal %380 {approx = true} : vector<8x1xf32> -> vector<8x1xf32>
    %382 = vector.broadcast %381 : vector<8x1xf32> to vector<8x8xf32>
    %383 = arith.mulf %378, %382 : vector<8x8xf32>
    %384 = tpu.transpose %383, [1, 0] : vector<8x8xf32> -> vector<8x8xf32>
    %385 = vector.shape_cast %384 : vector<8x8xf32> to vector<8x8x1xf32>
    %386 = vector.broadcast %385 : vector<8x8x1xf32> to vector<8x8x64xf32>
    %387 = arith.mulf %386, %299 : vector<8x8x64xf32>
    %cst_92 = arith.constant dense<0.000000e+00> : vector<8x64xf32>
    %388 = vector.multi_reduction <add>, %387, %cst_92 [0] : vector<8x8x64xf32> to vector<8x64xf32>
    %389 = tpu.concatenate %388, %7, %362 in 1 : vector<8x64xf32>, vector<8x32xf32>, vector<8x32xf32> -> vector<8x128xf32>
    %cst_93 = arith.constant dense<0.000000e+00> : vector<8x192xf32>
    %390 = tpu.matmul %389, %2, %cst_93 {dimension_numbers = #tpu.dot_dimension_numbers<[1], [0], [0], [1], [0, 0, 1, 1], [], []>} : vector<8x128xf32>, vector<128x192xf32>, vector<8x192xf32> -> vector<8x192xf32>
    %391 = vector.broadcast %3 : vector<1x192xf32> to vector<8x192xf32>
    %392 = arith.addf %390, %391 : vector<8x192xf32>
    %393 = vector.extract_strided_slice %392 {offsets = [0, 0], sizes = [8, 32], strides = [1, 1]} : vector<8x192xf32> to vector<8x32xf32>
    %394 = vector.extract_strided_slice %392 {offsets = [0, 96], sizes = [8, 32], strides = [1, 1]} : vector<8x192xf32> to vector<8x32xf32>
    %395 = arith.addf %393, %394 : vector<8x32xf32>
    %396 = arith.negf %395 : vector<8x32xf32>
    %397 = math.exp %396 : vector<8x32xf32>
    %cst_94 = arith.constant 1.000000e+00 : f32
    %398 = vector.broadcast %cst_94 : f32 to vector<8x32xf32>
    %399 = arith.addf %398, %397 : vector<8x32xf32>
    %400 = arith.divf %398, %399 : vector<8x32xf32>
    %401 = vector.extract_strided_slice %392 {offsets = [0, 32], sizes = [8, 32], strides = [1, 1]} : vector<8x192xf32> to vector<8x32xf32>
    %402 = vector.extract_strided_slice %392 {offsets = [0, 128], sizes = [8, 32], strides = [1, 1]} : vector<8x192xf32> to vector<8x32xf32>
    %403 = arith.addf %401, %402 : vector<8x32xf32>
    %404 = arith.negf %403 : vector<8x32xf32>
    %405 = math.exp %404 : vector<8x32xf32>
    %cst_95 = arith.constant 1.000000e+00 : f32
    %406 = vector.broadcast %cst_95 : f32 to vector<8x32xf32>
    %407 = arith.addf %406, %405 : vector<8x32xf32>
    %408 = arith.divf %406, %407 : vector<8x32xf32>
    %409 = vector.extract_strided_slice %392 {offsets = [0, 64], sizes = [8, 32], strides = [1, 1]} : vector<8x192xf32> to vector<8x32xf32>
    %410 = vector.extract_strided_slice %392 {offsets = [0, 160], sizes = [8, 32], strides = [1, 1]} : vector<8x192xf32> to vector<8x32xf32>
    %411 = arith.mulf %400, %410 : vector<8x32xf32>
    %412 = arith.addf %409, %411 : vector<8x32xf32>
    %413 = math.tanh %412 : vector<8x32xf32>
    %cst_96 = arith.constant 1.000000e+00 : f32
    %414 = vector.broadcast %cst_96 : f32 to vector<8x32xf32>
    %415 = arith.subf %414, %408 : vector<8x32xf32>
    %416 = arith.mulf %415, %413 : vector<8x32xf32>
    %417 = arith.mulf %408, %362 : vector<8x32xf32>
    %418 = arith.addf %416, %417 : vector<8x32xf32>
    %cst_97 = arith.constant dense<0.000000e+00> : vector<8x128xf32>
    %419 = tpu.matmul %418, %4, %cst_97 {dimension_numbers = #tpu.dot_dimension_numbers<[1], [0], [0], [1], [0, 0, 1, 1], [], []>} : vector<8x32xf32>, vector<32x128xf32>, vector<8x128xf32> -> vector<8x128xf32>
    %420 = vector.broadcast %5 : vector<1x128xf32> to vector<8x128xf32>
    %421 = arith.addf %419, %420 : vector<8x128xf32>
    %c1_98 = arith.constant 1 : index
    %c0_99 = arith.constant 0 : index
    %c0_100 = arith.constant 0 : index
    %422 = vector.load %arg13[%c1_98, %c0_99, %c0_100] : memref<4x8x128xf32, #tpu.memory_space<vmem>>, vector<1x8x128xf32>
    %423 = vector.shape_cast %422 : vector<1x8x128xf32> to vector<8x128xf32>
    %424 = vector.shape_cast %421 : vector<8x128xf32> to vector<1x8x128xf32>
    tpu.vector_store %arg13[%c1_98, %c0_99, %c0_100], %424 {strides = array<i32>} : memref<4x8x128xf32, #tpu.memory_space<vmem>>, vector<1x8x128xf32>,
    %cst_101 = arith.constant dense<0.000000e+00> : vector<8x1xf32>
    %425 = tpu.matmul %418, %6, %cst_101 {dimension_numbers = #tpu.dot_dimension_numbers<[1], [0], [0], [1], [0, 0, 1, 1], [], []>} : vector<8x32xf32>, vector<32x1xf32>, vector<8x1xf32> -> vector<8x1xf32>
    %426 = vector.broadcast %425 : vector<8x1xf32> to vector<8x8xf32>
    %427 = arith.addf %312, %426 : vector<8x8xf32>
    %cst_102 = arith.constant 0.000000e+00 : f32
    %428 = vector.broadcast %cst_102 : f32 to vector<8x8xf32>
    %429 = arith.maximumf %427, %428 : vector<8x8xf32>
    %cst_103 = arith.constant dense<0xFF800000> : vector<8xf32>
    %430 = vector.multi_reduction <maximumf>, %429, %cst_103 [1] : vector<8x8xf32> to vector<8xf32>
    %431 = vector.shape_cast %430 : vector<8xf32> to vector<8x1xf32>
    %432 = vector.broadcast %431 : vector<8x1xf32> to vector<8x8xf32>
    %433 = arith.subf %429, %432 : vector<8x8xf32>
    %434 = math.exp %433 : vector<8x8xf32>
    %cst_104 = arith.constant dense<0.000000e+00> : vector<8xf32>
    %435 = vector.multi_reduction <add>, %434, %cst_104 [1] : vector<8x8xf32> to vector<8xf32>
    %436 = vector.shape_cast %435 : vector<8xf32> to vector<8x1xf32>
    %437 = tpu.reciprocal %436 {approx = true} : vector<8x1xf32> -> vector<8x1xf32>
    %438 = vector.broadcast %437 : vector<8x1xf32> to vector<8x8xf32>
    %439 = arith.mulf %434, %438 : vector<8x8xf32>
    %440 = tpu.transpose %439, [1, 0] : vector<8x8xf32> -> vector<8x8xf32>
    %441 = vector.shape_cast %440 : vector<8x8xf32> to vector<8x8x1xf32>
    %442 = vector.broadcast %441 : vector<8x8x1xf32> to vector<8x8x64xf32>
    %443 = arith.mulf %442, %299 : vector<8x8x64xf32>
    %cst_105 = arith.constant dense<0.000000e+00> : vector<8x64xf32>
    %444 = vector.multi_reduction <add>, %443, %cst_105 [0] : vector<8x8x64xf32> to vector<8x64xf32>
    %445 = tpu.concatenate %444, %7, %418 in 1 : vector<8x64xf32>, vector<8x32xf32>, vector<8x32xf32> -> vector<8x128xf32>
    %cst_106 = arith.constant dense<0.000000e+00> : vector<8x192xf32>
    %446 = tpu.matmul %445, %2, %cst_106 {dimension_numbers = #tpu.dot_dimension_numbers<[1], [0], [0], [1], [0, 0, 1, 1], [], []>} : vector<8x128xf32>, vector<128x192xf32>, vector<8x192xf32> -> vector<8x192xf32>
    %447 = vector.broadcast %3 : vector<1x192xf32> to vector<8x192xf32>
    %448 = arith.addf %446, %447 : vector<8x192xf32>
    %449 = vector.extract_strided_slice %448 {offsets = [0, 0], sizes = [8, 32], strides = [1, 1]} : vector<8x192xf32> to vector<8x32xf32>
    %450 = vector.extract_strided_slice %448 {offsets = [0, 96], sizes = [8, 32], strides = [1, 1]} : vector<8x192xf32> to vector<8x32xf32>
    %451 = arith.addf %449, %450 : vector<8x32xf32>
    %452 = arith.negf %451 : vector<8x32xf32>
    %453 = math.exp %452 : vector<8x32xf32>
    %cst_107 = arith.constant 1.000000e+00 : f32
    %454 = vector.broadcast %cst_107 : f32 to vector<8x32xf32>
    %455 = arith.addf %454, %453 : vector<8x32xf32>
    %456 = arith.divf %454, %455 : vector<8x32xf32>
    %457 = vector.extract_strided_slice %448 {offsets = [0, 32], sizes = [8, 32], strides = [1, 1]} : vector<8x192xf32> to vector<8x32xf32>
    %458 = vector.extract_strided_slice %448 {offsets = [0, 128], sizes = [8, 32], strides = [1, 1]} : vector<8x192xf32> to vector<8x32xf32>
    %459 = arith.addf %457, %458 : vector<8x32xf32>
    %460 = arith.negf %459 : vector<8x32xf32>
    %461 = math.exp %460 : vector<8x32xf32>
    %cst_108 = arith.constant 1.000000e+00 : f32
    %462 = vector.broadcast %cst_108 : f32 to vector<8x32xf32>
    %463 = arith.addf %462, %461 : vector<8x32xf32>
    %464 = arith.divf %462, %463 : vector<8x32xf32>
    %465 = vector.extract_strided_slice %448 {offsets = [0, 64], sizes = [8, 32], strides = [1, 1]} : vector<8x192xf32> to vector<8x32xf32>
    %466 = vector.extract_strided_slice %448 {offsets = [0, 160], sizes = [8, 32], strides = [1, 1]} : vector<8x192xf32> to vector<8x32xf32>
    %467 = arith.mulf %456, %466 : vector<8x32xf32>
    %468 = arith.addf %465, %467 : vector<8x32xf32>
    %469 = math.tanh %468 : vector<8x32xf32>
    %cst_109 = arith.constant 1.000000e+00 : f32
    %470 = vector.broadcast %cst_109 : f32 to vector<8x32xf32>
    %471 = arith.subf %470, %464 : vector<8x32xf32>
    %472 = arith.mulf %471, %469 : vector<8x32xf32>
    %473 = arith.mulf %464, %418 : vector<8x32xf32>
    %474 = arith.addf %472, %473 : vector<8x32xf32>
    %cst_110 = arith.constant dense<0.000000e+00> : vector<8x128xf32>
    %475 = tpu.matmul %474, %4, %cst_110 {dimension_numbers = #tpu.dot_dimension_numbers<[1], [0], [0], [1], [0, 0, 1, 1], [], []>} : vector<8x32xf32>, vector<32x128xf32>, vector<8x128xf32> -> vector<8x128xf32>
    %476 = vector.broadcast %5 : vector<1x128xf32> to vector<8x128xf32>
    %477 = arith.addf %475, %476 : vector<8x128xf32>
    %c2_111 = arith.constant 2 : index
    %c0_112 = arith.constant 0 : index
    %c0_113 = arith.constant 0 : index
    %478 = vector.load %arg13[%c2_111, %c0_112, %c0_113] : memref<4x8x128xf32, #tpu.memory_space<vmem>>, vector<1x8x128xf32>
    %479 = vector.shape_cast %478 : vector<1x8x128xf32> to vector<8x128xf32>
    %480 = vector.shape_cast %477 : vector<8x128xf32> to vector<1x8x128xf32>
    tpu.vector_store %arg13[%c2_111, %c0_112, %c0_113], %480 {strides = array<i32>} : memref<4x8x128xf32, #tpu.memory_space<vmem>>, vector<1x8x128xf32>,
    %cst_114 = arith.constant dense<0.000000e+00> : vector<8x1xf32>
    %481 = tpu.matmul %474, %6, %cst_114 {dimension_numbers = #tpu.dot_dimension_numbers<[1], [0], [0], [1], [0, 0, 1, 1], [], []>} : vector<8x32xf32>, vector<32x1xf32>, vector<8x1xf32> -> vector<8x1xf32>
    %482 = vector.broadcast %481 : vector<8x1xf32> to vector<8x8xf32>
    %483 = arith.addf %312, %482 : vector<8x8xf32>
    %cst_115 = arith.constant 0.000000e+00 : f32
    %484 = vector.broadcast %cst_115 : f32 to vector<8x8xf32>
    %485 = arith.maximumf %483, %484 : vector<8x8xf32>
    %cst_116 = arith.constant dense<0xFF800000> : vector<8xf32>
    %486 = vector.multi_reduction <maximumf>, %485, %cst_116 [1] : vector<8x8xf32> to vector<8xf32>
    %487 = vector.shape_cast %486 : vector<8xf32> to vector<8x1xf32>
    %488 = vector.broadcast %487 : vector<8x1xf32> to vector<8x8xf32>
    %489 = arith.subf %485, %488 : vector<8x8xf32>
    %490 = math.exp %489 : vector<8x8xf32>
    %cst_117 = arith.constant dense<0.000000e+00> : vector<8xf32>
    %491 = vector.multi_reduction <add>, %490, %cst_117 [1] : vector<8x8xf32> to vector<8xf32>
    %492 = vector.shape_cast %491 : vector<8xf32> to vector<8x1xf32>
    %493 = tpu.reciprocal %492 {approx = true} : vector<8x1xf32> -> vector<8x1xf32>
    %494 = vector.broadcast %493 : vector<8x1xf32> to vector<8x8xf32>
    %495 = arith.mulf %490, %494 : vector<8x8xf32>
    %496 = tpu.transpose %495, [1, 0] : vector<8x8xf32> -> vector<8x8xf32>
    %497 = vector.shape_cast %496 : vector<8x8xf32> to vector<8x8x1xf32>
    %498 = vector.broadcast %497 : vector<8x8x1xf32> to vector<8x8x64xf32>
    %499 = arith.mulf %498, %299 : vector<8x8x64xf32>
    %cst_118 = arith.constant dense<0.000000e+00> : vector<8x64xf32>
    %500 = vector.multi_reduction <add>, %499, %cst_118 [0] : vector<8x8x64xf32> to vector<8x64xf32>
    %501 = tpu.concatenate %500, %7, %474 in 1 : vector<8x64xf32>, vector<8x32xf32>, vector<8x32xf32> -> vector<8x128xf32>
    %cst_119 = arith.constant dense<0.000000e+00> : vector<8x192xf32>
    %502 = tpu.matmul %501, %2, %cst_119 {dimension_numbers = #tpu.dot_dimension_numbers<[1], [0], [0], [1], [0, 0, 1, 1], [], []>} : vector<8x128xf32>, vector<128x192xf32>, vector<8x192xf32> -> vector<8x192xf32>
    %503 = vector.broadcast %3 : vector<1x192xf32> to vector<8x192xf32>
    %504 = arith.addf %502, %503 : vector<8x192xf32>
    %505 = vector.extract_strided_slice %504 {offsets = [0, 0], sizes = [8, 32], strides = [1, 1]} : vector<8x192xf32> to vector<8x32xf32>
    %506 = vector.extract_strided_slice %504 {offsets = [0, 96], sizes = [8, 32], strides = [1, 1]} : vector<8x192xf32> to vector<8x32xf32>
    %507 = arith.addf %505, %506 : vector<8x32xf32>
    %508 = arith.negf %507 : vector<8x32xf32>
    %509 = math.exp %508 : vector<8x32xf32>
    %cst_120 = arith.constant 1.000000e+00 : f32
    %510 = vector.broadcast %cst_120 : f32 to vector<8x32xf32>
    %511 = arith.addf %510, %509 : vector<8x32xf32>
    %512 = arith.divf %510, %511 : vector<8x32xf32>
    %513 = vector.extract_strided_slice %504 {offsets = [0, 32], sizes = [8, 32], strides = [1, 1]} : vector<8x192xf32> to vector<8x32xf32>
    %514 = vector.extract_strided_slice %504 {offsets = [0, 128], sizes = [8, 32], strides = [1, 1]} : vector<8x192xf32> to vector<8x32xf32>
    %515 = arith.addf %513, %514 : vector<8x32xf32>
    %516 = arith.negf %515 : vector<8x32xf32>
    %517 = math.exp %516 : vector<8x32xf32>
    %cst_121 = arith.constant 1.000000e+00 : f32
    %518 = vector.broadcast %cst_121 : f32 to vector<8x32xf32>
    %519 = arith.addf %518, %517 : vector<8x32xf32>
    %520 = arith.divf %518, %519 : vector<8x32xf32>
    %521 = vector.extract_strided_slice %504 {offsets = [0, 64], sizes = [8, 32], strides = [1, 1]} : vector<8x192xf32> to vector<8x32xf32>
    %522 = vector.extract_strided_slice %504 {offsets = [0, 160], sizes = [8, 32], strides = [1, 1]} : vector<8x192xf32> to vector<8x32xf32>
    %523 = arith.mulf %512, %522 : vector<8x32xf32>
    %524 = arith.addf %521, %523 : vector<8x32xf32>
    %525 = math.tanh %524 : vector<8x32xf32>
    %cst_122 = arith.constant 1.000000e+00 : f32
    %526 = vector.broadcast %cst_122 : f32 to vector<8x32xf32>
    %527 = arith.subf %526, %520 : vector<8x32xf32>
    %528 = arith.mulf %527, %525 : vector<8x32xf32>
    %529 = arith.mulf %520, %474 : vector<8x32xf32>
    %530 = arith.addf %528, %529 : vector<8x32xf32>
    %cst_123 = arith.constant dense<0.000000e+00> : vector<8x128xf32>
    %531 = tpu.matmul %530, %4, %cst_123 {dimension_numbers = #tpu.dot_dimension_numbers<[1], [0], [0], [1], [0, 0, 1, 1], [], []>} : vector<8x32xf32>, vector<32x128xf32>, vector<8x128xf32> -> vector<8x128xf32>
    %532 = vector.broadcast %5 : vector<1x128xf32> to vector<8x128xf32>
    %533 = arith.addf %531, %532 : vector<8x128xf32>
    %c3_124 = arith.constant 3 : index
    %c0_125 = arith.constant 0 : index
    %c0_126 = arith.constant 0 : index
    %534 = vector.load %arg13[%c3_124, %c0_125, %c0_126] : memref<4x8x128xf32, #tpu.memory_space<vmem>>, vector<1x8x128xf32>
    %535 = vector.shape_cast %534 : vector<1x8x128xf32> to vector<8x128xf32>
    %536 = vector.shape_cast %533 : vector<8x128xf32> to vector<1x8x128xf32>
    tpu.vector_store %arg13[%c3_124, %c0_125, %c0_126], %536 {strides = array<i32>} : memref<4x8x128xf32, #tpu.memory_space<vmem>>, vector<1x8x128xf32>,
    return
  }
}

</mosaic_0001>

<bundles_post_ra>
// kernel: seq2seq_forward.1
= control target key start
LH: loop header
LB: loop body
LE: loop exit
PB: predicated region body
PF: predicated region fallthrough
CT: control target
= control target key end

     0   :  { %v6324_v3 = vmov 0.0   ;;  %vm4280_vm0 = vmmov 0   ;;  %vm139_vm1 = vcmask 523264   ;;  %v6323_v50 = vlaneseq  ;;  %s4281_s23 = smov 64   ;;  %s4284_s19 = smov 96   ;;  %s6309_s2 = inlined_call_operand.vmem [shape: f32[128,384], index: 2, kind: input, shape index: {}]   ;;  %s6310_s0 = inlined_call_operand.vmem [shape: f32[8,8,64], index: 0, kind: input, shape index: {}]   ;;  %s6311_s3 = inlined_call_operand.vmem [shape: f32[1,384], index: 3, kind: input, shape index: {}]   ;;  %s6312_s4 = inlined_call_operand.vmem [shape: f32[64,32], index: 4, kind: input, shape index: {}]   ;;  %s6313_s8 = inlined_call_operand.<no memory space> [shape: f32[1,1], index: 8, kind: input, shape index: {}]   ;;  %s6314_s7 = inlined_call_operand.vmem [shape: f32[1,1,64], index: 7, kind: input, shape index: {}]   ;;  %s6315_s6 = inlined_call_operand.vmem [shape: f32[32,1], index: 6, kind: input, shape index: {}]   ;;  %s6316_s5 = inlined_call_operand.vmem [shape: f32[1,32], index: 5, kind: input, shape index: {}]   ;;  %s6317_s9 = inlined_call_operand.vmem [shape: f32[128,192], index: 9, kind: input, shape index: {}]   ;;  %s6318_s1 = inlined_call_operand.vmem [shape: f32[8,32], index: 1, kind: input, shape index: {}]   ;;  %s6319_s10 = inlined_call_operand.vmem [shape: f32[1,192], index: 10, kind: input, shape index: {}]   ;;  %s6320_s11 = inlined_call_operand.vmem [shape: f32[32,128], index: 11, kind: input, shape index: {}]   ;;  %s6321_s12 = inlined_call_operand.vmem [shape: f32[1,128], index: 12, kind: input, shape index: {}]   ;;  %s6322_s13 = inlined_call_operand.vmem [shape: f32[4,8,128], index: 13, kind: output, shape index: {}]  }
   0x1   :  { %v4358_v0 = vld [vmem:[%s6309_s2 + $0x170] sm:$0xff]  ;;  %v4363_v1 = vld [vmem:[%s6309_s2 + $0x168] sm:$0xff]  ;;  %v4368_v2 = vld [vmem:[%s6309_s2 + $0x158] sm:$0xff]  ;;  %3678 = vmatprep.subr.mxu1 %v6324_v3  ;;  %221 = vmatprep.mubr.f32.mxu0 %v6324_v3  ;;  %vm1602_vm2 = vcmask 261120   ;;  %vm1797_vm3 = vcmask 1041409   ;;  %vm1799_vm4 = vcmask 1042434  }
   0x2   :  { %6387 = vst [vmem:[#allocation3_spill] sm:$0xff] %v4358_v0  ;;  %157 = vmatprep.subr.mxu0 %v4358_v0  ;;  %v4376_v4 = vld [vmem:[%s6309_s2 + $0x150] sm:$0xff]  ;;  %3710 = vmatprep.mubr.msk.f32.mxu1 %vm4280_vm0, %v6324_v3  ;;  %v4384_v5 = vld [vmem:[%s6309_s2 + $0x140] sm:$0xff]  ;;  %v4389_v6 = vld [vmem:[%s6309_s2 + $0x178] sm:$0xff]  ;;  %v4737_v51 = vshrl.u32 %v6323_v50, 7  ;;  %vm1801_vm5 = vcmask 1043459  }
   0x3   :  { %158 = vmatpush1.msra.mxu0 %v4363_v1  ;;  %v4395_v7 = vld [vmem:[%s6309_s2 + $0x138] sm:$0xff]  ;;  %3679 = vmatpush3.msra.mxu1 %v4389_v6  ;;  %v4401_v8 = vld [vmem:[%s6309_s2 + $0x160] sm:$0xff]  ;;  %v4407_v9 = vld [vmem:[%s6309_s2 + $0x128] sm:$0xff]  ;;  %vm1803_vm6 = vcmask 1044484   ;;  %vm1805_vm7 = vcmask 1045509   ;;  %vm1807_vm8 = vcmask 1046534  }
   0x4   :  { %159 = vmatprep.subr.mxu0 %v4368_v2  ;;  %3680 = vmatprep.subr.mxu1 %v6324_v3  ;;  %v4413_v10 = vld [vmem:[%s6309_s2 + $0x148] sm:$0xff]  ;;  %v4419_v11 = vld [vmem:[%s6309_s2 + $0x120] sm:$0xff]  ;;  %v4426_v12 = vld [vmem:[%s6309_s2 + $0x110] sm:$0xff]  ;;  %6390 = vst [vmem:[#allocation6_spill] sm:$0xff] %v4737_v51  ;;  %v4740_v52 = vsub.s32 1, %v4737_v51  ;;  %v4743_v53 = vsub.s32 2, %v4737_v51 }
   0x5   :  { %160 = vmatpush1.msra.mxu0 %v4376_v4  ;;  %3681 = vmatpush3.msra.mxu1 %v4401_v8  ;;  %v4432_v13 = vld [vmem:[%s6309_s2 + $0x130] sm:$0xff]  ;;  %v4438_v14 = vld [vmem:[%s6309_s2 + $0x108] sm:$0xff]  ;;  %v4445_v15 = vld [vmem:[%s6309_s2 + $0xf8] sm:$0xff]  ;;  %v4759_v63 = vsub.s32 0, %v4737_v51  ;;  %vm1809_vm9 = vcmask 1047559   ;;  %vm1924_vm10 = vcmask 64512  }
   0x6   :  { %161 = vmatprep.subr.mxu0 %v4384_v5  ;;  %3682 = vmatprep.subr.mxu1 %v6324_v3  ;;  %v4451_v16 = vld [vmem:[%s6309_s2 + $0x118] sm:$0xff]  ;;  %v4457_v17 = vld [vmem:[%s6309_s2 + $0xf0] sm:$0xff]  ;;  %v4464_v18 = vld [vmem:[%s6309_s2 + $0xe0] sm:$0xff]  ;;  %6391 = vst [vmem:[#allocation7_spill] sm:$0xff] %v4740_v52  ;;  %vm2055_vm11 = vcmask 785408  }
   0x7   :  { %162 = vmatpush1.msra.mxu0 %v4395_v7  ;;  %3683 = vmatpush3.msra.mxu1 %v4413_v10  ;;  %v4470_v19 = vld [vmem:[%s6309_s2 + $0x100] sm:$0xff]  ;;  %v4476_v20 = vld [vmem:[%s6309_s2 + $0xd8] sm:$0xff]  ;;  %v4483_v21 = vld [vmem:[%s6309_s2 + $0xc8] sm:$0xff]  ;;  %6392 = vst [vmem:[#allocation8_spill] sm:$0xff] %v4743_v53 }
   0x8   :  { %163 = vmatprep.subr.mxu0 %v4407_v9  ;;  %3684 = vmatprep.subr.mxu1 %v6324_v3  ;;  %v4489_v22 = vld [vmem:[%s6309_s2 + $0xe8] sm:$0xff]  ;;  %v4495_v23 = vld [vmem:[%s6309_s2 + $0xc0] sm:$0xff]  ;;  %v4502_v24 = vld [vmem:[%s6309_s2 + $0xb0] sm:$0xff]  ;;  %6395 = vst [vmem:[#allocation11_spill] sm:$0xff] %v4759_v63 }
   0x9   :  { %164 = vmatpush1.msra.mxu0 %v4419_v11  ;;  %3685 = vmatpush3.msra.mxu1 %v4432_v13  ;;  %v4508_v25 = vld [vmem:[%s6309_s2 + $0xd0] sm:$0xff]  ;;  %v4514_v26 = vld [vmem:[%s6309_s2 + $0xa8] sm:$0xff]  ;;  %v4521_v27 = vld [vmem:[%s6309_s2 + $0x98] sm:$0xff] }
   0xa   :  { %165 = vmatprep.subr.mxu0 %v4426_v12  ;;  %3686 = vmatprep.subr.mxu1 %v6324_v3  ;;  %v4527_v28 = vld [vmem:[%s6309_s2 + $0xb8] sm:$0xff]  ;;  %v4533_v29 = vld [vmem:[%s6309_s2 + $0x90] sm:$0xff]  ;;  %v4540_v30 = vld [vmem:[%s6309_s2 + $0x80] sm:$0xff] }
   0xb   :  { %166 = vmatpush1.msra.mxu0 %v4438_v14  ;;  %3687 = vmatpush3.msra.mxu1 %v4451_v16  ;;  %v4546_v31 = vld [vmem:[%s6309_s2 + $0xa0] sm:$0xff]  ;;  %v4552_v32 = vld [vmem:[%s6309_s2 + $0x78] sm:$0xff]  ;;  %v4559_v33 = vld [vmem:[%s6309_s2 + $0x68] sm:$0xff] }
   0xc   :  { %167 = vmatprep.subr.mxu0 %v4445_v15  ;;  %3688 = vmatprep.subr.mxu1 %v6324_v3  ;;  %v4565_v34 = vld [vmem:[%s6309_s2 + $0x88] sm:$0xff]  ;;  %v4571_v35 = vld [vmem:[%s6309_s2 + $0x60] sm:$0xff]  ;;  %v4578_v36 = vld [vmem:[%s6309_s2 + $0x50] sm:$0xff] }
   0xd   :  { %168 = vmatpush1.msra.mxu0 %v4457_v17  ;;  %3689 = vmatpush3.msra.mxu1 %v4470_v19  ;;  %v4584_v37 = vld [vmem:[%s6309_s2 + $0x70] sm:$0xff]  ;;  %v4590_v38 = vld [vmem:[%s6309_s2 + $0x48] sm:$0xff]  ;;  %v4597_v39 = vld [vmem:[%s6309_s2 + $0x38] sm:$0xff] }
   0xe   :  { %169 = vmatprep.subr.mxu0 %v4464_v18  ;;  %3690 = vmatprep.subr.mxu1 %v6324_v3  ;;  %v4603_v40 = vld [vmem:[%s6309_s2 + $0x58] sm:$0xff]  ;;  %v4609_v41 = vld [vmem:[%s6309_s2 + $0x30] sm:$0xff]  ;;  %v4616_v42 = vld [vmem:[%s6309_s2 + $0x20] sm:$0xff] }
   0xf   :  { %170 = vmatpush1.msra.mxu0 %v4476_v20  ;;  %3691 = vmatpush3.msra.mxu1 %v4489_v22  ;;  %v4622_v43 = vld [vmem:[%s6309_s2 + $0x40] sm:$0xff]  ;;  %v4628_v44 = vld [vmem:[%s6309_s2 + $0x18] sm:$0xff]  ;;  %v4635_v45 = vld [vmem:[%s6309_s2 + $0x8] sm:$0xff] }
  0x10   :  { %171 = vmatprep.subr.mxu0 %v4483_v21  ;;  %3692 = vmatprep.subr.mxu1 %v6324_v3  ;;  %v4641_v46 = vld [vmem:[%s6309_s2 + $0x28] sm:$0xff]  ;;  %v4647_v47 = vld [vmem:[%s6309_s2] sm:$0xff]  ;;  %v4658_v49 = vld [vmem:[%s6309_s2 + $0x10] sm:$0xff] }
  0x11   :  { %172 = vmatpush1.msra.mxu0 %v4495_v23  ;;  %3693 = vmatpush3.msra.mxu1 %v4508_v25  ;;  %6388 = vst [vmem:[#allocation4_spill] sm:$0xff] %v4647_v47  ;;  %v138_v48 = vld [vmem:[%s6310_s0] sm:$0xff]  ;;  %6389 = vst [vmem:[#allocation5_spill] sm:$0xff] %v4658_v49 }
  0x12   :  { %173 = vmatprep.subr.mxu0 %v4502_v24  ;;  %3694 = vmatprep.subr.mxu1 %v6324_v3  ;;  %v94_v54 = vld [vmem:[%s6311_s3] sm:$0x7] }
  0x13   :  { %174 = vmatpush1.msra.mxu0 %v4514_v26  ;;  %3695 = vmatpush3.msra.mxu1 %v4527_v28  ;;  %v4749_v55 = vrot.slane %v94_v54, %v4740_v52  ;;  %v4752_v57 = vrot.slane %v94_v54, %v4743_v53 }
  0x14   :  { %175 = vmatprep.subr.mxu0 %v4521_v27  ;;  %3696 = vmatprep.subr.mxu1 %v6324_v3 }
  0x15   :  { %176 = vmatpush1.msra.mxu0 %v4533_v29  ;;  %3697 = vmatpush3.msra.mxu1 %v4546_v31  ;;  %6393 = vst [vmem:[#allocation9_spill] sm:$0xff] %v4749_v55  ;;  %6394 = vst [vmem:[#allocation10_spill] sm:$0xff] %v4752_v57 }
  0x16   :  { %177 = vmatprep.subr.mxu0 %v4540_v30  ;;  %3698 = vmatprep.subr.mxu1 %v6324_v3 }
  0x17   :  { %178 = vmatpush1.msra.mxu0 %v4552_v32  ;;  %3699 = vmatpush3.msra.mxu1 %v4565_v34 }
  0x18   :  { %179 = vmatprep.subr.mxu0 %v4559_v33  ;;  %3700 = vmatprep.subr.mxu1 %v6324_v3 }
  0x19   :  { %180 = vmatpush1.msra.mxu0 %v4571_v35  ;;  %3701 = vmatpush3.msra.mxu1 %v4584_v37 }
  0x1a   :  { %181 = vmatprep.subr.mxu0 %v4578_v36  ;;  %3702 = vmatprep.subr.mxu1 %v6324_v3 }
  0x1b   :  { %182 = vmatpush1.msra.mxu0 %v4590_v38  ;;  %3703 = vmatpush3.msra.mxu1 %v4603_v40 }
  0x1c   :  { %183 = vmatprep.subr.mxu0 %v4597_v39  ;;  %3704 = vmatprep.subr.mxu1 %v6324_v3 }
  0x1d   :  { %184 = vmatpush1.msra.mxu0 %v4609_v41  ;;  %3705 = vmatpush3.msra.mxu1 %v4622_v43 }
  0x1e   :  { %185 = vmatprep.subr.mxu0 %v4616_v42  ;;  %3706 = vmatprep.subr.mxu1 %v6324_v3 }
  0x1f   :  { %186 = vmatpush1.msra.mxu0 %v4628_v44  ;;  %3707 = vmatpush3.msra.mxu1 %v4641_v46 }
  0x20   :  { %187 = vmatprep.subr.mxu0 %v4635_v45  ;;  %3708 = vmatprep.subr.mxu1 %v6324_v3 }
  0x21   :  { %188 = vmatpush1.msra.mxu0 %v4647_v47  ;;  %3709 = vmatpush3.msra.mxu1 %v4658_v49 }
  0x22   :  { %3444 = vmatmul.mubr.msk.f32.vlgmr.msra.gmra.mxu0 %vm139_vm1, %v138_v48  ;;  %3711 = vmatmul.mubr.msk.f32.vlgmr.msra.gmra.mxu1 %vm139_vm1, %v138_v48  ;;  %v4762_v48 = vrot.slane %v94_v54, %v4759_v63 }
  0x23   :  { %334 = vmatprep.subr.mxu0 %v4358_v0  ;;  %3713 = vmatprep.subr.mxu1 %v6324_v3 }
  0x24   :  { %335 = vmatpush1.msra.mxu0 %v4363_v1  ;;  %3714 = vmatpush3.msra.mxu1 %v4389_v6  ;;  %6396 = vst [vmem:[#allocation12_spill] sm:$0xff] %v4762_v48 }
  0x25   :  { %336 = vmatprep.subr.mxu0 %v4368_v2  ;;  %3715 = vmatprep.subr.mxu1 %v6324_v3 }
  0x26   :  { %337 = vmatpush1.msra.mxu0 %v4376_v4  ;;  %3716 = vmatpush3.msra.mxu1 %v4401_v8 }
  0x27   :  { %338 = vmatprep.subr.mxu0 %v4384_v5  ;;  %3717 = vmatprep.subr.mxu1 %v6324_v3 }
  0x28   :  { %339 = vmatpush1.msra.mxu0 %v4395_v7  ;;  %3718 = vmatpush3.msra.mxu1 %v4413_v10 }
  0x29   :  { %340 = vmatprep.subr.mxu0 %v4407_v9  ;;  %3719 = vmatprep.subr.mxu1 %v6324_v3 }
  0x2a   :  { %341 = vmatpush1.msra.mxu0 %v4419_v11  ;;  %3720 = vmatpush3.msra.mxu1 %v4432_v13 }
  0x2b   :  { %342 = vmatprep.subr.mxu0 %v4426_v12  ;;  %3721 = vmatprep.subr.mxu1 %v6324_v3 }
  0x2c   :  { %343 = vmatpush1.msra.mxu0 %v4438_v14  ;;  %3722 = vmatpush3.msra.mxu1 %v4451_v16 }
  0x2d   :  { %344 = vmatprep.subr.mxu0 %v4445_v15  ;;  %3723 = vmatprep.subr.mxu1 %v6324_v3 }
  0x2e   :  { %345 = vmatpush1.msra.mxu0 %v4457_v17  ;;  %3724 = vmatpush3.msra.mxu1 %v4470_v19 }
  0x2f   :  { %346 = vmatprep.subr.mxu0 %v4464_v18  ;;  %3725 = vmatprep.subr.mxu1 %v6324_v3 }
  0x30   :  { %347 = vmatpush1.msra.mxu0 %v4476_v20  ;;  %3726 = vmatpush3.msra.mxu1 %v4489_v22 }
  0x31   :  { %348 = vmatprep.subr.mxu0 %v4483_v21  ;;  %3727 = vmatprep.subr.mxu1 %v6324_v3 }
  0x32   :  { %349 = vmatpush1.msra.mxu0 %v4495_v23  ;;  %3728 = vmatpush3.msra.mxu1 %v4508_v25 }
  0x33   :  { %350 = vmatprep.subr.mxu0 %v4502_v24  ;;  %3729 = vmatprep.subr.mxu1 %v6324_v3 }
  0x34   :  { %351 = vmatpush1.msra.mxu0 %v4514_v26  ;;  %3730 = vmatpush3.msra.mxu1 %v4527_v28 }
  0x35   :  { %352 = vmatprep.subr.mxu0 %v4521_v27  ;;  %3731 = vmatprep.subr.mxu1 %v6324_v3 }
  0x36   :  { %353 = vmatpush1.msra.mxu0 %v4533_v29  ;;  %3732 = vmatpush3.msra.mxu1 %v4546_v31 }
  0x37   :  { %354 = vmatprep.subr.mxu0 %v4540_v30  ;;  %3733 = vmatprep.subr.mxu1 %v6324_v3 }
  0x38   :  { %355 = vmatpush1.msra.mxu0 %v4552_v32  ;;  %3734 = vmatpush3.msra.mxu1 %v4565_v34 }
  0x39   :  { %356 = vmatprep.subr.mxu0 %v4559_v33  ;;  %3735 = vmatprep.subr.mxu1 %v6324_v3 }
  0x3a   :  { %357 = vmatpush1.msra.mxu0 %v4571_v35  ;;  %3736 = vmatpush3.msra.mxu1 %v4584_v37 }
  0x3b   :  { %358 = vmatprep.subr.mxu0 %v4578_v36  ;;  %3737 = vmatprep.subr.mxu1 %v6324_v3 }
  0x3c   :  { %359 = vmatpush1.msra.mxu0 %v4590_v38  ;;  %3738 = vmatpush3.msra.mxu1 %v4603_v40 }
  0x3d   :  { %360 = vmatprep.subr.mxu0 %v4597_v39  ;;  %3739 = vmatprep.subr.mxu1 %v6324_v3 }
  0x3e   :  { %361 = vmatpush1.msra.mxu0 %v4609_v41  ;;  %3740 = vmatpush3.msra.mxu1 %v4622_v43 }
  0x3f   :  { %362 = vmatprep.subr.mxu0 %v4616_v42  ;;  %3741 = vmatprep.subr.mxu1 %v6324_v3 }
  0x40   :  { %363 = vmatpush1.msra.mxu0 %v4628_v44  ;;  %3742 = vmatpush3.msra.mxu1 %v4641_v46 }
  0x41   :  { %364 = vmatprep.subr.mxu0 %v4635_v45  ;;  %3743 = vmatprep.subr.mxu1 %v6324_v3 }
  0x42   :  { %365 = vmatpush1.msra.mxu0 %v4647_v47  ;;  %398 = vmatprep.mubr.f32.mxu0 %v6324_v3 }
  0x43   :  { %3744 = vmatpush3.msra.mxu1 %v4658_v49  ;;  %3745 = vmatprep.mubr.msk.f32.mxu1 %vm4280_vm0, %v6324_v3 }
  0x44   :  { %511 = vmatprep.subr.mxu0 %v4358_v0  ;;  %3748 = vmatprep.subr.mxu1 %v6324_v3 }
  0xe2   :  { %v223_v56 = vpop.f32.mrf.mxu0  ;;  %v294_v58 = vpop.f32.mrf.mxu1 }
  0xe3   :  { %v295_v62 = vadd.f32 %v294_v58, %v4752_v57  ;;  %v224_v50 = vadd.f32 %v223_v56, %v4762_v48 }
  0xe4   :  { %v225_v59 = vpop.f32.mrf.mxu0  ;;  %v3712_v61 = vpop.f32.mrf.mxu1 }
  0xe5   :  { %v226_v60 = vadd.f32 %v225_v59, %v4749_v55 }
  0xe7   :  { %299 = vrot.lane.b32.xlu0 %v226_v60, %s4281_s23 }
  0xeb   :  { %310 = vrot.lane.b32.xlu0 %v295_v62, %s4281_s23 }
 0x159   :  { %v300_v3 = vpop.permute.xlu0 %299 }
 0x15a   :  { %v302_v53 = vadd.f32 %v300_v3, %v224_v50 }
 0x15c   :  { %v3446_v52 = vmul.f32 -1.442695, %v302_v53 }
 0x15d   :  { %v311_v0 = vpop.permute.xlu0 %310 }
 0x15e   :  { %4073 = vpow2.f32 %v3446_v52  ;;  %v313_v51 = vadd.f32 %v311_v0, %v224_v50  ;;  %v6399_v50 = vld [vmem:[#allocation3_spill] sm:$0xff] }
 0x160   :  { %v3447_v54 = vmul.f32 -1.442695, %v313_v51 }
 0x16b   :  { %v4074_v59 = vpop.eup %4073 }
 0x16c   :  { %v306_v61 = vadd.f32 1.0, %v4074_v59 }
 0x16e   :  { %4075 = vrcp.f32 %v306_v61 }
 0x17b   :  { %v4076_v55 = vpop.eup %4075 }
 0x17c   :  { %v320_v58 = vmul.f32 %v4076_v55, %v311_v0  ;;  %v3448_v55 = vld [vmem:[%s6310_s0 + $0x8] sm:$0xff]  ;;  %v6398_v0 = vmov 0.0  }
 0x17e   :  { %v321_v57 = vadd.f32 %v320_v58, %v226_v60 }
 0x180   :  { %4077 = vtanh.f32 %v321_v57 }
 0x181   :  { %4079 = vpow2.f32 %v3447_v54  ;;  %v6401_v54 = vld [vmem:[#allocation9_spill] sm:$0xff] }
 0x18d   :  { %v4078_v62 = vpop.eup %4077 }
 0x18e   :  { %325 = vrot.lane.b32.xlu1 %v4078_v62, %s4281_s23  ;;  %v4080_v63 = vpop.eup %4079 }
 0x18f   :  { %v317_v56 = vadd.f32 1.0, %v4080_v63 }
 0x191   :  { %4081 = vrcp.f32 %v317_v56 }
 0x19e   :  { %v4082_v3 = vpop.eup %4081 }
 0x19f   :  { %v323_v53 = vsub.f32 1.0, %v4082_v3  ;;  %v329_v48 = vmul.f32 0.0, %v4082_v3  ;;  %v6402_v3 = vld [vmem:[#allocation12_spill] sm:$0xff] }
 0x200   :  { %v326_v52 = vpop.permute.xlu1 %325 }
 0x201   :  { %v328_v59 = vmul.f32 %v326_v52, %v323_v53 }
 0x203   :  { %v4769_v60 = vadd.f32 %v329_v48, %v328_v59  ;;  %v6400_v48 = vld [vmem:[#allocation10_spill] sm:$0xff] }
 0x205   :  { %6397 = vst [vmem:[#allocation13_spill] sm:$0xff] %v4769_v60  ;;  %v333_v57 = vsel %vm139_vm1, %v3448_v55, %v4769_v60 }
 0x206   :  { %399 = vmatmul.mubr.f32.vlgmr.msra.gmra.mxu0 %v333_v57  ;;  %3746 = vmatmul.mubr.f32.vlgmr.msra.gmra.mxu1 %v333_v57 }
 0x207   :  { %512 = vmatpush1.msra.mxu0 %v4363_v1  ;;  %3749 = vmatpush3.msra.mxu1 %v4389_v6 }
 0x208   :  { %513 = vmatprep.subr.mxu0 %v4368_v2  ;;  %3750 = vmatprep.subr.mxu1 %v6398_v0 }
 0x209   :  { %514 = vmatpush1.msra.mxu0 %v4376_v4  ;;  %3751 = vmatpush3.msra.mxu1 %v4401_v8 }
 0x20a   :  { %515 = vmatprep.subr.mxu0 %v4384_v5  ;;  %3752 = vmatprep.subr.mxu1 %v6398_v0 }
 0x20b   :  { %516 = vmatpush1.msra.mxu0 %v4395_v7  ;;  %3753 = vmatpush3.msra.mxu1 %v4413_v10 }
 0x20c   :  { %517 = vmatprep.subr.mxu0 %v4407_v9  ;;  %3754 = vmatprep.subr.mxu1 %v6398_v0 }
 0x20d   :  { %518 = vmatpush1.msra.mxu0 %v4419_v11  ;;  %3755 = vmatpush3.msra.mxu1 %v4432_v13 }
 0x20e   :  { %519 = vmatprep.subr.mxu0 %v4426_v12  ;;  %3756 = vmatprep.subr.mxu1 %v6398_v0 }
 0x20f   :  { %520 = vmatpush1.msra.mxu0 %v4438_v14  ;;  %3757 = vmatpush3.msra.mxu1 %v4451_v16 }
 0x210   :  { %521 = vmatprep.subr.mxu0 %v4445_v15  ;;  %3758 = vmatprep.subr.mxu1 %v6398_v0 }
 0x211   :  { %522 = vmatpush1.msra.mxu0 %v4457_v17  ;;  %3759 = vmatpush3.msra.mxu1 %v4470_v19 }
 0x212   :  { %523 = vmatprep.subr.mxu0 %v4464_v18  ;;  %3760 = vmatprep.subr.mxu1 %v6398_v0 }
 0x213   :  { %524 = vmatpush1.msra.mxu0 %v4476_v20  ;;  %3761 = vmatpush3.msra.mxu1 %v4489_v22 }
 0x214   :  { %525 = vmatprep.subr.mxu0 %v4483_v21  ;;  %3762 = vmatprep.subr.mxu1 %v6398_v0 }
 0x215   :  { %526 = vmatpush1.msra.mxu0 %v4495_v23  ;;  %3763 = vmatpush3.msra.mxu1 %v4508_v25 }
 0x216   :  { %527 = vmatprep.subr.mxu0 %v4502_v24  ;;  %3764 = vmatprep.subr.mxu1 %v6398_v0 }
 0x217   :  { %528 = vmatpush1.msra.mxu0 %v4514_v26  ;;  %3765 = vmatpush3.msra.mxu1 %v4527_v28 }
 0x218   :  { %529 = vmatprep.subr.mxu0 %v4521_v27  ;;  %3766 = vmatprep.subr.mxu1 %v6398_v0 }
 0x219   :  { %530 = vmatpush1.msra.mxu0 %v4533_v29  ;;  %3767 = vmatpush3.msra.mxu1 %v4546_v31 }
 0x21a   :  { %531 = vmatprep.subr.mxu0 %v4540_v30  ;;  %3768 = vmatprep.subr.mxu1 %v6398_v0 }
 0x21b   :  { %532 = vmatpush1.msra.mxu0 %v4552_v32  ;;  %3769 = vmatpush3.msra.mxu1 %v4565_v34 }
 0x21c   :  { %533 = vmatprep.subr.mxu0 %v4559_v33  ;;  %3770 = vmatprep.subr.mxu1 %v6398_v0 }
 0x21d   :  { %534 = vmatpush1.msra.mxu0 %v4571_v35  ;;  %3771 = vmatpush3.msra.mxu1 %v4584_v37 }
 0x21e   :  { %535 = vmatprep.subr.mxu0 %v4578_v36  ;;  %3772 = vmatprep.subr.mxu1 %v6398_v0 }
 0x21f   :  { %536 = vmatpush1.msra.mxu0 %v4590_v38  ;;  %3773 = vmatpush3.msra.mxu1 %v4603_v40 }
 0x220   :  { %537 = vmatprep.subr.mxu0 %v4597_v39  ;;  %3774 = vmatprep.subr.mxu1 %v6398_v0 }
 0x221   :  { %538 = vmatpush1.msra.mxu0 %v4609_v41  ;;  %3775 = vmatpush3.msra.mxu1 %v4622_v43 }
 0x222   :  { %539 = vmatprep.subr.mxu0 %v4616_v42  ;;  %3776 = vmatprep.subr.mxu1 %v6398_v0 }
 0x223   :  { %540 = vmatpush1.msra.mxu0 %v4628_v44  ;;  %3777 = vmatpush3.msra.mxu1 %v4641_v46 }
 0x224   :  { %541 = vmatprep.subr.mxu0 %v4635_v45  ;;  %3778 = vmatprep.subr.mxu1 %v6398_v0 }
 0x225   :  { %542 = vmatpush1.msra.mxu0 %v4647_v47  ;;  %575 = vmatprep.mubr.f32.mxu0 %v6398_v0 }
 0x226   :  { %3779 = vmatpush3.msra.mxu1 %v4658_v49  ;;  %3780 = vmatprep.mubr.msk.f32.mxu1 %vm4280_vm0, %v6398_v0 }
 0x227   :  { %688 = vmatprep.subr.mxu0 %v6399_v50  ;;  %3783 = vmatprep.subr.mxu1 %v6398_v0 }
 0x2c6   :  { %v400_v51 = vpop.f32.mrf.mxu0  ;;  %v471_v63 = vpop.f32.mrf.mxu1 }
 0x2c7   :  { %v472_v61 = vadd.f32 %v471_v63, %v6400_v48  ;;  %v401_v53 = vadd.f32 %v400_v51, %v6402_v3 }
 0x2c8   :  { %v402_v58 = vpop.f32.mrf.mxu0  ;;  %v3747_v62 = vpop.f32.mrf.mxu1 }
 0x2c9   :  { %v403_v56 = vadd.f32 %v402_v58, %v6401_v54  ;;  %487 = vrot.lane.b32.xlu0 %v472_v61, %s4281_s23 }
 0x2cb   :  { %476 = vrot.lane.b32.xlu1 %v403_v56, %s4281_s23 }
 0x33b   :  { %v488_v47 = vpop.permute.xlu0 %487 }
 0x33c   :  { %v490_v61 = vadd.f32 %v488_v47, %v401_v53 }
 0x33d   :  { %v477_v52 = vpop.permute.xlu1 %476 }
 0x33e   :  { %v479_v59 = vadd.f32 %v477_v52, %v401_v53  ;;  %v3450_v58 = vmul.f32 -1.442695, %v490_v61  ;;  %v6406_v53 = vld [vmem:[#allocation3_spill] sm:$0xff]  ;;  %v6407_v61 = vld [vmem:[#allocation10_spill] sm:$0xff] }
 0x340   :  { %v3449_v55 = vmul.f32 -1.442695, %v479_v59 }
 0x342   :  { %4083 = vpow2.f32 %v3449_v55 }
 0x34f   :  { %v4084_v57 = vpop.eup %4083 }
 0x350   :  { %v483_v50 = vadd.f32 1.0, %v4084_v57 }
 0x352   :  { %4085 = vrcp.f32 %v483_v50 }
 0x35f   :  { %v4086_v49 = vpop.eup %4085 }
 0x360   :  { %v497_v63 = vmul.f32 %v4086_v49, %v488_v47  ;;  %v3451_v49 = vld [vmem:[%s6310_s0 + $0x10] sm:$0xff] }
 0x362   :  { %v498_v48 = vadd.f32 %v497_v63, %v403_v56  ;;  %v6405_v56 = vld [vmem:[#allocation5_spill] sm:$0xff] }
 0x364   :  { %4087 = vtanh.f32 %v498_v48 }
 0x365   :  { %4089 = vpow2.f32 %v3450_v58 }
 0x371   :  { %v4088_v62 = vpop.eup %4087 }
 0x372   :  { %502 = vrot.lane.b32.xlu1 %v4088_v62, %s4281_s23  ;;  %v4090_v54 = vpop.eup %4089 }
 0x373   :  { %v494_v51 = vadd.f32 1.0, %v4090_v54  ;;  %v6404_v54 = vld [vmem:[#allocation4_spill] sm:$0xff] }
 0x375   :  { %4091 = vrcp.f32 %v494_v51 }
 0x382   :  { %v4092_v52 = vpop.eup %4091 }
 0x383   :  { %v500_v59 = vsub.f32 1.0, %v4092_v52  ;;  %v506_v57 = vmul.f32 %v4092_v52, %v4769_v60 }
 0x3e4   :  { %v503_v55 = vpop.permute.xlu1 %502 }
 0x3e5   :  { %v505_v50 = vmul.f32 %v503_v55, %v500_v59  ;;  %v6408_v59 = vld [vmem:[#allocation9_spill] sm:$0xff] }
 0x3e7   :  { %v4850_v48 = vadd.f32 %v506_v57, %v505_v50 }
 0x3e9   :  { %6403 = vst [vmem:[#allocation12_spill] sm:$0xff] %v4850_v48  ;;  %v510_v47 = vsel %vm139_vm1, %v3451_v49, %v4850_v48 }
 0x3ea   :  { %576 = vmatmul.mubr.f32.vlgmr.msra.gmra.mxu0 %v510_v47  ;;  %3781 = vmatmul.mubr.f32.vlgmr.msra.gmra.mxu1 %v510_v47 }
 0x3eb   :  { %689 = vmatpush1.msra.mxu0 %v4363_v1  ;;  %3784 = vmatpush3.msra.mxu1 %v4389_v6 }
 0x3ec   :  { %690 = vmatprep.subr.mxu0 %v4368_v2  ;;  %3785 = vmatprep.subr.mxu1 %v6398_v0 }
 0x3ed   :  { %691 = vmatpush1.msra.mxu0 %v4376_v4  ;;  %3786 = vmatpush3.msra.mxu1 %v4401_v8 }
 0x3ee   :  { %692 = vmatprep.subr.mxu0 %v4384_v5  ;;  %3787 = vmatprep.subr.mxu1 %v6398_v0 }
 0x3ef   :  { %693 = vmatpush1.msra.mxu0 %v4395_v7  ;;  %3788 = vmatpush3.msra.mxu1 %v4413_v10 }
 0x3f0   :  { %694 = vmatprep.subr.mxu0 %v4407_v9  ;;  %3789 = vmatprep.subr.mxu1 %v6398_v0 }
 0x3f1   :  { %695 = vmatpush1.msra.mxu0 %v4419_v11  ;;  %3790 = vmatpush3.msra.mxu1 %v4432_v13 }
 0x3f2   :  { %696 = vmatprep.subr.mxu0 %v4426_v12  ;;  %3791 = vmatprep.subr.mxu1 %v6398_v0 }
 0x3f3   :  { %697 = vmatpush1.msra.mxu0 %v4438_v14  ;;  %3792 = vmatpush3.msra.mxu1 %v4451_v16 }
 0x3f4   :  { %698 = vmatprep.subr.mxu0 %v4445_v15  ;;  %3793 = vmatprep.subr.mxu1 %v6398_v0 }
 0x3f5   :  { %699 = vmatpush1.msra.mxu0 %v4457_v17  ;;  %3794 = vmatpush3.msra.mxu1 %v4470_v19 }
 0x3f6   :  { %700 = vmatprep.subr.mxu0 %v4464_v18  ;;  %3795 = vmatprep.subr.mxu1 %v6398_v0 }
 0x3f7   :  { %701 = vmatpush1.msra.mxu0 %v4476_v20  ;;  %3796 = vmatpush3.msra.mxu1 %v4489_v22 }
 0x3f8   :  { %702 = vmatprep.subr.mxu0 %v4483_v21  ;;  %3797 = vmatprep.subr.mxu1 %v6398_v0 }
 0x3f9   :  { %703 = vmatpush1.msra.mxu0 %v4495_v23  ;;  %3798 = vmatpush3.msra.mxu1 %v4508_v25 }
 0x3fa   :  { %704 = vmatprep.subr.mxu0 %v4502_v24  ;;  %3799 = vmatprep.subr.mxu1 %v6398_v0 }
 0x3fb   :  { %705 = vmatpush1.msra.mxu0 %v4514_v26  ;;  %3800 = vmatpush3.msra.mxu1 %v4527_v28 }
 0x3fc   :  { %706 = vmatprep.subr.mxu0 %v4521_v27  ;;  %3801 = vmatprep.subr.mxu1 %v6398_v0 }
 0x3fd   :  { %707 = vmatpush1.msra.mxu0 %v4533_v29  ;;  %3802 = vmatpush3.msra.mxu1 %v4546_v31 }
 0x3fe   :  { %708 = vmatprep.subr.mxu0 %v4540_v30  ;;  %3803 = vmatprep.subr.mxu1 %v6398_v0 }
 0x3ff   :  { %709 = vmatpush1.msra.mxu0 %v4552_v32  ;;  %3804 = vmatpush3.msra.mxu1 %v4565_v34 }
 0x400   :  { %710 = vmatprep.subr.mxu0 %v4559_v33  ;;  %3805 = vmatprep.subr.mxu1 %v6398_v0 }
 0x401   :  { %711 = vmatpush1.msra.mxu0 %v4571_v35  ;;  %3806 = vmatpush3.msra.mxu1 %v4584_v37 }
 0x402   :  { %712 = vmatprep.subr.mxu0 %v4578_v36  ;;  %3807 = vmatprep.subr.mxu1 %v6398_v0 }
 0x403   :  { %713 = vmatpush1.msra.mxu0 %v4590_v38  ;;  %3808 = vmatpush3.msra.mxu1 %v4603_v40 }
 0x404   :  { %714 = vmatprep.subr.mxu0 %v4597_v39  ;;  %3809 = vmatprep.subr.mxu1 %v6398_v0 }
 0x405   :  { %715 = vmatpush1.msra.mxu0 %v4609_v41  ;;  %3810 = vmatpush3.msra.mxu1 %v4622_v43 }
 0x406   :  { %716 = vmatprep.subr.mxu0 %v4616_v42  ;;  %3811 = vmatprep.subr.mxu1 %v6398_v0 }
 0x407   :  { %717 = vmatpush1.msra.mxu0 %v4628_v44  ;;  %3812 = vmatpush3.msra.mxu1 %v4641_v46 }
 0x408   :  { %718 = vmatprep.subr.mxu0 %v4635_v45  ;;  %3813 = vmatprep.subr.mxu1 %v6398_v0 }
 0x409   :  { %719 = vmatpush1.msra.mxu0 %v6404_v54  ;;  %752 = vmatprep.mubr.f32.mxu0 %v6398_v0 }
 0x40a   :  { %3814 = vmatpush3.msra.mxu1 %v6405_v56  ;;  %3815 = vmatprep.mubr.msk.f32.mxu1 %vm4280_vm0, %v6398_v0 }
 0x40b   :  { %865 = vmatprep.subr.mxu0 %v6406_v53  ;;  %3818 = vmatprep.subr.mxu1 %v6398_v0 }
 0x4aa   :  { %v577_v63 = vpop.f32.mrf.mxu0  ;;  %v648_v62 = vpop.f32.mrf.mxu1 }
 0x4ab   :  { %v649_v58 = vadd.f32 %v648_v62, %v6407_v61  ;;  %v578_v57 = vadd.f32 %v577_v63, %v6402_v3 }
 0x4ac   :  { %v579_v51 = vpop.f32.mrf.mxu0  ;;  %v3782_v52 = vpop.f32.mrf.mxu1 }
 0x4ad   :  { %v580_v55 = vadd.f32 %v579_v51, %v6408_v59  ;;  %664 = vrot.lane.b32.xlu1 %v649_v58, %s4281_s23 }
 0x4af   :  { %653 = vrot.lane.b32.xlu0 %v580_v55, %s4281_s23 }
 0x51f   :  { %v665_v54 = vpop.permute.xlu1 %664 }
 0x520   :  { %v667_v58 = vadd.f32 %v665_v54, %v578_v57 }
 0x521   :  { %v654_v50 = vpop.permute.xlu0 %653 }
 0x522   :  { %v656_v49 = vadd.f32 %v654_v50, %v578_v57  ;;  %v3453_v51 = vmul.f32 -1.442695, %v667_v58  ;;  %v5076_v57 = vld [vmem:[%s6309_s2 + $0x120] sm:$0xff]  ;;  %v5095_v58 = vld [vmem:[%s6309_s2 + $0x108] sm:$0xff] }
 0x524   :  { %v3452_v47 = vmul.f32 -1.442695, %v656_v49 }
 0x526   :  { %4093 = vpow2.f32 %v3452_v47 }
 0x533   :  { %v4094_v60 = vpop.eup %4093 }
 0x534   :  { %v660_v53 = vadd.f32 1.0, %v4094_v60 }
 0x536   :  { %4095 = vrcp.f32 %v660_v53 }
 0x543   :  { %v4096_v56 = vpop.eup %4095 }
 0x544   :  { %v674_v62 = vmul.f32 %v4096_v56, %v665_v54  ;;  %v3454_v56 = vld [vmem:[%s6310_s0 + $0x18] sm:$0xff] }
 0x546   :  { %v675_v61 = vadd.f32 %v674_v62, %v580_v55  ;;  %v5069_v55 = vld [vmem:[%s6309_s2 + $0x128] sm:$0xff]  ;;  %v5082_v62 = vld [vmem:[%s6309_s2 + $0x130] sm:$0xff] }
 0x548   :  { %4097 = vtanh.f32 %v675_v61 }
 0x549   :  { %4099 = vpow2.f32 %v3453_v51  ;;  %v5101_v51 = vld [vmem:[%s6309_s2 + $0x118] sm:$0xff] }
 0x555   :  { %v4098_v52 = vpop.eup %4097 }
 0x556   :  { %679 = vrot.lane.b32.xlu0 %v4098_v52, %s4281_s23  ;;  %v4100_v59 = vpop.eup %4099  ;;  %v5088_v52 = vld [vmem:[%s6309_s2 + $0x110] sm:$0xff] }
 0x557   :  { %v671_v63 = vadd.f32 1.0, %v4100_v59  ;;  %v5063_v59 = vld [vmem:[%s6309_s2 + $0x148] sm:$0xff] }
 0x559   :  { %4101 = vrcp.f32 %v671_v63  ;;  %v5107_v63 = vld [vmem:[%s6309_s2 + $0xf8] sm:$0xff] }
 0x566   :  { %v4102_v50 = vpop.eup %4101 }
 0x567   :  { %v677_v49 = vsub.f32 1.0, %v4102_v50  ;;  %v683_v60 = vmul.f32 %v4102_v50, %v4850_v48  ;;  %v5114_v50 = vld [vmem:[%s6309_s2 + $0xf0] sm:$0xff] }
 0x5c8   :  { %v680_v47 = vpop.permute.xlu0 %679 }
 0x5c9   :  { %v682_v53 = vmul.f32 %v680_v47, %v677_v49  ;;  %v5120_v49 = vld [vmem:[%s6309_s2 + $0x100] sm:$0xff] }
 0x5ca   :  { %v5126_v47 = vld [vmem:[%s6309_s2 + $0xe0] sm:$0xff] }
 0x5cb   :  { %v4931_v61 = vadd.f32 %v683_v60, %v682_v53  ;;  %v5133_v60 = vld [vmem:[%s6309_s2 + $0xd8] sm:$0xff]  ;;  %v5139_v53 = vld [vmem:[%s6309_s2 + $0xe8] sm:$0xff] }
 0x5cd   :  { %6409 = vst [vmem:[#allocation14_spill] sm:$0xff] %v4931_v61  ;;  %v687_v54 = vsel %vm139_vm1, %v3454_v56, %v4931_v61  ;;  %v5145_v56 = vld [vmem:[%s6309_s2 + $0xc8] sm:$0xff] }
 0x5ce   :  { %753 = vmatmul.mubr.f32.vlgmr.msra.gmra.mxu0 %v687_v54  ;;  %3816 = vmatmul.mubr.f32.vlgmr.msra.gmra.mxu1 %v687_v54  ;;  %v5152_v54 = vld [vmem:[%s6309_s2 + $0xc0] sm:$0xff] }
 0x5cf   :  { %866 = vmatpush1.msra.mxu0 %v4363_v1  ;;  %3819 = vmatpush3.msra.mxu1 %v4389_v6  ;;  %v6410_v1 = vld [vmem:[#allocation4_spill] sm:$0xff] }
 0x5d0   :  { %867 = vmatprep.subr.mxu0 %v4368_v2  ;;  %3820 = vmatprep.subr.mxu1 %v6398_v0  ;;  %v6411_v2 = vld [vmem:[#allocation5_spill] sm:$0xff] }
 0x5d1   :  { %868 = vmatpush1.msra.mxu0 %v4376_v4  ;;  %3821 = vmatpush3.msra.mxu1 %v4401_v8  ;;  %v6412_v4 = vld [vmem:[#allocation3_spill] sm:$0xff] }
 0x5d2   :  { %869 = vmatprep.subr.mxu0 %v4384_v5  ;;  %3822 = vmatprep.subr.mxu1 %v6398_v0 }
 0x5d3   :  { %870 = vmatpush1.msra.mxu0 %v4395_v7  ;;  %3823 = vmatpush3.msra.mxu1 %v4413_v10  ;;  %v6413_v7 = vld [vmem:[#allocation10_spill] sm:$0xff] }
 0x5d4   :  { %871 = vmatprep.subr.mxu0 %v4407_v9  ;;  %3824 = vmatprep.subr.mxu1 %v6398_v0 }
 0x5d5   :  { %872 = vmatpush1.msra.mxu0 %v4419_v11  ;;  %3825 = vmatpush3.msra.mxu1 %v4432_v13  ;;  %v6414_v11 = vld [vmem:[#allocation9_spill] sm:$0xff] }
 0x5d6   :  { %873 = vmatprep.subr.mxu0 %v4426_v12  ;;  %3826 = vmatprep.subr.mxu1 %v6398_v0 }
 0x5d7   :  { %874 = vmatpush1.msra.mxu0 %v4438_v14  ;;  %3827 = vmatpush3.msra.mxu1 %v4451_v16 }
 0x5d8   :  { %875 = vmatprep.subr.mxu0 %v4445_v15  ;;  %3828 = vmatprep.subr.mxu1 %v6398_v0 }
 0x5d9   :  { %876 = vmatpush1.msra.mxu0 %v4457_v17  ;;  %3829 = vmatpush3.msra.mxu1 %v4470_v19 }
 0x5da   :  { %877 = vmatprep.subr.mxu0 %v4464_v18  ;;  %3830 = vmatprep.subr.mxu1 %v6398_v0 }
 0x5db   :  { %878 = vmatpush1.msra.mxu0 %v4476_v20  ;;  %3831 = vmatpush3.msra.mxu1 %v4489_v22 }
 0x5dc   :  { %879 = vmatprep.subr.mxu0 %v4483_v21  ;;  %3832 = vmatprep.subr.mxu1 %v6398_v0 }
 0x5dd   :  { %880 = vmatpush1.msra.mxu0 %v4495_v23  ;;  %3833 = vmatpush3.msra.mxu1 %v4508_v25 }
 0x5de   :  { %881 = vmatprep.subr.mxu0 %v4502_v24  ;;  %3834 = vmatprep.subr.mxu1 %v6398_v0 }
 0x5df   :  { %882 = vmatpush1.msra.mxu0 %v4514_v26  ;;  %3835 = vmatpush3.msra.mxu1 %v4527_v28 }
 0x5e0   :  { %883 = vmatprep.subr.mxu0 %v4521_v27  ;;  %3836 = vmatprep.subr.mxu1 %v6398_v0 }
 0x5e1   :  { %884 = vmatpush1.msra.mxu0 %v4533_v29  ;;  %3837 = vmatpush3.msra.mxu1 %v4546_v31 }
 0x5e2   :  { %885 = vmatprep.subr.mxu0 %v4540_v30  ;;  %3838 = vmatprep.subr.mxu1 %v6398_v0 }
 0x5e3   :  { %886 = vmatpush1.msra.mxu0 %v4552_v32  ;;  %3839 = vmatpush3.msra.mxu1 %v4565_v34 }
 0x5e4   :  { %887 = vmatprep.subr.mxu0 %v4559_v33  ;;  %3840 = vmatprep.subr.mxu1 %v6398_v0  ;;  %v3457_v33 = vld [vmem:[%s6310_s0 + $0x20] sm:$0xff] }
 0x5e5   :  { %888 = vmatpush1.msra.mxu0 %v4571_v35  ;;  %3841 = vmatpush3.msra.mxu1 %v4584_v37  ;;  %v5025_v37 = vld [vmem:[%s6309_s2 + $0x178] sm:$0xff] }
 0x5e6   :  { %889 = vmatprep.subr.mxu0 %v4578_v36  ;;  %3842 = vmatprep.subr.mxu1 %v6398_v0  ;;  %v5019_v36 = vld [vmem:[%s6309_s2 + $0x168] sm:$0xff] }
 0x5e7   :  { %890 = vmatpush1.msra.mxu0 %v4590_v38  ;;  %3843 = vmatpush3.msra.mxu1 %v4603_v40  ;;  %v5031_v38 = vld [vmem:[%s6309_s2 + $0x158] sm:$0xff]  ;;  %v5044_v40 = vld [vmem:[%s6309_s2 + $0x160] sm:$0xff] }
 0x5e8   :  { %891 = vmatprep.subr.mxu0 %v4597_v39  ;;  %3844 = vmatprep.subr.mxu1 %v6398_v0  ;;  %v5038_v39 = vld [vmem:[%s6309_s2 + $0x150] sm:$0xff] }
 0x5e9   :  { %892 = vmatpush1.msra.mxu0 %v4609_v41  ;;  %3845 = vmatpush3.msra.mxu1 %v4622_v43  ;;  %v5050_v41 = vld [vmem:[%s6309_s2 + $0x140] sm:$0xff] }
 0x5ea   :  { %893 = vmatprep.subr.mxu0 %v4616_v42  ;;  %3846 = vmatprep.subr.mxu1 %v6398_v0  ;;  %v5057_v42 = vld [vmem:[%s6309_s2 + $0x138] sm:$0xff] }
 0x5eb   :  { %894 = vmatpush1.msra.mxu0 %v4628_v44  ;;  %3847 = vmatpush3.msra.mxu1 %v4641_v46 }
 0x5ec   :  { %895 = vmatprep.subr.mxu0 %v4635_v45  ;;  %3848 = vmatprep.subr.mxu1 %v6398_v0 }
 0x5ed   :  { %896 = vmatpush1.msra.mxu0 %v6410_v1  ;;  %929 = vmatprep.mubr.f32.mxu0 %v6398_v0 }
 0x5ee   :  { %3849 = vmatpush3.msra.mxu1 %v6411_v2  ;;  %3850 = vmatprep.mubr.msk.f32.mxu1 %vm4280_vm0, %v6398_v0 }
 0x5ef   :  { %1042 = vmatprep.subr.mxu0 %v6412_v4  ;;  %3853 = vmatprep.subr.mxu1 %v6398_v0  ;;  %v5158_v4 = vld [vmem:[%s6309_s2 + $0xd0] sm:$0xff] }
 0x68e   :  { %v754_v5 = vpop.f32.mrf.mxu0  ;;  %v825_v6 = vpop.f32.mrf.mxu1 }
 0x68f   :  { %v826_v8 = vadd.f32 %v825_v6, %v6413_v7  ;;  %v755_v13 = vadd.f32 %v754_v5, %v6402_v3  ;;  %v5164_v5 = vld [vmem:[%s6309_s2 + $0xb0] sm:$0xff]  ;;  %v5171_v6 = vld [vmem:[%s6309_s2 + $0xa8] sm:$0xff] }
 0x690   :  { %v756_v9 = vpop.f32.mrf.mxu0  ;;  %v3817_v10 = vpop.f32.mrf.mxu1 }
 0x691   :  { %v757_v12 = vadd.f32 %v756_v9, %v6414_v11  ;;  %841 = vrot.lane.b32.xlu0 %v826_v8, %s4281_s23  ;;  %v5177_v8 = vld [vmem:[%s6309_s2 + $0xb8] sm:$0xff]  ;;  %v5190_v10 = vld [vmem:[%s6309_s2 + $0x90] sm:$0xff] }
 0x692   :  { %v5183_v9 = vld [vmem:[%s6309_s2 + $0x98] sm:$0xff] }
 0x693   :  { %830 = vrot.lane.b32.xlu1 %v757_v12, %s4281_s23 }
 0x703   :  { %v842_v20 = vpop.permute.xlu0 %841 }
 0x704   :  { %v844_v24 = vadd.f32 %v842_v20, %v755_v13 }
 0x705   :  { %v831_v14 = vpop.permute.xlu1 %830 }
 0x706   :  { %v833_v15 = vadd.f32 %v831_v14, %v755_v13  ;;  %v3456_v25 = vmul.f32 -1.442695, %v844_v24  ;;  %v5202_v13 = vld [vmem:[%s6309_s2 + $0x80] sm:$0xff]  ;;  %v5209_v14 = vld [vmem:[%s6309_s2 + $0x78] sm:$0xff] }
 0x707   :  { %v5273_v24 = vld [vmem:[%s6309_s2 + $0x20] sm:$0xff] }
 0x708   :  { %v3455_v16 = vmul.f32 -1.442695, %v833_v15  ;;  %v5215_v15 = vld [vmem:[%s6309_s2 + $0x88] sm:$0xff] }
 0x70a   :  { %4103 = vpow2.f32 %v3455_v16  ;;  %v5221_v16 = vld [vmem:[%s6309_s2 + $0x68] sm:$0xff] }
 0x717   :  { %v4104_v17 = vpop.eup %4103 }
 0x718   :  { %v837_v18 = vadd.f32 1.0, %v4104_v17  ;;  %v5228_v17 = vld [vmem:[%s6309_s2 + $0x60] sm:$0xff] }
 0x71a   :  { %4105 = vrcp.f32 %v837_v18  ;;  %v5234_v18 = vld [vmem:[%s6309_s2 + $0x70] sm:$0xff] }
 0x727   :  { %v4106_v19 = vpop.eup %4105 }
 0x728   :  { %v851_v21 = vmul.f32 %v4106_v19, %v842_v20  ;;  %v5240_v19 = vld [vmem:[%s6309_s2 + $0x50] sm:$0xff]  ;;  %v5247_v20 = vld [vmem:[%s6309_s2 + $0x48] sm:$0xff] }
 0x72a   :  { %v852_v22 = vadd.f32 %v851_v21, %v757_v12  ;;  %v5196_v12 = vld [vmem:[%s6309_s2 + $0xa0] sm:$0xff]  ;;  %v5253_v21 = vld [vmem:[%s6309_s2 + $0x58] sm:$0xff] }
 0x72c   :  { %4107 = vtanh.f32 %v852_v22  ;;  %v5259_v22 = vld [vmem:[%s6309_s2 + $0x38] sm:$0xff] }
 0x72d   :  { %4109 = vpow2.f32 %v3456_v25 }
 0x739   :  { %v4108_v23 = vpop.eup %4107 }
 0x73a   :  { %856 = vrot.lane.b32.xlu1 %v4108_v23, %s4281_s23  ;;  %v4110_v26 = vpop.eup %4109  ;;  %v5266_v23 = vld [vmem:[%s6309_s2 + $0x30] sm:$0xff] }
 0x73b   :  { %v848_v27 = vadd.f32 1.0, %v4110_v26 }
 0x73d   :  { %4111 = vrcp.f32 %v848_v27 }
 0x74a   :  { %v4112_v28 = vpop.eup %4111 }
 0x74b   :  { %v854_v29 = vsub.f32 1.0, %v4112_v28  ;;  %v860_v31 = vmul.f32 %v4112_v28, %v4931_v61 }
 0x7ac   :  { %v857_v30 = vpop.permute.xlu1 %856 }
 0x7ad   :  { %v859_v32 = vmul.f32 %v857_v30, %v854_v29 }
 0x7af   :  { %v5012_v34 = vadd.f32 %v860_v31, %v859_v32 }
 0x7b1   :  { %6415 = vst [vmem:[#allocation4_spill] sm:$0xff] %v5012_v34  ;;  %v864_v35 = vsel %vm139_vm1, %v3457_v33, %v5012_v34 }
 0x7b2   :  { %930 = vmatmul.mubr.f32.vlgmr.msra.gmra.mxu0 %v864_v35  ;;  %3851 = vmatmul.mubr.f32.vlgmr.msra.gmra.mxu1 %v864_v35 }
 0x7b3   :  { %1043 = vmatpush1.msra.mxu0 %v5019_v36  ;;  %3854 = vmatpush3.msra.mxu1 %v5025_v37 }
 0x7b4   :  { %1044 = vmatprep.subr.mxu0 %v5031_v38  ;;  %3855 = vmatprep.subr.mxu1 %v6398_v0 }
 0x7b5   :  { %1045 = vmatpush1.msra.mxu0 %v5038_v39  ;;  %3856 = vmatpush3.msra.mxu1 %v5044_v40 }
 0x7b6   :  { %1046 = vmatprep.subr.mxu0 %v5050_v41  ;;  %3857 = vmatprep.subr.mxu1 %v6398_v0 }
 0x7b7   :  { %1047 = vmatpush1.msra.mxu0 %v5057_v42  ;;  %3858 = vmatpush3.msra.mxu1 %v5063_v59 }
 0x7b8   :  { %1048 = vmatprep.subr.mxu0 %v5069_v55  ;;  %3859 = vmatprep.subr.mxu1 %v6398_v0 }
 0x7b9   :  { %1049 = vmatpush1.msra.mxu0 %v5076_v57  ;;  %3860 = vmatpush3.msra.mxu1 %v5082_v62 }
 0x7ba   :  { %1050 = vmatprep.subr.mxu0 %v5088_v52  ;;  %3861 = vmatprep.subr.mxu1 %v6398_v0 }
 0x7bb   :  { %1051 = vmatpush1.msra.mxu0 %v5095_v58  ;;  %3862 = vmatpush3.msra.mxu1 %v5101_v51 }
 0x7bc   :  { %1052 = vmatprep.subr.mxu0 %v5107_v63  ;;  %3863 = vmatprep.subr.mxu1 %v6398_v0 }
 0x7bd   :  { %1053 = vmatpush1.msra.mxu0 %v5114_v50  ;;  %3864 = vmatpush3.msra.mxu1 %v5120_v49 }
 0x7be   :  { %1054 = vmatprep.subr.mxu0 %v5126_v47  ;;  %3865 = vmatprep.subr.mxu1 %v6398_v0 }
 0x7bf   :  { %1055 = vmatpush1.msra.mxu0 %v5133_v60  ;;  %3866 = vmatpush3.msra.mxu1 %v5139_v53 }
 0x7c0   :  { %1056 = vmatprep.subr.mxu0 %v5145_v56  ;;  %3867 = vmatprep.subr.mxu1 %v6398_v0 }
 0x7c1   :  { %1057 = vmatpush1.msra.mxu0 %v5152_v54  ;;  %3868 = vmatpush3.msra.mxu1 %v5158_v4 }
 0x7c2   :  { %1058 = vmatprep.subr.mxu0 %v5164_v5  ;;  %3869 = vmatprep.subr.mxu1 %v6398_v0 }
 0x7c3   :  { %1059 = vmatpush1.msra.mxu0 %v5171_v6  ;;  %3870 = vmatpush3.msra.mxu1 %v5177_v8 }
 0x7c4   :  { %1060 = vmatprep.subr.mxu0 %v5183_v9  ;;  %3871 = vmatprep.subr.mxu1 %v6398_v0 }
 0x7c5   :  { %1061 = vmatpush1.msra.mxu0 %v5190_v10  ;;  %3872 = vmatpush3.msra.mxu1 %v5196_v12 }
 0x7c6   :  { %1062 = vmatprep.subr.mxu0 %v5202_v13  ;;  %3873 = vmatprep.subr.mxu1 %v6398_v0 }
 0x7c7   :  { %1063 = vmatpush1.msra.mxu0 %v5209_v14  ;;  %3874 = vmatpush3.msra.mxu1 %v5215_v15 }
 0x7c8   :  { %1064 = vmatprep.subr.mxu0 %v5221_v16  ;;  %3875 = vmatprep.subr.mxu1 %v6398_v0 }
 0x7c9   :  { %1065 = vmatpush1.msra.mxu0 %v5228_v17  ;;  %3876 = vmatpush3.msra.mxu1 %v5234_v18 }
 0x7ca   :  { %1066 = vmatprep.subr.mxu0 %v5240_v19  ;;  %3877 = vmatprep.subr.mxu1 %v6398_v0 }
 0x7cb   :  { %1067 = vmatpush1.msra.mxu0 %v5247_v20  ;;  %3878 = vmatpush3.msra.mxu1 %v5253_v21 }
 0x7cc   :  { %1068 = vmatprep.subr.mxu0 %v5259_v22  ;;  %3879 = vmatprep.subr.mxu1 %v6398_v0 }
 0x7cd   :  { %1069 = vmatpush1.msra.mxu0 %v5266_v23  ;;  %3880 = vmatpush3.msra.mxu1 %v4622_v43  ;;  %v5289_v43 = vld [vmem:[%s6309_s2 + $0x170] sm:$0xff] }
 0x7ce   :  { %1070 = vmatprep.subr.mxu0 %v5273_v24  ;;  %3881 = vmatprep.subr.mxu1 %v6398_v0 }
 0x7cf   :  { %1071 = vmatpush1.msra.mxu0 %v4628_v44  ;;  %3882 = vmatpush3.msra.mxu1 %v4641_v46 }
 0x7d0   :  { %1072 = vmatprep.subr.mxu0 %v4635_v45  ;;  %3883 = vmatprep.subr.mxu1 %v6398_v0 }
 0x7d1   :  { %1073 = vmatpush1.msra.mxu0 %v6410_v1  ;;  %1106 = vmatprep.mubr.f32.mxu0 %v6398_v0 }
 0x7d2   :  { %3884 = vmatpush3.msra.mxu1 %v6411_v2  ;;  %3885 = vmatprep.mubr.msk.f32.mxu1 %vm4280_vm0, %v6398_v0 }
 0x7d3   :  { %1219 = vmatprep.subr.mxu0 %v5289_v43  ;;  %3888 = vmatprep.subr.mxu1 %v6398_v0 }
 0x872   :  { %v931_v44 = vpop.f32.mrf.mxu0  ;;  %v1002_v45 = vpop.f32.mrf.mxu1 }
 0x873   :  { %v1003_v46 = vadd.f32 %v1002_v45, %v6413_v7  ;;  %v932_v26 = vadd.f32 %v931_v44, %v6402_v3 }
 0x874   :  { %v933_v1 = vpop.f32.mrf.mxu0  ;;  %v3852_v25 = vpop.f32.mrf.mxu1 }
 0x875   :  { %v934_v2 = vadd.f32 %v933_v1, %v6414_v11  ;;  %1018 = vrot.lane.b32.xlu1 %v1003_v46, %s4281_s23 }
 0x877   :  { %1007 = vrot.lane.b32.xlu0 %v934_v2, %s4281_s23 }
 0x8e7   :  { %v1019_v33 = vpop.permute.xlu1 %1018 }
 0x8e8   :  { %v1021_v46 = vadd.f32 %v1019_v33, %v932_v26 }
 0x8e9   :  { %v1008_v27 = vpop.permute.xlu0 %1007 }
 0x8ea   :  { %v1010_v28 = vadd.f32 %v1008_v27, %v932_v26  ;;  %v3459_v1 = vmul.f32 -1.442695, %v1021_v46  ;;  %v5397_v46 = vld [vmem:[%s6309_s2 + $0x10] sm:$0xff] }
 0x8eb   :  { %6417 = vst [vmem:[#allocation3_spill] sm:$0xff] %v5397_v46 }
 0x8ec   :  { %v3458_v29 = vmul.f32 -1.442695, %v1010_v28 }
 0x8ee   :  { %4113 = vpow2.f32 %v3458_v29 }
 0x8fb   :  { %v4114_v30 = vpop.eup %4113 }
 0x8fc   :  { %v1014_v31 = vadd.f32 1.0, %v4114_v30 }
 0x8fe   :  { %4115 = vrcp.f32 %v1014_v31 }
 0x90b   :  { %v4116_v32 = vpop.eup %4115 }
 0x90c   :  { %v1028_v35 = vmul.f32 %v4116_v32, %v1019_v33  ;;  %v5371_v33 = vld [vmem:[%s6309_s2 + $0x18] sm:$0xff] }
 0x90e   :  { %v1029_v45 = vadd.f32 %v1028_v35, %v934_v2  ;;  %v3460_v2 = vld [vmem:[%s6310_s0 + $0x28] sm:$0xff] }
 0x90f   :  { %v5377_v35 = vld [vmem:[%s6309_s2 + $0x28] sm:$0xff] }
 0x910   :  { %4117 = vtanh.f32 %v1029_v45  ;;  %v5383_v45 = vld [vmem:[%s6309_s2 + $0x8] sm:$0xff] }
 0x911   :  { %4119 = vpow2.f32 %v3459_v1 }
 0x91d   :  { %v4118_v25 = vpop.eup %4117 }
 0x91e   :  { %1033 = vrot.lane.b32.xlu0 %v4118_v25, %s4281_s23  ;;  %v4120_v61 = vpop.eup %4119  ;;  %v5390_v25 = vld [vmem:[%s6309_s2] sm:$0xff] }
 0x91f   :  { %v1025_v44 = vadd.f32 1.0, %v4120_v61  ;;  %v5363_v61 = vld [vmem:[%s6309_s2 + $0x40] sm:$0xff]  ;;  %6416 = vst [vmem:[#allocation5_spill] sm:$0xff] %v5390_v25 }
 0x921   :  { %4121 = vrcp.f32 %v1025_v44 }
 0x92e   :  { %v4122_v27 = vpop.eup %4121 }
 0x92f   :  { %v1031_v28 = vsub.f32 1.0, %v4122_v27  ;;  %v1037_v30 = vmul.f32 %v4122_v27, %v5012_v34 }
 0x990   :  { %v1034_v29 = vpop.permute.xlu0 %1033 }
 0x991   :  { %v1036_v31 = vmul.f32 %v1034_v29, %v1031_v28 }
 0x993   :  { %v5303_v32 = vadd.f32 %v1037_v30, %v1036_v31 }
 0x995   :  { %v1041_v26 = vsel %vm139_vm1, %v3460_v2, %v5303_v32 }
 0x996   :  { %1107 = vmatmul.mubr.f32.vlgmr.msra.gmra.mxu0 %v1041_v26  ;;  %3886 = vmatmul.mubr.f32.vlgmr.msra.gmra.mxu1 %v1041_v26 }
 0x997   :  { %1220 = vmatpush1.msra.mxu0 %v5019_v36  ;;  %3889 = vmatpush3.msra.mxu1 %v5025_v37 }
 0x998   :  { %1221 = vmatprep.subr.mxu0 %v5031_v38  ;;  %3890 = vmatprep.subr.mxu1 %v6398_v0 }
 0x999   :  { %1222 = vmatpush1.msra.mxu0 %v5038_v39  ;;  %3891 = vmatpush3.msra.mxu1 %v5044_v40 }
 0x99a   :  { %1223 = vmatprep.subr.mxu0 %v5050_v41  ;;  %3892 = vmatprep.subr.mxu1 %v6398_v0 }
 0x99b   :  { %1224 = vmatpush1.msra.mxu0 %v5057_v42  ;;  %3893 = vmatpush3.msra.mxu1 %v5063_v59 }
 0x99c   :  { %1225 = vmatprep.subr.mxu0 %v5069_v55  ;;  %3894 = vmatprep.subr.mxu1 %v6398_v0 }
 0x99d   :  { %1226 = vmatpush1.msra.mxu0 %v5076_v57  ;;  %3895 = vmatpush3.msra.mxu1 %v5082_v62 }
 0x99e   :  { %1227 = vmatprep.subr.mxu0 %v5088_v52  ;;  %3896 = vmatprep.subr.mxu1 %v6398_v0 }
 0x99f   :  { %1228 = vmatpush1.msra.mxu0 %v5095_v58  ;;  %3897 = vmatpush3.msra.mxu1 %v5101_v51 }
 0x9a0   :  { %1229 = vmatprep.subr.mxu0 %v5107_v63  ;;  %3898 = vmatprep.subr.mxu1 %v6398_v0 }
 0x9a1   :  { %1230 = vmatpush1.msra.mxu0 %v5114_v50  ;;  %3899 = vmatpush3.msra.mxu1 %v5120_v49 }
 0x9a2   :  { %1231 = vmatprep.subr.mxu0 %v5126_v47  ;;  %3900 = vmatprep.subr.mxu1 %v6398_v0 }
 0x9a3   :  { %1232 = vmatpush1.msra.mxu0 %v5133_v60  ;;  %3901 = vmatpush3.msra.mxu1 %v5139_v53 }
 0x9a4   :  { %1233 = vmatprep.subr.mxu0 %v5145_v56  ;;  %3902 = vmatprep.subr.mxu1 %v6398_v0 }
 0x9a5   :  { %1234 = vmatpush1.msra.mxu0 %v5152_v54  ;;  %3903 = vmatpush3.msra.mxu1 %v5158_v4 }
 0x9a6   :  { %1235 = vmatprep.subr.mxu0 %v5164_v5  ;;  %3904 = vmatprep.subr.mxu1 %v6398_v0 }
 0x9a7   :  { %1236 = vmatpush1.msra.mxu0 %v5171_v6  ;;  %3905 = vmatpush3.msra.mxu1 %v5177_v8 }
 0x9a8   :  { %1237 = vmatprep.subr.mxu0 %v5183_v9  ;;  %3906 = vmatprep.subr.mxu1 %v6398_v0 }
 0x9a9   :  { %1238 = vmatpush1.msra.mxu0 %v5190_v10  ;;  %3907 = vmatpush3.msra.mxu1 %v5196_v12 }
 0x9aa   :  { %1239 = vmatprep.subr.mxu0 %v5202_v13  ;;  %3908 = vmatprep.subr.mxu1 %v6398_v0 }
 0x9ab   :  { %1240 = vmatpush1.msra.mxu0 %v5209_v14  ;;  %3909 = vmatpush3.msra.mxu1 %v5215_v15 }
 0x9ac   :  { %1241 = vmatprep.subr.mxu0 %v5221_v16  ;;  %3910 = vmatprep.subr.mxu1 %v6398_v0 }
 0x9ad   :  { %1242 = vmatpush1.msra.mxu0 %v5228_v17  ;;  %3911 = vmatpush3.msra.mxu1 %v5234_v18 }
 0x9ae   :  { %1243 = vmatprep.subr.mxu0 %v5240_v19  ;;  %3912 = vmatprep.subr.mxu1 %v6398_v0 }
 0x9af   :  { %1244 = vmatpush1.msra.mxu0 %v5247_v20  ;;  %3913 = vmatpush3.msra.mxu1 %v5253_v21 }
 0x9b0   :  { %1245 = vmatprep.subr.mxu0 %v5259_v22  ;;  %3914 = vmatprep.subr.mxu1 %v6398_v0 }
 0x9b1   :  { %1246 = vmatpush1.msra.mxu0 %v5266_v23  ;;  %3915 = vmatpush3.msra.mxu1 %v5363_v61 }
 0x9b2   :  { %1247 = vmatprep.subr.mxu0 %v5273_v24  ;;  %3916 = vmatprep.subr.mxu1 %v6398_v0 }
 0x9b3   :  { %1248 = vmatpush1.msra.mxu0 %v5371_v33  ;;  %3917 = vmatpush3.msra.mxu1 %v5377_v35 }
 0x9b4   :  { %1249 = vmatprep.subr.mxu0 %v5383_v45  ;;  %3918 = vmatprep.subr.mxu1 %v6398_v0 }
 0x9b5   :  { %1250 = vmatpush1.msra.mxu0 %v5390_v25  ;;  %1283 = vmatprep.mubr.f32.mxu0 %v6398_v0 }
 0x9b6   :  { %3919 = vmatpush3.msra.mxu1 %v5397_v46  ;;  %3920 = vmatprep.mubr.msk.f32.mxu1 %vm4280_vm0, %v6398_v0 }
 0x9b7   :  { %1396 = vmatprep.subr.mxu0 %v5289_v43  ;;  %3923 = vmatprep.subr.mxu1 %v6398_v0 }
 0xa56   :  { %v1108_v1 = vpop.f32.mrf.mxu0  ;;  %v1179_v44 = vpop.f32.mrf.mxu1 }
 0xa57   :  { %v1180_v27 = vadd.f32 %v1179_v44, %v6413_v7  ;;  %v1109_v31 = vadd.f32 %v1108_v1, %v6402_v3 }
 0xa58   :  { %v1110_v28 = vpop.f32.mrf.mxu0  ;;  %v3887_v29 = vpop.f32.mrf.mxu1 }
 0xa59   :  { %v1111_v30 = vadd.f32 %v1110_v28, %v6414_v11  ;;  %1195 = vrot.lane.b32.xlu0 %v1180_v27, %s4281_s23 }
 0xa5b   :  { %1184 = vrot.lane.b32.xlu1 %v1111_v30, %s4281_s23 }
 0xacb   :  { %v1196_v25 = vpop.permute.xlu0 %1195 }
 0xacc   :  { %v1198_v27 = vadd.f32 %v1196_v25, %v1109_v31 }
 0xacd   :  { %v1185_v2 = vpop.permute.xlu1 %1184 }
 0xace   :  { %v1187_v26 = vadd.f32 %v1185_v2, %v1109_v31  ;;  %v3462_v28 = vmul.f32 -1.442695, %v1198_v27  ;;  %v6422_v27 = vld [vmem:[#allocation13_spill] sm:$0xff] }
 0xad0   :  { %v3461_v34 = vmul.f32 -1.442695, %v1187_v26 }
 0xad2   :  { %4123 = vpow2.f32 %v3461_v34 }
 0xadf   :  { %v4124_v43 = vpop.eup %4123 }
 0xae0   :  { %v1191_v48 = vadd.f32 1.0, %v4124_v43 }
 0xae2   :  { %4125 = vrcp.f32 %v1191_v48 }
 0xaef   :  { %v4126_v46 = vpop.eup %4125 }
 0xaf0   :  { %v1205_v44 = vmul.f32 %v4126_v46, %v1196_v25  ;;  %v3463_v46 = vld [vmem:[%s6310_s0 + $0x30] sm:$0xff] }
 0xaf2   :  { %v1206_v7 = vadd.f32 %v1205_v44, %v1111_v30 }
 0xaf4   :  { %4127 = vtanh.f32 %v1206_v7 }
 0xaf5   :  { %4129 = vpow2.f32 %v3462_v28  ;;  %v1617_v28 = vld [vmem:[%s6312_s4 + $0x30] sm:$0xff] }
 0xb01   :  { %v4128_v29 = vpop.eup %4127 }
 0xb02   :  { %1210 = vrot.lane.b32.xlu1 %v4128_v29, %s4281_s23  ;;  %v4130_v11 = vpop.eup %4129 }
 0xb03   :  { %v1202_v1 = vadd.f32 1.0, %v4130_v11  ;;  %v6418_v11 = vld [vmem:[#allocation5_spill] sm:$0xff] }
 0xb05   :  { %4131 = vrcp.f32 %v1202_v1  ;;  %v1616_v1 = vld [vmem:[%s6312_s4 + $0x28] sm:$0xff] }
 0xb12   :  { %v4132_v2 = vpop.eup %4131 }
 0xb13   :  { %v1208_v26 = vsub.f32 1.0, %v4132_v2  ;;  %v1214_v43 = vmul.f32 %v4132_v2, %v5303_v32  ;;  %v1615_v2 = vld [vmem:[%s6312_s4 + $0x20] sm:$0xff] }
 0xb74   :  { %v1211_v34 = vpop.permute.xlu1 %1210 }
 0xb75   :  { %v1213_v48 = vmul.f32 %v1211_v34, %v1208_v26  ;;  %v1614_v26 = vld [vmem:[%s6312_s4 + $0x18] sm:$0xff]  ;;  %v1613_v34 = vld [vmem:[%s6312_s4 + $0x10] sm:$0xff] }
 0xb77   :  { %v5414_v7 = vadd.f32 %v1214_v43, %v1213_v48  ;;  %v1612_v43 = vld [vmem:[%s6312_s4 + $0x8] sm:$0xff]  ;;  %v1611_v48 = vld [vmem:[%s6312_s4] sm:$0xff] }
 0xb79   :  { %v1218_v25 = vsel %vm139_vm1, %v3463_v46, %v5414_v7 }
 0xb7a   :  { %1284 = vmatmul.mubr.f32.vlgmr.msra.gmra.mxu0 %v1218_v25  ;;  %3921 = vmatmul.mubr.f32.vlgmr.msra.gmra.mxu1 %v1218_v25 }
 0xb7b   :  { %1397 = vmatpush1.msra.mxu0 %v5019_v36  ;;  %3924 = vmatpush3.msra.mxu1 %v5025_v37  ;;  %v6419_v36 = vld [vmem:[#allocation3_spill] sm:$0xff] }
 0xb7c   :  { %1398 = vmatprep.subr.mxu0 %v5031_v38  ;;  %3925 = vmatprep.subr.mxu1 %v6398_v0 }
 0xb7d   :  { %1399 = vmatpush1.msra.mxu0 %v5038_v39  ;;  %3926 = vmatpush3.msra.mxu1 %v5044_v40  ;;  %v6420_v39 = vld [vmem:[#allocation10_spill] sm:$0xff] }
 0xb7e   :  { %1400 = vmatprep.subr.mxu0 %v5050_v41  ;;  %3927 = vmatprep.subr.mxu1 %v6398_v0 }
 0xb7f   :  { %1401 = vmatpush1.msra.mxu0 %v5057_v42  ;;  %3928 = vmatpush3.msra.mxu1 %v5063_v59  ;;  %v6421_v59 = vld [vmem:[#allocation9_spill] sm:$0xff] }
 0xb80   :  { %1402 = vmatprep.subr.mxu0 %v5069_v55  ;;  %3929 = vmatprep.subr.mxu1 %v6398_v0 }
 0xb81   :  { %1403 = vmatpush1.msra.mxu0 %v5076_v57  ;;  %3930 = vmatpush3.msra.mxu1 %v5082_v62 }
 0xb82   :  { %1404 = vmatprep.subr.mxu0 %v5088_v52  ;;  %3931 = vmatprep.subr.mxu1 %v6398_v0 }
 0xb83   :  { %1405 = vmatpush1.msra.mxu0 %v5095_v58  ;;  %3932 = vmatpush3.msra.mxu1 %v5101_v51 }
 0xb84   :  { %1406 = vmatprep.subr.mxu0 %v5107_v63  ;;  %3933 = vmatprep.subr.mxu1 %v6398_v0 }
 0xb85   :  { %1407 = vmatpush1.msra.mxu0 %v5114_v50  ;;  %3934 = vmatpush3.msra.mxu1 %v5120_v49 }
 0xb86   :  { %1408 = vmatprep.subr.mxu0 %v5126_v47  ;;  %3935 = vmatprep.subr.mxu1 %v6398_v0 }
 0xb87   :  { %1409 = vmatpush1.msra.mxu0 %v5133_v60  ;;  %3936 = vmatpush3.msra.mxu1 %v5139_v53 }
 0xb88   :  { %1410 = vmatprep.subr.mxu0 %v5145_v56  ;;  %3937 = vmatprep.subr.mxu1 %v6398_v0 }
 0xb89   :  { %1411 = vmatpush1.msra.mxu0 %v5152_v54  ;;  %3938 = vmatpush3.msra.mxu1 %v5158_v4 }
 0xb8a   :  { %1412 = vmatprep.subr.mxu0 %v5164_v5  ;;  %3939 = vmatprep.subr.mxu1 %v6398_v0 }
 0xb8b   :  { %1413 = vmatpush1.msra.mxu0 %v5171_v6  ;;  %3940 = vmatpush3.msra.mxu1 %v5177_v8 }
 0xb8c   :  { %1414 = vmatprep.subr.mxu0 %v5183_v9  ;;  %3941 = vmatprep.subr.mxu1 %v6398_v0 }
 0xb8d   :  { %1415 = vmatpush1.msra.mxu0 %v5190_v10  ;;  %3942 = vmatpush3.msra.mxu1 %v5196_v12 }
 0xb8e   :  { %1416 = vmatprep.subr.mxu0 %v5202_v13  ;;  %3943 = vmatprep.subr.mxu1 %v6398_v0  ;;  %v3466_v13 = vld [vmem:[%s6310_s0 + $0x38] sm:$0xff] }
 0xb8f   :  { %1417 = vmatpush1.msra.mxu0 %v5209_v14  ;;  %3944 = vmatpush3.msra.mxu1 %v5215_v15 }
 0xb90   :  { %1418 = vmatprep.subr.mxu0 %v5221_v16  ;;  %3945 = vmatprep.subr.mxu1 %v6398_v0 }
 0xb91   :  { %1419 = vmatpush1.msra.mxu0 %v5228_v17  ;;  %3946 = vmatpush3.msra.mxu1 %v5234_v18 }
 0xb92   :  { %1420 = vmatprep.subr.mxu0 %v5240_v19  ;;  %3947 = vmatprep.subr.mxu1 %v6398_v0 }
 0xb93   :  { %1421 = vmatpush1.msra.mxu0 %v5247_v20  ;;  %3948 = vmatpush3.msra.mxu1 %v5253_v21 }
 0xb94   :  { %1422 = vmatprep.subr.mxu0 %v5259_v22  ;;  %3949 = vmatprep.subr.mxu1 %v6398_v0 }
 0xb95   :  { %1423 = vmatpush1.msra.mxu0 %v5266_v23  ;;  %3950 = vmatpush3.msra.mxu1 %v5363_v61 }
 0xb96   :  { %1424 = vmatprep.subr.mxu0 %v5273_v24  ;;  %3951 = vmatprep.subr.mxu1 %v6398_v0 }
 0xb97   :  { %1425 = vmatpush1.msra.mxu0 %v5371_v33  ;;  %3952 = vmatpush3.msra.mxu1 %v5377_v35 }
 0xb98   :  { %1426 = vmatprep.subr.mxu0 %v5383_v45  ;;  %3953 = vmatprep.subr.mxu1 %v6398_v0 }
 0xb99   :  { %1427 = vmatpush1.msra.mxu0 %v6418_v11  ;;  %1460 = vmatprep.mubr.f32.mxu0 %v6398_v0 }
 0xb9a   :  { %3954 = vmatpush3.msra.mxu1 %v6419_v36  ;;  %3955 = vmatprep.mubr.msk.f32.mxu1 %vm4280_vm0, %v6398_v0 }
 0xb9b   :  { %3958 = vmatprep.subr.mxu0 %v6398_v0  ;;  %3977 = vmatprep.subr.mxu1 %v6398_v0 }
 0xc3a   :  { %v1285_v37 = vpop.f32.mrf.mxu0  ;;  %v1356_v38 = vpop.f32.mrf.mxu1 }
 0xc3b   :  { %v1357_v40 = vadd.f32 %v1356_v38, %v6420_v39  ;;  %v1286_v57 = vadd.f32 %v1285_v37, %v6402_v3 }
 0xc3c   :  { %v1287_v41 = vpop.f32.mrf.mxu0  ;;  %v3922_v42 = vpop.f32.mrf.mxu1 }
 0xc3d   :  { %v1288_v55 = vadd.f32 %v1287_v41, %v6421_v59  ;;  %1372 = vrot.lane.b32.xlu1 %v1357_v40, %s4281_s23  ;;  %v6423_v41 = vld [vmem:[#allocation12_spill] sm:$0xff]  ;;  %v6424_v42 = vld [vmem:[#allocation14_spill] sm:$0xff] }
 0xc3f   :  { %1361 = vrot.lane.b32.xlu0 %v1288_v55, %s4281_s23 }
 0xcaf   :  { %v1373_v49 = vpop.permute.xlu1 %1372 }
 0xcb0   :  { %v1375_v56 = vadd.f32 %v1373_v49, %v1286_v57 }
 0xcb1   :  { %v1362_v62 = vpop.permute.xlu0 %1361 }
 0xcb2   :  { %v1364_v52 = vadd.f32 %v1362_v62, %v1286_v57  ;;  %v3465_v54 = vmul.f32 -1.442695, %v1375_v56  ;;  %v18_v57 = vstv %s6313_s8 }
 0xcb3   :  { %19 = vst [vmem:[#allocation2] sm:$0x1] %v18_v57 }
 0xcb4   :  { %v3464_v58 = vmul.f32 -1.442695, %v1364_v52 }
 0xcb6   :  { %4133 = vpow2.f32 %v3464_v58 }
 0xcc3   :  { %v4134_v51 = vpop.eup %4133 }
 0xcc4   :  { %v1368_v63 = vadd.f32 1.0, %v4134_v51 }
 0xcc6   :  { %4135 = vrcp.f32 %v1368_v63 }
 0xcd3   :  { %v4136_v50 = vpop.eup %4135 }
 0xcd4   :  { %v1382_v47 = vmul.f32 %v4136_v50, %v1373_v49  ;;  %v3471_v50 = vld [vmem:[%s6314_s7] ss:$0 sm:$0xff] }
 0xcd6   :  { %v1383_v60 = vadd.f32 %v1382_v47, %v1288_v55  ;;  %v4282_v55 = vmov 0  }
 0xcd7   :  { %4071 = vset.pattern.permute.xlu1 %v4282_v55  ;;  %4072 = vset.pattern.permute.xlu0 %v4282_v55 }
 0xcd8   :  { %4137 = vtanh.f32 %v1383_v60 }
 0xcd9   :  { %4139 = vpow2.f32 %v3465_v54 }
 0xce5   :  { %v4138_v53 = vpop.eup %4137 }
 0xce6   :  { %1387 = vrot.lane.b32.xlu0 %v4138_v53, %s4281_s23  ;;  %v4140_v4 = vpop.eup %4139 }
 0xce7   :  { %v1379_v5 = vadd.f32 1.0, %v4140_v4 }
 0xce9   :  { %4141 = vrcp.f32 %v1379_v5 }
 0xcf6   :  { %v4142_v6 = vpop.eup %4141 }
 0xcf7   :  { %v1385_v8 = vsub.f32 1.0, %v4142_v6  ;;  %v1391_v10 = vmul.f32 %v4142_v6, %v5414_v7 }
 0xd58   :  { %v1388_v9 = vpop.permute.xlu0 %1387 }
 0xd59   :  { %v1390_v12 = vmul.f32 %v1388_v9, %v1385_v8 }
 0xd5b   :  { %v5495_v14 = vadd.f32 %v1391_v10, %v1390_v12 }
 0xd5d   :  { %v1395_v15 = vsel %vm139_vm1, %v3466_v13, %v5495_v14 }
 0xd5e   :  { %1461 = vmatmul.mubr.f32.vlgmr.msra.gmra.mxu0 %v1395_v15  ;;  %3956 = vmatmul.mubr.f32.vlgmr.msra.gmra.mxu1 %v1395_v15 }
 0xd5f   :  { %3974 = vmatprep.mubr.msk.f32.mxu0 %vm4280_vm0, %v6398_v0  ;;  %3985 = vmatprep.mubr.msk.f32.mxu1 %vm4280_vm0, %v6398_v0 }
 0xe1e   :  { %v1462_v16 = vpop.f32.mrf.mxu0  ;;  %v1533_v17 = vpop.f32.mrf.mxu1 }
 0xe1f   :  { %v1534_v18 = vadd.f32 %v1533_v17, %v6420_v39  ;;  %v1463_v22 = vadd.f32 %v1462_v16, %v6402_v3  ;;  %v1618_v3 = vld [vmem:[%s6312_s4 + $0x38] sm:$0xff]  ;;  %s4283_s4 = smov 32  }
 0xe20   :  { %v1464_v19 = vpop.f32.mrf.mxu0  ;;  %v3957_v20 = vpop.f32.mrf.mxu1  ;;  %3959 = vmatpush3.msra.mxu0 %v1618_v3 }
 0xe21   :  { %v1465_v21 = vadd.f32 %v1464_v19, %v6421_v59  ;;  %1549 = vrot.lane.b32.xlu0 %v1534_v18, %s4281_s23  ;;  %3960 = vmatprep.subr.mxu0 %v6398_v0  ;;  %v6425_v59 = vld [vmem:[#allocation4_spill] sm:$0xff] }
 0xe22   :  { %3961 = vmatpush3.msra.mxu0 %v1617_v28 }
 0xe23   :  { %1538 = vrot.lane.b32.xlu1 %v1465_v21, %s4281_s23  ;;  %3962 = vmatprep.subr.mxu0 %v6398_v0 }
 0xe24   :  { %3963 = vmatpush3.msra.mxu0 %v1616_v1  ;;  %v6435_v1 = vlaneseq }
 0xe25   :  { %3964 = vmatprep.subr.mxu0 %v6398_v0 }
 0xe26   :  { %3965 = vmatpush3.msra.mxu0 %v1615_v2  ;;  %v1764_v2 = vand.u32 127, %v6435_v1  ;;  %v5658_v1 = vld [vmem:[%s6317_s9 + $0xf8] sm:$0xff] }
 0xe27   :  { %3966 = vmatprep.subr.mxu0 %v6398_v0 }
 0xe28   :  { %3967 = vmatpush3.msra.mxu0 %v1614_v26 }
 0xe29   :  { %3968 = vmatprep.subr.mxu0 %v6398_v0 }
 0xe2a   :  { %3969 = vmatpush3.msra.mxu0 %v1613_v34 }
 0xe2b   :  { %3970 = vmatprep.subr.mxu0 %v6398_v0 }
 0xe2c   :  { %3971 = vmatpush3.msra.mxu0 %v1612_v43  ;;  %v6436_v43 = vld [vmem:[#allocation6_spill] sm:$0xff] }
 0xe2d   :  { %3972 = vmatprep.subr.mxu0 %v6398_v0  ;;  %6437 = vst [vmem:[#allocation6_spill] sm:$0xff] %v5658_v1 }
 0xe2e   :  { %3973 = vmatpush3.msra.mxu0 %v1611_v48  ;;  %v1767_v48 = vsub.s32 %v1764_v2, %v6436_v43  ;;  %v5664_v2 = vld [vmem:[%s6317_s9 + $0xf0] sm:$0xff] }
 0xe2f   :  { %3999 = vmatprep.subr.mxu0 %v6398_v0 }
 0xe93   :  { %v1550_v30 = vpop.permute.xlu0 %1549 }
 0xe94   :  { %v1552_v46 = vadd.f32 %v1550_v30, %v1463_v22 }
 0xe95   :  { %v1539_v23 = vpop.permute.xlu1 %1538 }
 0xe96   :  { %v1541_v24 = vadd.f32 %v1539_v23, %v1463_v22 }
 0xe98   :  { %v3467_v61 = vmul.f32 -1.442695, %v1541_v24 }
 0xe9a   :  { %4143 = vpow2.f32 %v3467_v61 }
 0xea7   :  { %v4144_v33 = vpop.eup %4143 }
 0xea8   :  { %v1545_v35 = vadd.f32 1.0, %v4144_v33 }
 0xeaa   :  { %4145 = vrcp.f32 %v1545_v35  ;;  %v3472_v35 = vld [vmem:[#allocation2] ss:$0 sm:$0xff] }
 0xeb7   :  { %v4146_v45 = vpop.eup %4145 }
 0xeb8   :  { %v1559_v31 = vmul.f32 %v4146_v45, %v1550_v30  ;;  %v5609_v45 = vld [vmem:[%s6315_s6 + $0x18] sm:$0xff]  ;;  %v5614_v30 = vld [vmem:[%s6315_s6 + $0x10] sm:$0xff] }
 0xeb9   :  { %6431 = vst [vmem:[#allocation12_spill] sm:$0xff] %v5609_v45  ;;  %6432 = vst [vmem:[#allocation14_spill] sm:$0xff] %v5614_v30  ;;  %3978 = vmatpush3.msra.mxu1 %v5609_v45 }
 0xeba   :  { %v1560_v44 = vadd.f32 %v1559_v31, %v1465_v21  ;;  %3979 = vmatprep.subr.mxu1 %v6398_v0  ;;  %v5627_v31 = vld [vmem:[%s6315_s6 + $0x8] sm:$0xff] }
 0xebb   :  { %3980 = vmatpush3.msra.mxu1 %v5614_v30  ;;  %6433 = vst [vmem:[#allocation4_spill] sm:$0xff] %v5627_v31 }
 0xebc   :  { %4147 = vtanh.f32 %v1560_v44  ;;  %3981 = vmatprep.subr.mxu1 %v6398_v0  ;;  %v5635_v44 = vld [vmem:[%s6315_s6] sm:$0xff] }
 0xebd   :  { %3982 = vmatpush3.msra.mxu1 %v5627_v31  ;;  %6434 = vst [vmem:[#allocation15_spill] sm:$0xff] %v5635_v44 }
 0xebe   :  { %3983 = vmatprep.subr.mxu1 %v6398_v0 }
 0xebf   :  { %3984 = vmatpush3.msra.mxu1 %v5635_v44 }
 0xec0   :  { %2068 = vmatprep.subr.mxu1 %v5658_v1 }
 0xec9   :  { %v4148_v29 = vpop.eup %4147 }
 0xeca   :  { %1564 = vrot.lane.b32.xlu1 %v4148_v29, %s4281_s23 }
 0xece   :  { %1578 = vrot.lane.b32.xlu1 %v6422_v27, %s4281_s23 }
 0xed2   :  { %1590 = vrot.lane.b32.xlu1 %v5495_v14, %s4281_s23 }
 0xed6   :  { %1588 = vrot.lane.b32.xlu1 %v5414_v7, %s4281_s23  ;;  %v3468_v7 = vmul.f32 -1.442695, %v1552_v46 }
 0xed8   :  { %4149 = vpow2.f32 %v3468_v7 }
 0xeda   :  { %1586 = vrot.lane.b32.xlu1 %v5303_v32, %s4281_s23 }
 0xee5   :  { %v4150_v25 = vpop.eup %4149 }
 0xee6   :  { %v1556_v11 = vadd.f32 1.0, %v4150_v25 }
 0xee8   :  { %4151 = vrcp.f32 %v1556_v11 }
 0xef5   :  { %v4152_v36 = vpop.eup %4151 }
 0xef6   :  { %v1562_v32 = vsub.f32 1.0, %v4152_v36  ;;  %v1568_v38 = vmul.f32 %v4152_v36, %v5495_v14 }
 0xf3c   :  { %v1565_v37 = vpop.permute.xlu1 %1564 }
 0xf3d   :  { %v1567_v39 = vmul.f32 %v1565_v37, %v1562_v32 }
 0xf3f   :  { %v1569_v40 = vadd.f32 %v1568_v38, %v1567_v39 }
 0xf40   :  { %v1579_v62 = vpop.permute.xlu1 %1578 }
 0xf41   :  { %1592 = vrot.lane.b32.xlu0 %v1569_v40, %s4281_s23 }
 0xf44   :  { %v1591_v52 = vpop.permute.xlu1 %1590 }
 0xf45   :  { %1580 = vrot.lane.b32.xlu0 %v6423_v41, %s4281_s23 }
 0xf48   :  { %v1589_v49 = vpop.permute.xlu1 %1588 }
 0xf49   :  { %1582 = vrot.lane.b32.xlu0 %v6424_v42, %s4281_s23 }
 0xf4c   :  { %v1587_v4 = vpop.permute.xlu1 %1586 }
 0xf4d   :  { %1584 = vrot.lane.b32.xlu0 %v6425_v59, %s4281_s23 }
 0xfb3   :  { %v1593_v58 = vpop.permute.xlu0 %1592 }
 0xfb4   :  { %3975 = vmatmul.mubr.msk.f32.vlgmr.msra.gmra.mxu0 %vm139_vm1, %v1593_v58  ;;  %v5577_v8 = vsel %vm1602_vm2, %v1579_v62, %v1593_v58  ;;  %v5601_v23 = vsel %vm1602_vm2, %v1593_v58, %v1579_v62 }
 0xfb5   :  { %4007 = vmatprep.mubr.msk.f32.mxu0 %vm4280_vm0, %v6398_v0  ;;  %6427 = vst [vmem:[#allocation3_spill] sm:$0xff] %v5577_v8  ;;  %v1705_v18 = vmul.f32 %v3471_v50, %v5577_v8  ;;  %6430 = vst [vmem:[#allocation13_spill] sm:$0xff] %v5601_v23  ;;  %v1712_v61 = vmul.f32 %v3471_v50, %v5601_v23  ;;  %4000 = vmatpush3.msra.mxu0 %v5609_v45 }
 0xfb6   :  { %4001 = vmatprep.subr.mxu0 %v6398_v0 }
 0xfb7   :  { %v1581_v51 = vpop.permute.xlu0 %1580  ;;  %v1713_v21 = vsel %vm139_vm1, %v1705_v18, 0.0  ;;  %v1734_v33 = vsel %vm139_vm1, %v1712_v61, 0.0  ;;  %4002 = vmatpush3.msra.mxu0 %v5614_v30 }
 0xfb8   :  { %v5564_v63 = vsel %vm1602_vm2, %v1581_v51, %v1591_v52  ;;  %v5580_v9 = vsel %vm1602_vm2, %v1591_v52, %v1581_v51  ;;  %4003 = vmatprep.subr.mxu0 %v6398_v0 }
 0xfb9   :  { %v1706_v47 = vmul.f32 %v3471_v50, %v5564_v63  ;;  %v1711_v17 = vmul.f32 %v3471_v50, %v5580_v9  ;;  %4004 = vmatpush3.msra.mxu0 %v5627_v31 }
 0xfba   :  { %4005 = vmatprep.subr.mxu0 %v6398_v0 }
 0xfbb   :  { %v1583_v60 = vpop.permute.xlu0 %1582  ;;  %v1716_v53 = vsel %vm139_vm1, %v1706_v47, 0.0  ;;  %v1731_v20 = vsel %vm139_vm1, %v1711_v17, 0.0  ;;  %4006 = vmatpush3.msra.mxu0 %v5635_v44 }
 0xfbc   :  { %v5572_v56 = vsel %vm1602_vm2, %v1583_v60, %v1589_v49  ;;  %1717 = vadd.xlane.f32.xlu1 %v1716_v53  ;;  %v5595_v19 = vsel %vm1602_vm2, %v1589_v49, %v1583_v60  ;;  %2468 = vmatprep.subr.mxu0 %v5658_v1 }
 0xfbd   :  { %6426 = vst [vmem:[#allocation5_spill] sm:$0xff] %v5572_v56  ;;  %v1707_v54 = vmul.f32 %v3471_v50, %v5572_v56  ;;  %v1710_v22 = vmul.f32 %v3471_v50, %v5595_v19 }
 0xfbf   :  { %v1585_v5 = vpop.permute.xlu0 %1584  ;;  %v1719_v6 = vsel %vm139_vm1, %v1707_v54, 0.0  ;;  %v1728_v24 = vsel %vm139_vm1, %v1710_v22, 0.0 }
 0xfc0   :  { %v5583_v10 = vsel %vm1602_vm2, %v1585_v5, %v1587_v4  ;;  %v5586_v12 = vsel %vm1602_vm2, %v1587_v4, %v1585_v5  ;;  %1720 = vadd.xlane.f32.xlu0 %v1719_v6  ;;  %v3469_v5 = vld [vmem:[%s6316_s5] ss:$0 sm:$0xff] }
 0xfc1   :  { %6428 = vst [vmem:[#allocation10_spill] sm:$0xff] %v5583_v10  ;;  %6429 = vst [vmem:[#allocation9_spill] sm:$0xff] %v5586_v12  ;;  %v1709_v13 = vmul.f32 %v3471_v50, %v5586_v12  ;;  %v1708_v14 = vmul.f32 %v3471_v50, %v5583_v10 }
 0xfc3   :  { %v1725_v15 = vsel %vm139_vm1, %v1709_v13, 0.0  ;;  %v1722_v16 = vsel %vm139_vm1, %v1708_v14, 0.0 }
 0xfc4   :  { %1726 = vadd.xlane.f32.xlu1 %v1725_v15  ;;  %1723 = vadd.xlane.f32.xlu0 %v1722_v16 }
 0xfc8   :  { %1732 = vadd.xlane.f32.xlu1 %v1731_v20  ;;  %1714 = vadd.xlane.f32.xlu0 %v1713_v21 }
 0xfcc   :  { %1729 = vadd.xlane.f32.xlu0 %v1728_v24 }
 0xfd0   :  { %1735 = vadd.xlane.f32.xlu0 %v1734_v33 }
 0xfd9   :  { %1744 = vperm.xlu1 %4071, %v3472_v35  }
0x1045   :  { %v1718_v29 = vpop.xlane.xlu1 %1717 }
0x1049   :  { %v1721_v27 = vpop.xlane.xlu0 %1720 }
0x104d   :  { %v1724_v3 = vpop.xlane.xlu0 %1723  ;;  %v1727_v28 = vpop.xlane.xlu1 %1726 }
0x1051   :  { %v1715_v26 = vpop.xlane.xlu0 %1714  ;;  %v1733_v34 = vpop.xlane.xlu1 %1732 }
0x1055   :  { %v1730_v46 = vpop.xlane.xlu0 %1729  ;;  %v1745_v7 = vpop.permute.xlu1 %1744 }
0x1056   :  { %v1747_v25 = vadd.f32 %v1745_v7, %v1715_v26  ;;  %v1748_v11 = vadd.f32 %v1745_v7, %v1718_v29  ;;  %v1749_v36 = vadd.f32 %v1745_v7, %v1721_v27  ;;  %v1750_v32 = vadd.f32 %v1745_v7, %v1724_v3  ;;  %v5669_v26 = vld [vmem:[%s6317_s9 + $0xe8] sm:$0xff] }
0x1057   :  { %v1751_v37 = vadd.f32 %v1745_v7, %v1727_v28  ;;  %v1752_v38 = vadd.f32 %v1745_v7, %v1730_v46  ;;  %v1753_v59 = vadd.f32 %v1745_v7, %v1733_v34  ;;  %v5677_v34 = vld [vmem:[%s6317_s9 + $0xe0] sm:$0xff]  ;;  %v5689_v46 = vld [vmem:[%s6317_s9 + $0xd0] sm:$0xff] }
0x1058   :  { %v1768_v39 = vrot.slane %v1747_v25, %v1767_v48  ;;  %v1772_v40 = vrot.slane %v1748_v11, %v1767_v48  ;;  %v1776_v41 = vrot.slane %v1749_v36, %v1767_v48  ;;  %v1780_v57 = vrot.slane %v1750_v32, %v1767_v48  ;;  %v5698_v25 = vld [vmem:[%s6317_s9 + $0xc8] sm:$0xff]  ;;  %v5704_v11 = vld [vmem:[%s6317_s9 + $0xc0] sm:$0xff]  ;;  %v5710_v36 = vld [vmem:[%s6317_s9 + $0xb8] sm:$0xff] }
0x1059   :  { %v1736_v42 = vpop.xlane.xlu0 %1735  ;;  %v1784_v52 = vrot.slane %v1751_v37, %v1767_v48  ;;  %v1788_v51 = vrot.slane %v1752_v38, %v1767_v48  ;;  %v1792_v49 = vrot.slane %v1753_v59, %v1767_v48  ;;  %v5718_v37 = vld [vmem:[%s6317_s9 + $0xb0] sm:$0xff]  ;;  %v5739_v59 = vld [vmem:[%s6317_s9 + $0x98] sm:$0xff] }
0x105a   :  { %v1754_v55 = vadd.f32 %v1745_v7, %v1736_v42  ;;  %v1798_v62 = vsel %vm1797_vm3, %v1772_v40, %v1768_v39  ;;  %v5692_v7 = vsub.s32 4, %v6436_v43  ;;  %v6439_v39 = vld [vmem:[#allocation11_spill] sm:$0xff] }
0x105b   :  { %v1800_v58 = vsel %vm1799_vm4, %v1776_v41, %v1798_v62  ;;  %v5728_v41 = vld [vmem:[%s6317_s9 + $0xa8] sm:$0xff]  ;;  %v5734_v42 = vld [vmem:[%s6317_s9 + $0xa0] sm:$0xff] }
0x105c   :  { %v1802_v50 = vsel %vm1801_vm5, %v1780_v57, %v1800_v58  ;;  %v1796_v60 = vrot.slane %v1754_v55, %v1767_v48  ;;  %v5683_v48 = vld [vmem:[%s6317_s9 + $0xd8] sm:$0xff]  ;;  %6438 = vst [vmem:[#allocation16_spill] sm:$0xff] %v5692_v7  ;;  %v5745_v55 = vld [vmem:[%s6317_s9 + $0x90] sm:$0xff]  ;;  %v6440_v57 = vld [vmem:[#allocation7_spill] sm:$0xff] }
0x105d   :  { %v1804_v47 = vsel %vm1803_vm6, %v1784_v52, %v1802_v50  ;;  %v5753_v52 = vld [vmem:[%s6317_s9 + $0x88] sm:$0xff]  ;;  %v5759_v58 = vld [vmem:[%s6317_s9 + $0x80] sm:$0xff]  ;;  %v5772_v50 = vld [vmem:[%s6317_s9 + $0x70] sm:$0xff] }
0x105e   :  { %v1806_v53 = vsel %vm1805_vm7, %v1788_v51, %v1804_v47  ;;  %v5766_v51 = vld [vmem:[%s6317_s9 + $0x78] sm:$0xff] }
0x105f   :  { %v1808_v54 = vsel %vm1807_vm8, %v1792_v49, %v1806_v53  ;;  %v6441_v49 = vld [vmem:[#allocation8_spill] sm:$0xff] }
0x1060   :  { %v1810_v4 = vsel %vm1809_vm9, %v1796_v60, %v1808_v54  ;;  %v5777_v60 = vsub.s32 3, %v6436_v43  ;;  %v5783_v53 = vld [vmem:[%s6317_s9 + $0x68] sm:$0xff]  ;;  %v5789_v54 = vld [vmem:[%s6317_s9 + $0x60] sm:$0xff] }
0x1061   :  { %1812 = vxpose.xlu1.b32.start.end [1/1] (short) (narrow) %v1810_v4, 8  ;;  %v5795_v4 = vld [vmem:[%s6317_s9 + $0x58] sm:$0xff] }
0x1062   :  { %6442 = vst [vmem:[#allocation11_spill] sm:$0xff] %v5777_v60 }
0x1074   :  { %v1694_v6 = vpop.f32.mrf.mxu0 }
0x1075   :  { %v5645_v13 = vadd.f32 %v3469_v5, %v1694_v6  ;;  %v5801_v5 = vld [vmem:[%s6317_s9 + $0x50] sm:$0xff] }
0x1076   :  { %v3976_v14 = vpop.f32.mrf.mxu0 }
0x1077   :  { %3986 = vmatmul.mubr.msk.f32.vlgmr.msra.gmra.mxu1 %vm1602_vm2, %v5645_v13  ;;  %v5806_v14 = vsub.s32 5, %v6436_v43 }
0x1078   :  { %2132 = vmatprep.mubr.f32.mxu1 %v6398_v0  ;;  %2069 = vmatpush1.msra.mxu1 %v5664_v2 }
0x1079   :  { %2070 = vmatprep.subr.mxu1 %v5669_v26  ;;  %6443 = vst [vmem:[#allocation7_spill] sm:$0xff] %v5806_v14 }
0x107a   :  { %2071 = vmatpush1.msra.mxu1 %v5677_v34 }
0x107b   :  { %2072 = vmatprep.subr.mxu1 %v5683_v48 }
0x107c   :  { %2073 = vmatpush1.msra.mxu1 %v5689_v46 }
0x107d   :  { %2074 = vmatprep.subr.mxu1 %v5698_v25 }
0x107e   :  { %2075 = vmatpush1.msra.mxu1 %v5704_v11 }
0x107f   :  { %2076 = vmatprep.subr.mxu1 %v5710_v36 }
0x1080   :  { %2077 = vmatpush1.msra.mxu1 %v5718_v37 }
0x1081   :  { %2078 = vmatprep.subr.mxu1 %v5728_v41 }
0x1082   :  { %2079 = vmatpush1.msra.mxu1 %v5734_v42 }
0x1083   :  { %2080 = vmatprep.subr.mxu1 %v5739_v59 }
0x1084   :  { %2081 = vmatpush1.msra.mxu1 %v5745_v55 }
0x1085   :  { %2082 = vmatprep.subr.mxu1 %v5753_v52 }
0x1086   :  { %2083 = vmatpush1.msra.mxu1 %v5759_v58 }
0x1087   :  { %2084 = vmatprep.subr.mxu1 %v5766_v51 }
0x1088   :  { %2085 = vmatpush1.msra.mxu1 %v5772_v50 }
0x1089   :  { %2086 = vmatprep.subr.mxu1 %v5783_v53 }
0x108a   :  { %2087 = vmatpush1.msra.mxu1 %v5789_v54 }
0x108b   :  { %2088 = vmatprep.subr.mxu1 %v5795_v4 }
0x108c   :  { %2089 = vmatpush1.msra.mxu1 %v5801_v5 }
0x10dd   :  { %v5650_v17 = vpop.trf.xlu1 }
0x1137   :  { %v1913_v15 = vpop.f32.mrf.mxu1 }
0x1138   :  { %1919 = vperm.xlu0 %4072, %v1913_v15   ;;  %v5812_v15 = vld [vmem:[%s6317_s9 + $0x48] sm:$0xff] }
0x1139   :  { %v3987_v16 = vpop.f32.mrf.mxu1  ;;  %2090 = vmatprep.subr.mxu1 %v5812_v15 }
0x113a   :  { %v5818_v16 = vld [vmem:[%s6317_s9 + $0x40] sm:$0xff] }
0x113b   :  { %2091 = vmatpush1.msra.mxu1 %v5818_v16 }
0x11b3   :  { %v1920_v18 = vpop.permute.xlu0 %1919 }
0x11b4   :  { %v1922_v20 = vadd.f32 %v1920_v18, %v5650_v17  ;;  %v5824_v18 = vld [vmem:[%s6317_s9 + $0x38] sm:$0xff] }
0x11b5   :  { %2092 = vmatprep.subr.mxu1 %v5824_v18 }
0x11b6   :  { %v1923_v21 = vmax.f32 %v1922_v20, 0.0  ;;  %v5830_v20 = vld [vmem:[%s6317_s9 + $0x30] sm:$0xff] }
0x11b7   :  { %2093 = vmatpush1.msra.mxu1 %v5830_v20 }
0x11b8   :  { %v1925_v22 = vsel %vm1924_vm10, %v1923_v21, -inf }
0x11b9   :  { %1926 = vmax.xlane.f32.xlu0 %v1925_v22  ;;  %v5835_v22 = vsub.s32 6, %v6436_v43 }
0x11bb   :  { %6444 = vst [vmem:[#allocation8_spill] sm:$0xff] %v5835_v22 }
0x1242   :  { %v1927_v24 = vpop.xlane.xlu0 %1926 }
0x1243   :  { %v1928_v61 = vsub.f32 %v1923_v21, %v1927_v24  ;;  %v5841_v24 = vld [vmem:[%s6317_s9 + $0x28] sm:$0xff] }
0x1244   :  { %2094 = vmatprep.subr.mxu1 %v5841_v24 }
0x1245   :  { %v1929_v33 = vmul.f32 1.442695, %v1928_v61  ;;  %v5847_v61 = vld [vmem:[%s6317_s9 + $0x20] sm:$0xff] }
0x1246   :  { %2095 = vmatpush1.msra.mxu1 %v5847_v61 }
0x1247   :  { %4153 = vpow2.f32 %v1929_v33  ;;  %v5853_v33 = vld [vmem:[%s6317_s9 + $0x18] sm:$0xff] }
0x1248   :  { %2096 = vmatprep.subr.mxu1 %v5853_v33 }
0x1254   :  { %v4154_v35 = vpop.eup %4153 }
0x1255   :  { %v1931_v29 = vsel %vm1924_vm10, %v4154_v35, 0.0 }
0x1256   :  { %1932 = vadd.xlane.f32.xlu1 %v1931_v29 }
0x12df   :  { %v1933_v27 = vpop.xlane.xlu1 %1932 }
0x12e0   :  { %4155 = vrcp.f32 %v1933_v27  ;;  %v5864_v27 = vsub.s32 7, %v6436_v43 }
0x12e2   :  { %6445 = vst [vmem:[#allocation17_spill] sm:$0xff] %v5864_v27 }
0x12ed   :  { %v4156_v3 = vpop.eup %4155 }
0x12ee   :  { %v1935_v28 = vmul.f32 %v4156_v3, %v4154_v35  ;;  %v5859_v35 = vld [vmem:[%s6317_s9 + $0x10] sm:$0xff]  ;;  %v5870_v3 = vld [vmem:[%s6317_s9 + $0x8] sm:$0xff] }
0x12ef   :  { %2097 = vmatpush1.msra.mxu1 %v5859_v35 }
0x12f0   :  { %1936 = vxpose.xlu0.b32.start.end [1/1] (short) (narrow) %v1935_v28, 8  ;;  %v5876_v28 = vld [vmem:[%s6317_s9] sm:$0xff]  ;;  %2098 = vmatprep.subr.mxu1 %v5870_v3 }
0x12f1   :  { %6446 = vst [vmem:[#allocation18_spill] sm:$0xff] %v5876_v28  ;;  %2099 = vmatpush1.msra.mxu1 %v5876_v28 }
0x12f2   :  { %3988 = vmatprep.subr.mxu1 %v6398_v0 }
0x136c   :  { %v5712_v32 = vpop.trf.xlu0 }
0x136d   :  { %v1999_v38 = vrot.slane %v5712_v32, %v5692_v7  ;;  %v1971_v40 = vrot.slane %v5712_v32, %v6439_v39  ;;  %v1978_v62 = vrot.slane %v5712_v32, %v6440_v57  ;;  %v1985_v47 = vrot.slane %v5712_v32, %v6441_v49 }
0x136e   :  { %v1992_v6 = vrot.slane %v5712_v32, %v5777_v60  ;;  %v2006_v21 = vrot.slane %v5712_v32, %v5806_v14  ;;  %v2013_v29 = vrot.slane %v5712_v32, %v5835_v22  ;;  %v2020_v43 = vrot.slane %v5712_v32, %v5864_v27 }
0x136f   :  { %2001 = vbcast.lane.b32.xlu0 %v1999_v38, 256  ;;  %1973 = vbcast.lane.b32.xlu1 %v1971_v40, 256  ;;  %v137_v38 = vld [vmem:[%s6318_s1] sm:$0xff] }
0x1373   :  { %2177 = vrot.lane.b32.xlu0 %v5645_v13, %s4283_s4  ;;  %1980 = vbcast.lane.b32.xlu1 %v1978_v62, 256 }
0x1377   :  { %1987 = vbcast.lane.b32.xlu1 %v1985_v47, 256 }
0x137b   :  { %1994 = vbcast.lane.b32.xlu1 %v1992_v6, 256 }
0x137f   :  { %2008 = vbcast.lane.b32.xlu1 %v2006_v21, 256 }
0x1383   :  { %2015 = vbcast.lane.b32.xlu1 %v2013_v29, 256 }
0x1387   :  { %2022 = vbcast.lane.b32.xlu1 %v2020_v43, 256 }
0x138b   :  { %2048 = vrot.lane.b32.xlu1 %v137_v38, %s4281_s23 }
0x138f   :  { %2051 = vrot.lane.b32.xlu1 %v5645_v13, %s4284_s19 }
0x13e1   :  { %v1974_v40 = vpop.permute.xlu1 %1973  ;;  %v2002_v38 = vpop.permute.xlu0 %2001 }
0x13e2   :  { %v2024_v32 = vmul.f32 %v1974_v40, %v5577_v8  ;;  %v2028_v45 = vmul.f32 %v2002_v38, %v5586_v12 }
0x13e4   :  { %v2032_v43 = vsel %vm139_vm1, %v2024_v32, 0.0 }
0x13e5   :  { %v1981_v62 = vpop.permute.xlu1 %1980 }
0x13e6   :  { %v2025_v47 = vmul.f32 %v1981_v62, %v5564_v63 }
0x13e8   :  { %v2033_v21 = vsel %vm139_vm1, %v2025_v47, 0.0 }
0x13e9   :  { %v1988_v6 = vpop.permute.xlu1 %1987  ;;  %v2034_v44 = vadd.f32 %v2033_v21, %v2032_v43 }
0x13ea   :  { %v2026_v29 = vmul.f32 %v1988_v6, %v5572_v56  ;;  %v2039_v6 = vsel %vm139_vm1, %v2028_v45, 0.0 }
0x13ec   :  { %v2035_v1 = vsel %vm139_vm1, %v2026_v29, 0.0 }
0x13ed   :  { %v1995_v31 = vpop.permute.xlu1 %1994  ;;  %v2036_v30 = vadd.f32 %v2035_v1, %v2034_v44 }
0x13ee   :  { %v2027_v13 = vmul.f32 %v1995_v31, %v5583_v10 }
0x13f0   :  { %v2037_v62 = vsel %vm139_vm1, %v2027_v13, 0.0 }
0x13f1   :  { %v2038_v40 = vadd.f32 %v2037_v62, %v2036_v30  ;;  %v2009_v8 = vpop.permute.xlu1 %2008 }
0x13f2   :  { %v2029_v47 = vmul.f32 %v2009_v8, %v5595_v19 }
0x13f3   :  { %v2040_v56 = vadd.f32 %v2039_v6, %v2038_v40 }
0x13f4   :  { %v2041_v29 = vsel %vm139_vm1, %v2029_v47, 0.0 }
0x13f5   :  { %v2016_v32 = vpop.permute.xlu1 %2015  ;;  %v2042_v31 = vadd.f32 %v2041_v29, %v2040_v56  ;;  %v127_v56 = vld [vmem:[%s6319_s10] sm:$0x3] }
0x13f6   :  { %v2030_v21 = vmul.f32 %v2016_v32, %v5580_v9  ;;  %v5917_v47 = vrot.slane %v127_v56, %v6439_v39  ;;  %v5921_v29 = vrot.slane %v127_v56, %v6440_v57 }
0x13f8   :  { %v2043_v43 = vsel %vm139_vm1, %v2030_v21, 0.0  ;;  %6448 = vst [vmem:[#allocation20_spill] sm:$0xff] %v5917_v47  ;;  %6449 = vst [vmem:[#allocation21_spill] sm:$0xff] %v5921_v29 }
0x13f9   :  { %v2023_v44 = vpop.permute.xlu1 %2022  ;;  %v2044_v38 = vadd.f32 %v2043_v43, %v2042_v31 }
0x13fa   :  { %v2031_v1 = vmul.f32 %v2023_v44, %v5601_v23 }
0x13fc   :  { %v2045_v30 = vsel %vm139_vm1, %v2031_v1, 0.0 }
0x13fd   :  { %v2046_v13 = vadd.f32 %v2045_v30, %v2044_v38  ;;  %v5906_v62 = vpop.permute.xlu1 %2048 }
0x13fe   :  { %6447 = vst [vmem:[#allocation19_spill] sm:$0xff] %v5906_v62 }
0x13ff   :  { %v2054_v8 = vsel %vm139_vm1, %v2046_v13, %v5906_v62 }
0x1401   :  { %v2052_v45 = vpop.permute.xlu1 %2051 }
0x1402   :  { %v2056_v40 = vsel %vm2055_vm11, %v2054_v8, %v2052_v45 }
0x1403   :  { %2133 = vmatmul.mubr.f32.vlgmr.msra.gmra.mxu1 %v2056_v40 }
0x1404   :  { %3996 = vmatprep.mubr.msk.f32.mxu1 %vm4280_vm0, %v6398_v0 }
0x14c3   :  { %v2134_v6 = vpop.f32.mrf.mxu1 }
0x14c4   :  { %v2135_v32 = vadd.f32 %v2134_v6, %v5917_v47  ;;  %v5931_v6 = vld [vmem:[%s6320_s11 + $0x18] sm:$0xff] }
0x14c5   :  { %v2136_v21 = vpop.f32.mrf.mxu1  ;;  %3989 = vmatpush3.msra.mxu1 %v5931_v6 }
0x14c6   :  { %2140 = vrot.lane.b32.xlu1 %v2135_v32, %s4283_s4  ;;  %v2137_v43 = vadd.f32 %v2136_v21, %v5921_v29  ;;  %v5936_v21 = vld [vmem:[%s6320_s11 + $0x10] sm:$0xff]  ;;  %3990 = vmatprep.subr.mxu1 %v6398_v0 }
0x14c7   :  { %3991 = vmatpush3.msra.mxu1 %v5936_v21 }
0x14c8   :  { %3992 = vmatprep.subr.mxu1 %v6398_v0 }
0x14ca   :  { %2161 = vrot.lane.b32.xlu1 %v2137_v43, %s4284_s19 }
0x1538   :  { %v2141_v31 = vpop.permute.xlu1 %2140 }
0x1539   :  { %v2143_v44 = vadd.f32 %v2141_v31, %v2135_v32  ;;  %v5950_v31 = vld [vmem:[%s6320_s11] sm:$0xff] }
0x153b   :  { %v3474_v1 = vmul.f32 -1.442695, %v2143_v44 }
0x153c   :  { %v2162_v8 = vpop.permute.xlu1 %2161 }
0x153d   :  { %4157 = vpow2.f32 %v3474_v1 }
0x154a   :  { %v4158_v38 = vpop.eup %4157 }
0x154b   :  { %v2147_v30 = vadd.f32 1.0, %v4158_v38 }
0x154d   :  { %4159 = vrcp.f32 %v2147_v30 }
0x155a   :  { %v4160_v13 = vpop.eup %4159 }
0x155b   :  { %v2164_v45 = vmul.f32 %v4160_v13, %v2162_v8 }
0x155d   :  { %2166 = vrot.lane.b32.xlu1 %v2164_v45, %s4281_s23 }
0x1561   :  { %2151 = vrot.lane.b32.xlu1 %v2137_v43, %s4283_s4  ;;  %v5943_v43 = vld [vmem:[%s6320_s11 + $0x8] sm:$0xff] }
0x1562   :  { %3993 = vmatpush3.msra.mxu1 %v5943_v43 }
0x1563   :  { %3994 = vmatprep.subr.mxu1 %v6398_v0 }
0x1564   :  { %3995 = vmatpush3.msra.mxu1 %v5950_v31 }
0x1565   :  { %4010 = vmatprep.subr.mxu1 %v6398_v0 }
0x15cf   :  { %v2167_v40 = vpop.permute.xlu1 %2166 }
0x15d0   :  { %v2169_v56 = vadd.f32 %v2167_v40, %v2135_v32 }
0x15d2   :  { %4161 = vtanh.f32 %v2169_v56  ;;  %v2178_v56 = vpop.permute.xlu0 %2177 }
0x15d3   :  { %v2152_v1 = vpop.permute.xlu1 %2151 }
0x15d4   :  { %v2154_v38 = vadd.f32 %v2152_v1, %v2135_v32 }
0x15d6   :  { %v3475_v30 = vmul.f32 -1.442695, %v2154_v38 }
0x15d8   :  { %4163 = vpow2.f32 %v3475_v30 }
0x15df   :  { %v4162_v44 = vpop.eup %4161 }
0x15e0   :  { %2173 = vrot.lane.b32.xlu1 %v4162_v44, %s4284_s19 }
0x15e5   :  { %v4164_v13 = vpop.eup %4163 }
0x15e6   :  { %v2158_v8 = vadd.f32 1.0, %v4164_v13 }
0x15e8   :  { %4165 = vrcp.f32 %v2158_v8 }
0x15f5   :  { %v4166_v45 = vpop.eup %4165 }
0x15f6   :  { %v2171_v40 = vsub.f32 1.0, %v4166_v45  ;;  %v2180_v47 = vmul.f32 %v4166_v45, %v2178_v56 }
0x1652   :  { %v2174_v29 = vpop.permute.xlu1 %2173 }
0x1653   :  { %v2176_v62 = vmul.f32 %v2174_v29, %v2171_v40 }
0x1655   :  { %v5957_v23 = vadd.f32 %v2180_v47, %v2176_v62  ;;  %v6009_v62 = vld [vmem:[%s6321_s12] ss:$0 sm:$0xff] }
0x1657   :  { %2189 = vrot.lane.b32.xlu1 %v5957_v23, %s4284_s19 }
0x16c9   :  { %v2190_v44 = vpop.permute.xlu1 %2189 }
0x16ca   :  { %3997 = vmatmul.mubr.msk.f32.vlgmr.msra.gmra.mxu1 %vm1602_vm2, %v2190_v44  ;;  %4008 = vmatmul.mubr.msk.f32.vlgmr.msra.gmra.mxu0 %vm1602_vm2, %v2190_v44 }
0x16cb   :  { %2469 = vmatpush1.msra.mxu0 %v5664_v2  ;;  %2532 = vmatprep.mubr.f32.mxu0 %v6398_v0 }
0x16cc   :  { %2470 = vmatprep.subr.mxu0 %v5669_v26  ;;  %4011 = vmatpush3.msra.mxu1 %v5931_v6 }
0x16cd   :  { %2471 = vmatpush1.msra.mxu0 %v5677_v34  ;;  %4012 = vmatprep.subr.mxu1 %v6398_v0 }
0x16ce   :  { %2472 = vmatprep.subr.mxu0 %v5683_v48  ;;  %4013 = vmatpush3.msra.mxu1 %v5936_v21 }
0x16cf   :  { %2473 = vmatpush1.msra.mxu0 %v5689_v46  ;;  %4014 = vmatprep.subr.mxu1 %v6398_v0 }
0x16d0   :  { %2474 = vmatprep.subr.mxu0 %v5698_v25  ;;  %4015 = vmatpush3.msra.mxu1 %v5943_v43 }
0x16d1   :  { %2475 = vmatpush1.msra.mxu0 %v5704_v11  ;;  %4016 = vmatprep.subr.mxu1 %v6398_v0 }
0x16d2   :  { %2476 = vmatprep.subr.mxu0 %v5710_v36  ;;  %4017 = vmatpush3.msra.mxu1 %v5950_v31 }
0x16d3   :  { %2477 = vmatpush1.msra.mxu0 %v5718_v37  ;;  %4018 = vmatprep.mubr.msk.f32.mxu1 %vm4280_vm0, %v6398_v0 }
0x16d4   :  { %2478 = vmatprep.subr.mxu0 %v5728_v41  ;;  %4021 = vmatprep.subr.mxu1 %v6398_v0 }
0x16d5   :  { %2479 = vmatpush1.msra.mxu0 %v5734_v42 }
0x16d6   :  { %2480 = vmatprep.subr.mxu0 %v5739_v59 }
0x16d7   :  { %2481 = vmatpush1.msra.mxu0 %v5745_v55 }
0x16d8   :  { %2482 = vmatprep.subr.mxu0 %v5753_v52 }
0x16d9   :  { %2483 = vmatpush1.msra.mxu0 %v5759_v58 }
0x16da   :  { %2484 = vmatprep.subr.mxu0 %v5766_v51 }
0x16db   :  { %2485 = vmatpush1.msra.mxu0 %v5772_v50 }
0x16dc   :  { %2486 = vmatprep.subr.mxu0 %v5783_v53 }
0x16dd   :  { %2487 = vmatpush1.msra.mxu0 %v5789_v54 }
0x16de   :  { %2488 = vmatprep.subr.mxu0 %v5795_v4 }
0x16df   :  { %2489 = vmatpush1.msra.mxu0 %v5801_v5 }
0x16e0   :  { %2490 = vmatprep.subr.mxu0 %v5812_v15 }
0x16e1   :  { %2491 = vmatpush1.msra.mxu0 %v5818_v16 }
0x16e2   :  { %2492 = vmatprep.subr.mxu0 %v5824_v18 }
0x16e3   :  { %2493 = vmatpush1.msra.mxu0 %v5830_v20 }
0x16e4   :  { %2494 = vmatprep.subr.mxu0 %v5841_v24 }
0x16e5   :  { %2495 = vmatpush1.msra.mxu0 %v5847_v61 }
0x16e6   :  { %2496 = vmatprep.subr.mxu0 %v5853_v33 }
0x16e7   :  { %2497 = vmatpush1.msra.mxu0 %v5859_v35 }
0x16e8   :  { %2498 = vmatprep.subr.mxu0 %v5870_v3 }
0x16e9   :  { %2499 = vmatpush1.msra.mxu0 %v5876_v28 }
0x16ea   :  { %4032 = vmatprep.subr.mxu0 %v6398_v0 }
0x178a   :  { %v2259_v47 = vpop.f32.mrf.mxu1  ;;  %v2330_v32 = vpop.f32.mrf.mxu0 }
0x178b   :  { %v2260_v29 = vadd.f32 %v6009_v62, %v2259_v47  ;;  %2336 = vperm.xlu0 %4072, %v2330_v32  }
0x178c   :  { %v3998_v1 = vpop.f32.mrf.mxu1  ;;  %v4009_v38 = vpop.f32.mrf.mxu0 }
0x178d   :  { %2263 = vst [vmem:[%s6322_s13] sm:$0xff] %v2260_v29 }
0x1806   :  { %v2337_v30 = vpop.permute.xlu0 %2336 }
0x1807   :  { %v2339_v13 = vadd.f32 %v2337_v30, %v5650_v17 }
0x1809   :  { %v2340_v8 = vmax.f32 %v2339_v13, 0.0 }
0x180b   :  { %v2341_v45 = vsel %vm1924_vm10, %v2340_v8, -inf }
0x180c   :  { %2342 = vmax.xlane.f32.xlu1 %v2341_v45 }
0x1895   :  { %v2343_v40 = vpop.xlane.xlu1 %2342 }
0x1896   :  { %v2344_v56 = vsub.f32 %v2340_v8, %v2343_v40 }
0x1898   :  { %v2345_v44 = vmul.f32 1.442695, %v2344_v56 }
0x189a   :  { %4167 = vpow2.f32 %v2345_v44 }
0x18a7   :  { %v4168_v28 = vpop.eup %4167 }
0x18a8   :  { %v2347_v47 = vsel %vm1924_vm10, %v4168_v28, 0.0 }
0x18a9   :  { %2348 = vadd.xlane.f32.xlu0 %v2347_v47 }
0x1932   :  { %v2349_v32 = vpop.xlane.xlu0 %2348 }
0x1933   :  { %4169 = vrcp.f32 %v2349_v32 }
0x1940   :  { %v4170_v1 = vpop.eup %4169 }
0x1941   :  { %v2351_v38 = vmul.f32 %v4170_v1, %v4168_v28 }
0x1943   :  { %2352 = vxpose.xlu0.b32.start.end [1/1] (short) (narrow) %v2351_v38, 8 }
0x196c   :  { %2463 = vrot.lane.b32.xlu0 %v5957_v23, %s4281_s23 }
0x19bf   :  { %v2368_v29 = vpop.trf.xlu0 }
0x19c0   :  { %v2387_v30 = vrot.slane %v2368_v29, %v6439_v39  ;;  %v2394_v13 = vrot.slane %v2368_v29, %v6440_v57  ;;  %v2401_v8 = vrot.slane %v2368_v29, %v6441_v49  ;;  %v2408_v45 = vrot.slane %v2368_v29, %v5777_v60 }
0x19c1   :  { %v2415_v40 = vrot.slane %v2368_v29, %v5692_v7  ;;  %v2422_v28 = vrot.slane %v2368_v29, %v5806_v14  ;;  %v2429_v56 = vrot.slane %v2368_v29, %v5835_v22  ;;  %v2436_v44 = vrot.slane %v2368_v29, %v5864_v27 }
0x19c2   :  { %2389 = vbcast.lane.b32.xlu1 %v2387_v30, 256 }
0x19c6   :  { %2396 = vbcast.lane.b32.xlu1 %v2394_v13, 256  ;;  %v6450_v13 = vld [vmem:[#allocation3_spill] sm:$0xff] }
0x19ca   :  { %2403 = vbcast.lane.b32.xlu1 %v2401_v8, 256 }
0x19ce   :  { %2410 = vbcast.lane.b32.xlu1 %v2408_v45, 256  ;;  %v6451_v45 = vld [vmem:[#allocation5_spill] sm:$0xff] }
0x19d2   :  { %2417 = vbcast.lane.b32.xlu1 %v2415_v40, 256 }
0x19d6   :  { %2424 = vbcast.lane.b32.xlu1 %v2422_v28, 256 }
0x19da   :  { %2431 = vbcast.lane.b32.xlu1 %v2429_v56, 256 }
0x19de   :  { %2438 = vbcast.lane.b32.xlu1 %v2436_v44, 256 }
0x1a34   :  { %v2390_v47 = vpop.permute.xlu1 %2389 }
0x1a35   :  { %v2440_v8 = vmul.f32 %v2390_v47, %v6450_v13 }
0x1a37   :  { %v2448_v56 = vsel %vm139_vm1, %v2440_v8, 0.0 }
0x1a38   :  { %v2397_v32 = vpop.permute.xlu1 %2396 }
0x1a39   :  { %v2441_v30 = vmul.f32 %v2397_v32, %v5564_v63 }
0x1a3b   :  { %v2449_v14 = vsel %vm139_vm1, %v2441_v30, 0.0 }
0x1a3c   :  { %v2404_v1 = vpop.permute.xlu1 %2403  ;;  %v2450_v27 = vadd.f32 %v2449_v14, %v2448_v56  ;;  %v6452_v14 = vld [vmem:[#allocation13_spill] sm:$0xff] }
0x1a3d   :  { %v2442_v7 = vmul.f32 %v2404_v1, %v6451_v45 }
0x1a3f   :  { %v2451_v29 = vsel %vm139_vm1, %v2442_v7, 0.0 }
0x1a40   :  { %v2411_v38 = vpop.permute.xlu1 %2410  ;;  %v2452_v47 = vadd.f32 %v2451_v29, %v2450_v27  ;;  %v2464_v27 = vpop.permute.xlu0 %2463  ;;  %v6453_v29 = vld [vmem:[#allocation19_spill] sm:$0xff] }
0x1a41   :  { %v2443_v28 = vmul.f32 %v2411_v38, %v5583_v10 }
0x1a43   :  { %v2453_v60 = vsel %vm139_vm1, %v2443_v28, 0.0 }
0x1a44   :  { %v2418_v40 = vpop.permute.xlu1 %2417  ;;  %v2454_v45 = vadd.f32 %v2453_v60, %v2452_v47 }
0x1a45   :  { %v2444_v44 = vmul.f32 %v2418_v40, %v5586_v12 }
0x1a47   :  { %v2455_v1 = vsel %vm139_vm1, %v2444_v44, 0.0 }
0x1a48   :  { %v2425_v22 = vpop.permute.xlu1 %2424  ;;  %v2456_v8 = vadd.f32 %v2455_v1, %v2454_v45 }
0x1a49   :  { %v2445_v32 = vmul.f32 %v2425_v22, %v5595_v19 }
0x1a4b   :  { %v2457_v30 = vsel %vm139_vm1, %v2445_v32, 0.0  ;;  %v6455_v32 = vld [vmem:[#allocation21_spill] sm:$0xff] }
0x1a4c   :  { %v2432_v13 = vpop.permute.xlu1 %2431  ;;  %v2458_v10 = vadd.f32 %v2457_v30, %v2456_v8 }
0x1a4d   :  { %v2446_v38 = vmul.f32 %v2432_v13, %v5580_v9 }
0x1a4f   :  { %v2459_v7 = vsel %vm139_vm1, %v2446_v38, 0.0 }
0x1a50   :  { %v2439_v40 = vpop.permute.xlu1 %2438  ;;  %v2460_v12 = vadd.f32 %v2459_v7, %v2458_v10 }
0x1a51   :  { %v2447_v56 = vmul.f32 %v2439_v40, %v6452_v14 }
0x1a53   :  { %v2461_v28 = vsel %vm139_vm1, %v2447_v56, 0.0 }
0x1a54   :  { %v2462_v22 = vadd.f32 %v2461_v28, %v2460_v12  ;;  %v6454_v12 = vld [vmem:[#allocation20_spill] sm:$0xff] }
0x1a56   :  { %v2466_v60 = vsel %vm139_vm1, %v2462_v22, %v6453_v29 }
0x1a57   :  { %v2467_v44 = vsel %vm2055_vm11, %v2466_v60, %v2464_v27 }
0x1a58   :  { %2533 = vmatmul.mubr.f32.vlgmr.msra.gmra.mxu0 %v2467_v44 }
0x1a59   :  { %4033 = vmatpush3.msra.mxu0 %v5931_v6  ;;  %4040 = vmatprep.mubr.msk.f32.mxu0 %vm4280_vm0, %v6398_v0 }
0x1a5a   :  { %4034 = vmatprep.subr.mxu0 %v6398_v0 }
0x1a5b   :  { %4035 = vmatpush3.msra.mxu0 %v5936_v21 }
0x1a5c   :  { %4036 = vmatprep.subr.mxu0 %v6398_v0 }
0x1a5d   :  { %4037 = vmatpush3.msra.mxu0 %v5943_v43 }
0x1a5e   :  { %4038 = vmatprep.subr.mxu0 %v6398_v0 }
0x1a5f   :  { %4039 = vmatpush3.msra.mxu0 %v5950_v31 }
0x1a60   :  { %4043 = vmatprep.subr.mxu0 %v6398_v0 }
0x1b18   :  { %v2534_v10 = vpop.f32.mrf.mxu0 }
0x1b19   :  { %v2535_v13 = vadd.f32 %v2534_v10, %v6454_v12 }
0x1b1a   :  { %v2536_v45 = vpop.f32.mrf.mxu0 }
0x1b1b   :  { %2540 = vrot.lane.b32.xlu1 %v2535_v13, %s4283_s4  ;;  %v2537_v47 = vadd.f32 %v2536_v45, %v6455_v32 }
0x1b1f   :  { %2561 = vrot.lane.b32.xlu1 %v2537_v47, %s4284_s19 }
0x1b8d   :  { %v2541_v1 = vpop.permute.xlu1 %2540 }
0x1b8e   :  { %v2543_v30 = vadd.f32 %v2541_v1, %v2535_v13 }
0x1b90   :  { %v3479_v38 = vmul.f32 -1.442695, %v2543_v30 }
0x1b91   :  { %v2562_v56 = vpop.permute.xlu1 %2561 }
0x1b92   :  { %4171 = vpow2.f32 %v3479_v38 }
0x1b9f   :  { %v4172_v8 = vpop.eup %4171 }
0x1ba0   :  { %v2547_v7 = vadd.f32 1.0, %v4172_v8 }
0x1ba2   :  { %4173 = vrcp.f32 %v2547_v7 }
0x1baf   :  { %v4174_v40 = vpop.eup %4173 }
0x1bb0   :  { %v2564_v28 = vmul.f32 %v4174_v40, %v2562_v56 }
0x1bb2   :  { %2566 = vrot.lane.b32.xlu1 %v2564_v28, %s4281_s23 }
0x1bb6   :  { %2551 = vrot.lane.b32.xlu1 %v2537_v47, %s4283_s4 }
0x1c24   :  { %v2567_v22 = vpop.permute.xlu1 %2566 }
0x1c25   :  { %v2569_v27 = vadd.f32 %v2567_v22, %v2535_v13  ;;  %v6457_v22 = vld [vmem:[#allocation14_spill] sm:$0xff] }
0x1c27   :  { %4175 = vtanh.f32 %v2569_v27  ;;  %v6459_v27 = vld [vmem:[#allocation15_spill] sm:$0xff] }
0x1c28   :  { %v2552_v44 = vpop.permute.xlu1 %2551 }
0x1c29   :  { %v2554_v10 = vadd.f32 %v2552_v44, %v2535_v13  ;;  %v6456_v13 = vld [vmem:[#allocation12_spill] sm:$0xff] }
0x1c2b   :  { %v3480_v45 = vmul.f32 -1.442695, %v2554_v10 }
0x1c2d   :  { %4177 = vpow2.f32 %v3480_v45 }
0x1c34   :  { %v4176_v60 = vpop.eup %4175 }
0x1c35   :  { %2573 = vrot.lane.b32.xlu1 %v4176_v60, %s4284_s19  ;;  %v6460_v60 = vld [vmem:[#allocation6_spill] sm:$0xff] }
0x1c3a   :  { %v4178_v1 = vpop.eup %4177 }
0x1c3b   :  { %v2558_v30 = vadd.f32 1.0, %v4178_v1 }
0x1c3d   :  { %4179 = vrcp.f32 %v2558_v30 }
0x1c4a   :  { %v4180_v38 = vpop.eup %4179 }
0x1c4b   :  { %v2571_v8 = vsub.f32 1.0, %v4180_v38  ;;  %v2577_v40 = vmul.f32 %v4180_v38, %v5957_v23  ;;  %v6458_v23 = vld [vmem:[#allocation4_spill] sm:$0xff]  ;;  %v6462_v38 = vld [vmem:[#allocation11_spill] sm:$0xff] }
0x1ca7   :  { %v2574_v7 = vpop.permute.xlu1 %2573 }
0x1ca8   :  { %v2576_v56 = vmul.f32 %v2574_v7, %v2571_v8  ;;  %v6463_v7 = vld [vmem:[#allocation16_spill] sm:$0xff] }
0x1caa   :  { %v6065_v47 = vadd.f32 %v2577_v40, %v2576_v56  ;;  %v6464_v56 = vld [vmem:[#allocation7_spill] sm:$0xff] }
0x1cac   :  { %2580 = vrot.lane.b32.xlu1 %v6065_v47, %s4284_s19 }
0x1d1e   :  { %v2581_v28 = vpop.permute.xlu1 %2580 }
0x1d1f   :  { %4019 = vmatmul.mubr.msk.f32.vlgmr.msra.gmra.mxu1 %vm1602_vm2, %v2581_v28 }
0x1d20   :  { %4022 = vmatpush3.msra.mxu1 %v6456_v13  ;;  %4029 = vmatprep.mubr.msk.f32.mxu1 %vm4280_vm0, %v6398_v0  ;;  %v6465_v13 = vld [vmem:[#allocation8_spill] sm:$0xff] }
0x1d21   :  { %4023 = vmatprep.subr.mxu1 %v6398_v0 }
0x1d22   :  { %4024 = vmatpush3.msra.mxu1 %v6457_v22 }
0x1d23   :  { %4025 = vmatprep.subr.mxu1 %v6398_v0 }
0x1d24   :  { %4026 = vmatpush3.msra.mxu1 %v6458_v23  ;;  %v6466_v23 = vld [vmem:[#allocation17_spill] sm:$0xff] }
0x1d25   :  { %4027 = vmatprep.subr.mxu1 %v6398_v0 }
0x1d26   :  { %4028 = vmatpush3.msra.mxu1 %v6459_v27 }
0x1d27   :  { %4030 = vmatmul.mubr.msk.f32.vlgmr.msra.gmra.mxu1 %vm1602_vm2, %v2581_v28  ;;  %2860 = vmatprep.subr.mxu1 %v6460_v60 }
0x1d28   :  { %2861 = vmatpush1.msra.mxu1 %v5664_v2  ;;  %2924 = vmatprep.mubr.f32.mxu1 %v6398_v0  ;;  %v6461_v2 = vld [vmem:[#allocation18_spill] sm:$0xff] }
0x1d29   :  { %2862 = vmatprep.subr.mxu1 %v5669_v26 }
0x1d2a   :  { %2863 = vmatpush1.msra.mxu1 %v5677_v34 }
0x1d2b   :  { %2864 = vmatprep.subr.mxu1 %v5683_v48 }
0x1d2c   :  { %2865 = vmatpush1.msra.mxu1 %v5689_v46 }
0x1d2d   :  { %2866 = vmatprep.subr.mxu1 %v5698_v25 }
0x1d2e   :  { %2867 = vmatpush1.msra.mxu1 %v5704_v11 }
0x1d2f   :  { %2868 = vmatprep.subr.mxu1 %v5710_v36 }
0x1d30   :  { %2869 = vmatpush1.msra.mxu1 %v5718_v37 }
0x1d31   :  { %2870 = vmatprep.subr.mxu1 %v5728_v41 }
0x1d32   :  { %2871 = vmatpush1.msra.mxu1 %v5734_v42 }
0x1d33   :  { %2872 = vmatprep.subr.mxu1 %v5739_v59 }
0x1d34   :  { %2873 = vmatpush1.msra.mxu1 %v5745_v55 }
0x1d35   :  { %2874 = vmatprep.subr.mxu1 %v5753_v52 }
0x1d36   :  { %2875 = vmatpush1.msra.mxu1 %v5759_v58 }
0x1d37   :  { %2876 = vmatprep.subr.mxu1 %v5766_v51 }
0x1d38   :  { %2877 = vmatpush1.msra.mxu1 %v5772_v50 }
0x1d39   :  { %2878 = vmatprep.subr.mxu1 %v5783_v53 }
0x1d3a   :  { %2879 = vmatpush1.msra.mxu1 %v5789_v54 }
0x1d3b   :  { %2880 = vmatprep.subr.mxu1 %v5795_v4 }
0x1d3c   :  { %2881 = vmatpush1.msra.mxu1 %v5801_v5 }
0x1d3d   :  { %2882 = vmatprep.subr.mxu1 %v5812_v15 }
0x1d3e   :  { %2883 = vmatpush1.msra.mxu1 %v5818_v16 }
0x1d3f   :  { %2884 = vmatprep.subr.mxu1 %v5824_v18 }
0x1d40   :  { %2885 = vmatpush1.msra.mxu1 %v5830_v20 }
0x1d41   :  { %2886 = vmatprep.subr.mxu1 %v5841_v24 }
0x1d42   :  { %2887 = vmatpush1.msra.mxu1 %v5847_v61 }
0x1d43   :  { %2888 = vmatprep.subr.mxu1 %v5853_v33 }
0x1d44   :  { %2889 = vmatpush1.msra.mxu1 %v5859_v35 }
0x1d45   :  { %2890 = vmatprep.subr.mxu1 %v5870_v3 }
0x1d46   :  { %2891 = vmatpush1.msra.mxu1 %v6461_v2 }
0x1d47   :  { %4054 = vmatprep.subr.mxu1 %v6398_v0 }
0x1ddf   :  { %v2650_v26 = vpop.f32.mrf.mxu1 }
0x1de0   :  { %v2651_v34 = vadd.f32 %v6009_v62, %v2650_v26 }
0x1de1   :  { %v4020_v48 = vpop.f32.mrf.mxu1 }
0x1de2   :  { %3482 = vst [vmem:[%s6322_s13 + $0x8] sm:$0xff] %v2651_v34 }
0x1de7   :  { %v2722_v46 = vpop.f32.mrf.mxu1 }
0x1de8   :  { %2728 = vperm.xlu1 %4071, %v2722_v46  }
0x1de9   :  { %v4031_v25 = vpop.f32.mrf.mxu1 }
0x1dea   :  { %v6467_v25 = vld [vmem:[#allocation3_spill] sm:$0xff] }
0x1e63   :  { %v2729_v11 = vpop.permute.xlu1 %2728 }
0x1e64   :  { %v2731_v36 = vadd.f32 %v2729_v11, %v5650_v17 }
0x1e66   :  { %v2732_v37 = vmax.f32 %v2731_v36, 0.0  ;;  %v6468_v36 = vld [vmem:[#allocation5_spill] sm:$0xff] }
0x1e68   :  { %v2733_v41 = vsel %vm1924_vm10, %v2732_v37, -inf }
0x1e69   :  { %2734 = vmax.xlane.f32.xlu1 %v2733_v41 }
0x1ef2   :  { %v2735_v42 = vpop.xlane.xlu1 %2734 }
0x1ef3   :  { %v2736_v59 = vsub.f32 %v2732_v37, %v2735_v42 }
0x1ef5   :  { %v2737_v55 = vmul.f32 1.442695, %v2736_v59  ;;  %v6469_v59 = vld [vmem:[#allocation10_spill] sm:$0xff] }
0x1ef7   :  { %4181 = vpow2.f32 %v2737_v55 }
0x1f04   :  { %v4182_v52 = vpop.eup %4181 }
0x1f05   :  { %v2739_v58 = vsel %vm1924_vm10, %v4182_v52, 0.0 }
0x1f06   :  { %2740 = vadd.xlane.f32.xlu0 %v2739_v58 }
0x1f8f   :  { %v2741_v51 = vpop.xlane.xlu0 %2740 }
0x1f90   :  { %4183 = vrcp.f32 %v2741_v51  ;;  %v6470_v51 = vld [vmem:[#allocation9_spill] sm:$0xff] }
0x1f9d   :  { %v4184_v50 = vpop.eup %4183 }
0x1f9e   :  { %v2743_v44 = vmul.f32 %v4184_v50, %v4182_v52 }
0x1fa0   :  { %2744 = vxpose.xlu1.b32.start.end [1/1] (short) (narrow) %v2743_v44, 8 }
0x1fbe   :  { %2855 = vrot.lane.b32.xlu1 %v6065_v47, %s4281_s23 }
0x201c   :  { %v2760_v10 = vpop.trf.xlu1 }
0x201d   :  { %v2779_v45 = vrot.slane %v2760_v10, %v6439_v39  ;;  %v2786_v1 = vrot.slane %v2760_v10, %v6440_v57  ;;  %v2793_v30 = vrot.slane %v2760_v10, %v6441_v49  ;;  %v2800_v8 = vrot.slane %v2760_v10, %v6462_v38 }
0x201e   :  { %v2807_v40 = vrot.slane %v2760_v10, %v6463_v7  ;;  %v2814_v28 = vrot.slane %v2760_v10, %v6464_v56  ;;  %v2821_v22 = vrot.slane %v2760_v10, %v6465_v13  ;;  %v2828_v27 = vrot.slane %v2760_v10, %v6466_v23 }
0x201f   :  { %2781 = vbcast.lane.b32.xlu0 %v2779_v45, 256 }
0x2023   :  { %2788 = vbcast.lane.b32.xlu0 %v2786_v1, 256 }
0x2027   :  { %2795 = vbcast.lane.b32.xlu0 %v2793_v30, 256 }
0x202b   :  { %2802 = vbcast.lane.b32.xlu0 %v2800_v8, 256 }
0x202f   :  { %2809 = vbcast.lane.b32.xlu0 %v2807_v40, 256 }
0x2033   :  { %2816 = vbcast.lane.b32.xlu0 %v2814_v28, 256 }
0x2037   :  { %2823 = vbcast.lane.b32.xlu0 %v2821_v22, 256 }
0x203b   :  { %2830 = vbcast.lane.b32.xlu0 %v2828_v27, 256 }
0x2091   :  { %v2782_v60 = vpop.permute.xlu0 %2781 }
0x2092   :  { %v2832_v11 = vmul.f32 %v2782_v60, %v6467_v25 }
0x2094   :  { %v2840_v52 = vsel %vm139_vm1, %v2832_v11, 0.0 }
0x2095   :  { %v2789_v26 = vpop.permute.xlu0 %2788 }
0x2096   :  { %v2833_v46 = vmul.f32 %v2789_v26, %v5564_v63 }
0x2098   :  { %v2841_v42 = vsel %vm139_vm1, %v2833_v46, 0.0 }
0x2099   :  { %v2796_v34 = vpop.permute.xlu0 %2795  ;;  %v2842_v44 = vadd.f32 %v2841_v42, %v2840_v52  ;;  %v2856_v42 = vpop.permute.xlu1 %2855 }
0x209a   :  { %v2834_v37 = vmul.f32 %v2796_v34, %v6468_v36 }
0x209c   :  { %v2843_v58 = vsel %vm139_vm1, %v2834_v37, 0.0 }
0x209d   :  { %v2803_v48 = vpop.permute.xlu0 %2802  ;;  %v2844_v30 = vadd.f32 %v2843_v58, %v2842_v44 }
0x209e   :  { %v2835_v55 = vmul.f32 %v2803_v48, %v6469_v59 }
0x20a0   :  { %v2845_v45 = vsel %vm139_vm1, %v2835_v55, 0.0 }
0x20a1   :  { %v2810_v41 = vpop.permute.xlu0 %2809  ;;  %v2846_v40 = vadd.f32 %v2845_v45, %v2844_v30 }
0x20a2   :  { %v2836_v50 = vmul.f32 %v2810_v41, %v6470_v51 }
0x20a4   :  { %v2847_v8 = vsel %vm139_vm1, %v2836_v50, 0.0 }
0x20a5   :  { %v2817_v10 = vpop.permute.xlu0 %2816  ;;  %v2848_v60 = vadd.f32 %v2847_v8, %v2846_v40 }
0x20a6   :  { %v2837_v1 = vmul.f32 %v2817_v10, %v5595_v19 }
0x20a8   :  { %v2849_v22 = vsel %vm139_vm1, %v2837_v1, 0.0 }
0x20a9   :  { %v2824_v28 = vpop.permute.xlu0 %2823  ;;  %v2850_v34 = vadd.f32 %v2849_v22, %v2848_v60 }
0x20aa   :  { %v2838_v27 = vmul.f32 %v2824_v28, %v5580_v9 }
0x20ac   :  { %v2851_v26 = vsel %vm139_vm1, %v2838_v27, 0.0 }
0x20ad   :  { %v2831_v48 = vpop.permute.xlu0 %2830  ;;  %v2852_v11 = vadd.f32 %v2851_v26, %v2850_v34 }
0x20ae   :  { %v2839_v46 = vmul.f32 %v2831_v48, %v6452_v14 }
0x20b0   :  { %v2853_v37 = vsel %vm139_vm1, %v2839_v46, 0.0 }
0x20b1   :  { %v2854_v41 = vadd.f32 %v2853_v37, %v2852_v11 }
0x20b3   :  { %v2858_v55 = vsel %vm139_vm1, %v2854_v41, %v6453_v29 }
0x20b4   :  { %v2859_v52 = vsel %vm2055_vm11, %v2858_v55, %v2856_v42 }
0x20b5   :  { %2925 = vmatmul.mubr.f32.vlgmr.msra.gmra.mxu1 %v2859_v52 }
0x20b6   :  { %4055 = vmatpush3.msra.mxu1 %v5931_v6  ;;  %4062 = vmatprep.mubr.msk.f32.mxu1 %vm4280_vm0, %v6398_v0 }
0x20b7   :  { %4056 = vmatprep.subr.mxu1 %v6398_v0 }
0x20b8   :  { %4057 = vmatpush3.msra.mxu1 %v5936_v21 }
0x20b9   :  { %4058 = vmatprep.subr.mxu1 %v6398_v0 }
0x20ba   :  { %4059 = vmatpush3.msra.mxu1 %v5943_v43 }
0x20bb   :  { %4060 = vmatprep.subr.mxu1 %v6398_v0 }
0x20bc   :  { %4061 = vmatpush3.msra.mxu1 %v5950_v31 }
0x2175   :  { %v2926_v58 = vpop.f32.mrf.mxu1 }
0x2176   :  { %v2927_v50 = vadd.f32 %v2926_v58, %v6454_v12  ;;  %v4257_v58 = vld [vmem:[%s6315_s6 + $0x18] sm:$0xff] }
0x2177   :  { %v2928_v44 = vpop.f32.mrf.mxu1 }
0x2178   :  { %2932 = vrot.lane.b32.xlu0 %v2927_v50, %s4283_s4  ;;  %v2929_v6 = vadd.f32 %v2928_v44, %v6455_v32  ;;  %v4260_v44 = vld [vmem:[%s6315_s6] sm:$0xff] }
0x217c   :  { %2953 = vrot.lane.b32.xlu0 %v2929_v6, %s4284_s19 }
0x21ea   :  { %v2933_v10 = vpop.permute.xlu0 %2932 }
0x21eb   :  { %v2935_v21 = vadd.f32 %v2933_v10, %v2927_v50  ;;  %v4262_v10 = vld [vmem:[%s6317_s9 + $0xf0] sm:$0xff] }
0x21ed   :  { %v3484_v45 = vmul.f32 -1.442695, %v2935_v21  ;;  %v4263_v21 = vld [vmem:[%s6317_s9 + $0xe8] sm:$0xff] }
0x21ee   :  { %v2954_v8 = vpop.permute.xlu0 %2953 }
0x21ef   :  { %4185 = vpow2.f32 %v3484_v45  ;;  %v4264_v45 = vld [vmem:[%s6317_s9 + $0xe0] sm:$0xff] }
0x21fc   :  { %v4186_v1 = vpop.eup %4185 }
0x21fd   :  { %v2939_v43 = vadd.f32 1.0, %v4186_v1  ;;  %v4265_v1 = vld [vmem:[%s6317_s9 + $0xd8] sm:$0xff] }
0x21ff   :  { %4187 = vrcp.f32 %v2939_v43  ;;  %v4266_v43 = vld [vmem:[%s6317_s9 + $0xd0] sm:$0xff] }
0x220c   :  { %v4188_v30 = vpop.eup %4187 }
0x220d   :  { %v2956_v31 = vmul.f32 %v4188_v30, %v2954_v8  ;;  %v4268_v30 = vld [vmem:[%s6317_s9 + $0xc0] sm:$0xff]  ;;  %v4269_v8 = vld [vmem:[%s6317_s9 + $0xb8] sm:$0xff] }
0x220f   :  { %2958 = vrot.lane.b32.xlu0 %v2956_v31, %s4281_s23  ;;  %v4270_v31 = vld [vmem:[%s6317_s9 + $0xb0] sm:$0xff] }
0x2213   :  { %2943 = vrot.lane.b32.xlu0 %v2929_v6, %s4283_s4  ;;  %v4261_v6 = vld [vmem:[%s6317_s9 + $0xf8] sm:$0xff] }
0x2281   :  { %v2959_v40 = vpop.permute.xlu0 %2958 }
0x2282   :  { %v2961_v28 = vadd.f32 %v2959_v40, %v2927_v50  ;;  %v4271_v40 = vld [vmem:[%s6317_s9 + $0xa8] sm:$0xff] }
0x2284   :  { %4189 = vtanh.f32 %v2961_v28  ;;  %v4272_v28 = vld [vmem:[%s6317_s9 + $0xa0] sm:$0xff] }
0x2285   :  { %v2944_v27 = vpop.permute.xlu0 %2943 }
0x2286   :  { %v2946_v60 = vadd.f32 %v2944_v27, %v2927_v50  ;;  %v4259_v50 = vld [vmem:[%s6315_s6 + $0x8] sm:$0xff]  ;;  %v4274_v27 = vld [vmem:[%s6317_s9 + $0x90] sm:$0xff] }
0x2288   :  { %v3485_v26 = vmul.f32 -1.442695, %v2946_v60  ;;  %v4275_v60 = vld [vmem:[%s6317_s9 + $0x88] sm:$0xff] }
0x228a   :  { %4191 = vpow2.f32 %v3485_v26  ;;  %v4276_v26 = vld [vmem:[%s6317_s9 + $0x80] sm:$0xff] }
0x2291   :  { %v4190_v22 = vpop.eup %4189 }
0x2292   :  { %2965 = vrot.lane.b32.xlu0 %v4190_v22, %s4284_s19  ;;  %v4273_v22 = vld [vmem:[%s6317_s9 + $0x98] sm:$0xff] }
0x2297   :  { %v4192_v34 = vpop.eup %4191 }
0x2298   :  { %v2950_v48 = vadd.f32 1.0, %v4192_v34  ;;  %v4277_v34 = vld [vmem:[%s6317_s9 + $0x78] sm:$0xff] }
0x229a   :  { %4193 = vrcp.f32 %v2950_v48  ;;  %v4278_v48 = vld [vmem:[%s6317_s9 + $0x70] sm:$0xff] }
0x22a7   :  { %v4194_v46 = vpop.eup %4193 }
0x22a8   :  { %v2963_v11 = vsub.f32 1.0, %v4194_v46  ;;  %v2969_v41 = vmul.f32 %v4194_v46, %v6065_v47  ;;  %v4258_v47 = vld [vmem:[%s6315_s6 + $0x10] sm:$0xff] }
0x2304   :  { %v2966_v37 = vpop.permute.xlu0 %2965 }
0x2305   :  { %v2968_v42 = vmul.f32 %v2966_v37, %v2963_v11 }
0x2307   :  { %v6167_v55 = vadd.f32 %v2969_v41, %v2968_v42 }
0x2309   :  { %2972 = vrot.lane.b32.xlu0 %v6167_v55, %s4284_s19 }
0x237b   :  { %v2973_v52 = vpop.permute.xlu0 %2972 }
0x237c   :  { %4041 = vmatmul.mubr.msk.f32.vlgmr.msra.gmra.mxu0 %vm1602_vm2, %v2973_v52 }
0x237d   :  { %4044 = vmatpush3.msra.mxu0 %v4257_v58  ;;  %4051 = vmatprep.mubr.msk.f32.mxu0 %vm4280_vm0, %v6398_v0 }
0x237e   :  { %4045 = vmatprep.subr.mxu0 %v6398_v0 }
0x237f   :  { %4046 = vmatpush3.msra.mxu0 %v4258_v47 }
0x2380   :  { %4047 = vmatprep.subr.mxu0 %v6398_v0 }
0x2381   :  { %4048 = vmatpush3.msra.mxu0 %v4259_v50 }
0x2382   :  { %4049 = vmatprep.subr.mxu0 %v6398_v0 }
0x2383   :  { %4050 = vmatpush3.msra.mxu0 %v4260_v44 }
0x2384   :  { %4052 = vmatmul.mubr.msk.f32.vlgmr.msra.gmra.mxu0 %vm1602_vm2, %v2973_v52  ;;  %3252 = vmatprep.subr.mxu0 %v4261_v6 }
0x2385   :  { %3253 = vmatpush1.msra.mxu0 %v4262_v10  ;;  %3316 = vmatprep.mubr.f32.mxu0 %v6398_v0  ;;  %v4267_v0 = vld [vmem:[%s6317_s9 + $0xc8] sm:$0xff] }
0x2386   :  { %3254 = vmatprep.subr.mxu0 %v4263_v21 }
0x2387   :  { %3255 = vmatpush1.msra.mxu0 %v4264_v45 }
0x2388   :  { %3256 = vmatprep.subr.mxu0 %v4265_v1 }
0x2389   :  { %3257 = vmatpush1.msra.mxu0 %v4266_v43 }
0x238a   :  { %3258 = vmatprep.subr.mxu0 %v4267_v0 }
0x238b   :  { %3259 = vmatpush1.msra.mxu0 %v4268_v30 }
0x238c   :  { %3260 = vmatprep.subr.mxu0 %v4269_v8 }
0x238d   :  { %3261 = vmatpush1.msra.mxu0 %v4270_v31 }
0x238e   :  { %3262 = vmatprep.subr.mxu0 %v4271_v40 }
0x238f   :  { %3263 = vmatpush1.msra.mxu0 %v4272_v28 }
0x2390   :  { %3264 = vmatprep.subr.mxu0 %v4273_v22 }
0x2391   :  { %3265 = vmatpush1.msra.mxu0 %v4274_v27 }
0x2392   :  { %3266 = vmatprep.subr.mxu0 %v4275_v60 }
0x2393   :  { %3267 = vmatpush1.msra.mxu0 %v4276_v26 }
0x2394   :  { %3268 = vmatprep.subr.mxu0 %v4277_v34 }
0x2395   :  { %3269 = vmatpush1.msra.mxu0 %v4278_v48 }
0x2396   :  { %3270 = vmatprep.subr.mxu0 %v5783_v53 }
0x2397   :  { %3271 = vmatpush1.msra.mxu0 %v5789_v54 }
0x2398   :  { %3272 = vmatprep.subr.mxu0 %v5795_v4 }
0x2399   :  { %3273 = vmatpush1.msra.mxu0 %v5801_v5 }
0x239a   :  { %3274 = vmatprep.subr.mxu0 %v5812_v15 }
0x239b   :  { %3275 = vmatpush1.msra.mxu0 %v5818_v16 }
0x239c   :  { %3276 = vmatprep.subr.mxu0 %v5824_v18 }
0x239d   :  { %3277 = vmatpush1.msra.mxu0 %v5830_v20 }
0x239e   :  { %3278 = vmatprep.subr.mxu0 %v5841_v24 }
0x239f   :  { %3279 = vmatpush1.msra.mxu0 %v5847_v61 }
0x23a0   :  { %3280 = vmatprep.subr.mxu0 %v5853_v33 }
0x23a1   :  { %3281 = vmatpush1.msra.mxu0 %v5859_v35 }
0x23a2   :  { %3282 = vmatprep.subr.mxu0 %v5870_v3 }
0x23a3   :  { %3283 = vmatpush1.msra.mxu0 %v6461_v2 }
0x243c   :  { %v3042_v53 = vpop.f32.mrf.mxu0 }
0x243d   :  { %v3043_v54 = vadd.f32 %v6009_v62, %v3042_v53 }
0x243e   :  { %v4042_v4 = vpop.f32.mrf.mxu0 }
0x243f   :  { %3487 = vst [vmem:[%s6322_s13 + $0x10] sm:$0xff] %v3043_v54 }
0x2444   :  { %v3114_v5 = vpop.f32.mrf.mxu0 }
0x2445   :  { %3120 = vperm.xlu0 %4072, %v3114_v5  }
0x2446   :  { %v4053_v15 = vpop.f32.mrf.mxu0 }
0x24c0   :  { %v3121_v16 = vpop.permute.xlu0 %3120 }
0x24c1   :  { %v3123_v18 = vadd.f32 %v3121_v16, %v5650_v17 }
0x24c3   :  { %v3124_v20 = vmax.f32 %v3123_v18, 0.0 }
0x24c5   :  { %v3125_v24 = vsel %vm1924_vm10, %v3124_v20, -inf }
0x24c6   :  { %3126 = vmax.xlane.f32.xlu1 %v3125_v24 }
0x254f   :  { %v3127_v61 = vpop.xlane.xlu1 %3126 }
0x2550   :  { %v3128_v33 = vsub.f32 %v3124_v20, %v3127_v61 }
0x2552   :  { %v3129_v35 = vmul.f32 1.442695, %v3128_v33 }
0x2554   :  { %4195 = vpow2.f32 %v3129_v35 }
0x2561   :  { %v4196_v3 = vpop.eup %4195 }
0x2562   :  { %v3131_v2 = vsel %vm1924_vm10, %v4196_v3, 0.0 }
0x2563   :  { %3132 = vadd.xlane.f32.xlu0 %v3131_v2 }
0x25ec   :  { %v3133_v46 = vpop.xlane.xlu0 %3132 }
0x25ed   :  { %4197 = vrcp.f32 %v3133_v46 }
0x25fa   :  { %v4198_v11 = vpop.eup %4197 }
0x25fb   :  { %v3135_v37 = vmul.f32 %v4198_v11, %v4196_v3 }
0x25fd   :  { %3136 = vxpose.xlu0.b32.start.end [1/1] (short) (narrow) %v3135_v37, 8 }
0x2626   :  { %3247 = vrot.lane.b32.xlu0 %v6167_v55, %s4281_s23 }
0x2679   :  { %v3152_v17 = vpop.trf.xlu0 }
0x267a   :  { %v3171_v41 = vrot.slane %v3152_v17, %v6439_v39  ;;  %v3178_v42 = vrot.slane %v3152_v17, %v6440_v57  ;;  %v3185_v52 = vrot.slane %v3152_v17, %v6441_v49  ;;  %v3192_v58 = vrot.slane %v3152_v17, %v6462_v38 }
0x267b   :  { %v3199_v47 = vrot.slane %v3152_v17, %v6463_v7  ;;  %v3206_v50 = vrot.slane %v3152_v17, %v6464_v56  ;;  %v3213_v44 = vrot.slane %v3152_v17, %v6465_v13  ;;  %v3220_v39 = vrot.slane %v3152_v17, %v6466_v23 }
0x267c   :  { %3173 = vbcast.lane.b32.xlu1 %v3171_v41, 256 }
0x2680   :  { %3180 = vbcast.lane.b32.xlu1 %v3178_v42, 256 }
0x2684   :  { %3187 = vbcast.lane.b32.xlu1 %v3185_v52, 256 }
0x2688   :  { %3194 = vbcast.lane.b32.xlu1 %v3192_v58, 256 }
0x268c   :  { %3201 = vbcast.lane.b32.xlu1 %v3199_v47, 256 }
0x2690   :  { %3208 = vbcast.lane.b32.xlu1 %v3206_v50, 256 }
0x2694   :  { %3215 = vbcast.lane.b32.xlu1 %v3213_v44, 256 }
0x2698   :  { %3222 = vbcast.lane.b32.xlu1 %v3220_v39, 256  ;;  %v3248_v53 = vpop.permute.xlu0 %3247 }
0x26ee   :  { %v3174_v57 = vpop.permute.xlu1 %3173 }
0x26ef   :  { %v3224_v38 = vmul.f32 %v3174_v57, %v6467_v25 }
0x26f1   :  { %v3232_v13 = vsel %vm139_vm1, %v3224_v38, 0.0 }
0x26f2   :  { %v3181_v6 = vpop.permute.xlu1 %3180 }
0x26f3   :  { %v3225_v21 = vmul.f32 %v3181_v6, %v5564_v63 }
0x26f5   :  { %v3233_v56 = vsel %vm139_vm1, %v3225_v21, 0.0 }
0x26f6   :  { %v3188_v10 = vpop.permute.xlu1 %3187  ;;  %v3234_v0 = vadd.f32 %v3233_v56, %v3232_v13 }
0x26f7   :  { %v3226_v7 = vmul.f32 %v3188_v10, %v6468_v36 }
0x26f9   :  { %v3235_v23 = vsel %vm139_vm1, %v3226_v7, 0.0 }
0x26fa   :  { %v3195_v49 = vpop.permute.xlu1 %3194  ;;  %v3236_v25 = vadd.f32 %v3235_v23, %v3234_v0 }
0x26fb   :  { %v3227_v1 = vmul.f32 %v3195_v49, %v6469_v59 }
0x26fd   :  { %v3237_v8 = vsel %vm139_vm1, %v3227_v1, 0.0 }
0x26fe   :  { %v3202_v45 = vpop.permute.xlu1 %3201  ;;  %v3238_v31 = vadd.f32 %v3237_v8, %v3236_v25 }
0x26ff   :  { %v3228_v43 = vmul.f32 %v3202_v45, %v6470_v51 }
0x2701   :  { %v3239_v36 = vsel %vm139_vm1, %v3228_v43, 0.0 }
0x2702   :  { %v3209_v30 = vpop.permute.xlu1 %3208  ;;  %v3240_v22 = vadd.f32 %v3239_v36, %v3238_v31 }
0x2703   :  { %v3229_v63 = vmul.f32 %v3209_v30, %v5595_v19 }
0x2705   :  { %v3241_v28 = vsel %vm139_vm1, %v3229_v63, 0.0 }
0x2706   :  { %v3216_v40 = vpop.permute.xlu1 %3215  ;;  %v3242_v60 = vadd.f32 %v3241_v28, %v3240_v22 }
0x2707   :  { %v3230_v59 = vmul.f32 %v3216_v40, %v5580_v9 }
0x2709   :  { %v3243_v27 = vsel %vm139_vm1, %v3230_v59, 0.0 }
0x270a   :  { %v3223_v51 = vpop.permute.xlu1 %3222  ;;  %v3244_v34 = vadd.f32 %v3243_v27, %v3242_v60 }
0x270b   :  { %v3231_v26 = vmul.f32 %v3223_v51, %v6452_v14 }
0x270d   :  { %v3245_v48 = vsel %vm139_vm1, %v3231_v26, 0.0 }
0x270e   :  { %v3246_v19 = vadd.f32 %v3245_v48, %v3244_v34 }
0x2710   :  { %v3250_v54 = vsel %vm139_vm1, %v3246_v19, %v6453_v29 }
0x2711   :  { %v3251_v4 = vsel %vm2055_vm11, %v3250_v54, %v3248_v53 }
0x2712   :  { %3317 = vmatmul.mubr.f32.vlgmr.msra.gmra.mxu0 %v3251_v4 }
0x27d2   :  { %v3318_v5 = vpop.f32.mrf.mxu0 }
0x27d3   :  { %v3319_v9 = vadd.f32 %v3318_v5, %v6454_v12 }
0x27d4   :  { %v3320_v15 = vpop.f32.mrf.mxu0 }
0x27d5   :  { %3324 = vrot.lane.b32.xlu1 %v3319_v9, %s4283_s4  ;;  %v3321_v16 = vadd.f32 %v3320_v15, %v6455_v32 }
0x27d9   :  { %3345 = vrot.lane.b32.xlu1 %v3321_v16, %s4284_s19 }
0x2847   :  { %v3325_v14 = vpop.permute.xlu1 %3324 }
0x2848   :  { %v3327_v18 = vadd.f32 %v3325_v14, %v3319_v9 }
0x284a   :  { %v3489_v20 = vmul.f32 -1.442695, %v3327_v18 }
0x284b   :  { %v3346_v33 = vpop.permute.xlu1 %3345 }
0x284c   :  { %4199 = vpow2.f32 %v3489_v20 }
0x2859   :  { %v4200_v24 = vpop.eup %4199 }
0x285a   :  { %v3331_v61 = vadd.f32 1.0, %v4200_v24 }
0x285c   :  { %4201 = vrcp.f32 %v3331_v61 }
0x2869   :  { %v4202_v29 = vpop.eup %4201 }
0x286a   :  { %v3348_v35 = vmul.f32 %v4202_v29, %v3346_v33 }
0x286c   :  { %3350 = vrot.lane.b32.xlu1 %v3348_v35, %s4281_s23 }
0x2870   :  { %3335 = vrot.lane.b32.xlu1 %v3321_v16, %s4283_s4 }
0x28de   :  { %v3351_v12 = vpop.permute.xlu1 %3350 }
0x28df   :  { %v3353_v3 = vadd.f32 %v3351_v12, %v3319_v9 }
0x28e1   :  { %4203 = vtanh.f32 %v3353_v3 }
0x28e2   :  { %v3336_v2 = vpop.permute.xlu1 %3335 }
0x28e3   :  { %v3338_v46 = vadd.f32 %v3336_v2, %v3319_v9 }
0x28e5   :  { %v3490_v11 = vmul.f32 -1.442695, %v3338_v46 }
0x28e7   :  { %4205 = vpow2.f32 %v3490_v11 }
0x28ee   :  { %v4204_v32 = vpop.eup %4203 }
0x28ef   :  { %3357 = vrot.lane.b32.xlu1 %v4204_v32, %s4284_s19 }
0x28f4   :  { %v4206_v37 = vpop.eup %4205 }
0x28f5   :  { %v3342_v17 = vadd.f32 1.0, %v4206_v37 }
0x28f7   :  { %4207 = vrcp.f32 %v3342_v17 }
0x2904   :  { %v4208_v41 = vpop.eup %4207 }
0x2905   :  { %v3355_v42 = vsub.f32 1.0, %v4208_v41  ;;  %v3361_v58 = vmul.f32 %v4208_v41, %v6167_v55 }
0x2961   :  { %v3358_v52 = vpop.permute.xlu1 %3357 }
0x2962   :  { %v3360_v47 = vmul.f32 %v3358_v52, %v3355_v42 }
0x2964   :  { %v3362_v50 = vadd.f32 %v3361_v58, %v3360_v47 }
0x2966   :  { %3364 = vrot.lane.b32.xlu1 %v3362_v50, %s4284_s19 }
0x29d8   :  { %v3365_v44 = vpop.permute.xlu1 %3364 }
0x29d9   :  { %4063 = vmatmul.mubr.msk.f32.vlgmr.msra.gmra.mxu1 %vm1602_vm2, %v3365_v44 }
0x2a99   :  { %v3434_v39 = vpop.f32.mrf.mxu1 }
0x2a9a   :  { %v3435_v57 = vadd.f32 %v6009_v62, %v3434_v39 }
0x2a9b   :  { %v4064_v6 = vpop.f32.mrf.mxu1 }
0x2a9c   :  { %3492 = vst [vmem:[%s6322_s13 + $0x18] sm:$0xff] %v3435_v57 }

</bundles_post_ra>
